<compile_context>
chip_gen: v6e
topology: v6e:2x2x1
jax: 0.10.0
libtpu: 0.0.40
codegen_flags: <defaults>
</compile_context>

<pallas_src>
import math

import jax
import jax.numpy as jnp
from jax.experimental import pallas as pl
from jax.experimental.pallas import tpu as pltpu

# ----------------------------- model config ---------------------------------
D_MODEL = 32
NUM_HEADS = 4
D_HEAD = D_MODEL // NUM_HEADS
D_FF = 64
VOCAB = 50
PAD_VOCAB = 128          # lane-dense padded vocab projection (sliced back to VOCAB in JAX)
NUM_LAYERS = 2
PAD_ID = 0
NEG_INF = -1e9

ENC_KEYS = ("wqkv", "bqkv", "wo", "bo", "ln1g", "ln1b",
            "w1", "b1", "w2", "b2", "ln2g", "ln2b")
DEC_KEYS = ("sa_wqkv", "sa_bqkv", "sa_wo", "sa_bo",
            "ca_wq", "ca_bq", "ca_wkv", "ca_bkv", "ca_wo", "ca_bo",
            "w1", "b1", "w2", "b2",
            "ln1g", "ln1b", "ln2g", "ln2b", "ln3g", "ln3b")
N_ENC = len(ENC_KEYS)
N_DEC = len(DEC_KEYS)

_COMPILER_PARAMS = pltpu.CompilerParams(vmem_limit_bytes=32 * 1024 * 1024)

# ----------------------------- in-kernel helpers -----------------------------

def _proj(x2, w, b):
    # x2: [M, K], w: [K, N], b: [1, N]
    return jnp.dot(x2, w, preferred_element_type=jnp.float32) + b


def _layer_norm(x2, g, b):
    mu = jnp.mean(x2, axis=-1, keepdims=True)
    var = jnp.mean((x2 - mu) ** 2, axis=-1, keepdims=True)
    return (x2 - mu) * jax.lax.rsqrt(var + 1e-5) * g + b


def _mha(q2, k2, v2, bias, wo, bo):
    """Multi-head attention over all batches at once.

    q2: [Mq, D], k2/v2: [Mk, D] (rows = batch*seq, batches concatenated),
    bias: [Mq, Mk] additive bias (0 keep / -1e9 masked, cross-batch blocks masked),
    wo: [D, D], bo: [1, D].  Returns [Mq, D] lane-dense.
    """
    q2 = q2 * (1.0 / math.sqrt(D_HEAD))        # fold 1/sqrt(Dh) in once, before head loop
    out = None
    for h in range(NUM_HEADS):                 # static unroll (H=4); Dh=8 sub-slices
        lo, hi = h * D_HEAD, (h + 1) * D_HEAD
        # q @ k^T without materializing a transpose (contract last dims of both)
        s = jax.lax.dot_general(
            q2[:, lo:hi], k2[:, lo:hi],
            dimension_numbers=(((1,), (1,)), ((), ())),
            preferred_element_type=jnp.float32) + bias
        s = s - jnp.max(s, axis=-1, keepdims=True)
        p = jnp.exp(s)
        p = p / jnp.sum(p, axis=-1, keepdims=True)         # exact softmax denominator
        ctx = jnp.dot(p, v2[:, lo:hi], preferred_element_type=jnp.float32)   # [Mq, Dh]
        # fold the output projection per head (sublane slice of Wo) -> no lane concat
        part = jnp.dot(ctx, wo[lo:hi, :], preferred_element_type=jnp.float32)  # [Mq, D]
        out = part if out is None else out + part
    return out + bo

# ----------------------------- fused transformer kernel ----------------------

def _transformer_kernel(*refs):
    x_src_ref, x_tgt_ref, enc_bias_ref, self_bias_ref, cross_bias_ref = refs[0:5]
    e = dict(zip(ENC_KEYS, refs[5:5 + N_ENC]))
    d = dict(zip(DEC_KEYS, refs[5 + N_ENC:5 + N_ENC + N_DEC]))
    wout_ref, bout_ref = refs[5 + N_ENC + N_DEC:5 + N_ENC + N_DEC + 2]
    o_ref = refs[-1]

    # biases loaded once and reused across all layers / heads
    enc_bias = enc_bias_ref[...]               # [B*Ls, B*Ls]
    self_bias = self_bias_ref[...]             # [B*Lt, B*Lt]
    cross_bias = cross_bias_ref[...]           # [B*Lt, B*Ls]

    # ----------------------------- encoder stack -----------------------------
    x = x_src_ref[...]                         # [B*Ls, D] f32, stays in VMEM throughout
    for l in range(NUM_LAYERS):                # static unroll (NUM_LAYERS=2)
        qkv = _proj(x, e["wqkv"][l], e["bqkv"][l])          # fused QKV matmul [*, 3D]
        a = _mha(qkv[:, :D_MODEL], qkv[:, D_MODEL:2 * D_MODEL], qkv[:, 2 * D_MODEL:],
                 enc_bias, e["wo"][l], e["bo"][l])
        x = _layer_norm(x + a, e["ln1g"][l], e["ln1b"][l])
        h = jnp.maximum(_proj(x, e["w1"][l], e["b1"][l]), 0.0)
        h = _proj(h, e["w2"][l], e["b2"][l])
        x = _layer_norm(x + h, e["ln2g"][l], e["ln2b"][l])
    enc = x                                    # encoder output never leaves VMEM

    # ----------------------------- decoder stack -----------------------------
    y = x_tgt_ref[...]                         # [B*Lt, D]
    for l in range(NUM_LAYERS):
        # masked self-attention (fused QKV)
        qkv = _proj(y, d["sa_wqkv"][l], d["sa_bqkv"][l])
        a = _mha(qkv[:, :D_MODEL], qkv[:, D_MODEL:2 * D_MODEL], qkv[:, 2 * D_MODEL:],
                 self_bias, d["sa_wo"][l], d["sa_bo"][l])
        y = _layer_norm(y + a, d["ln1g"][l], d["ln1b"][l])
        # cross-attention (fused KV from encoder output)
        q2 = _proj(y, d["ca_wq"][l], d["ca_bq"][l])
        kv = _proj(enc, d["ca_wkv"][l], d["ca_bkv"][l])
        a = _mha(q2, kv[:, :D_MODEL], kv[:, D_MODEL:],
                 cross_bias, d["ca_wo"][l], d["ca_bo"][l])
        y = _layer_norm(y + a, d["ln2g"][l], d["ln2b"][l])
        # feed-forward
        h = jnp.maximum(_proj(y, d["w1"][l], d["b1"][l]), 0.0)
        h = _proj(h, d["w2"][l], d["b2"][l])
        y = _layer_norm(y + h, d["ln3g"][l], d["ln3b"][l])

    # fused, lane-dense (128-wide) vocab projection
    o_ref[...] = _proj(y, wout_ref[...], bout_ref[...]).astype(o_ref.dtype)

# ----------------------------- transformer glue ------------------------------

def sinusoidal_pe(L, D):
    pos = jnp.arange(L, dtype=jnp.float32)[:, None]
    div = jnp.exp(jnp.arange(0, D, 2, dtype=jnp.float32) * (-math.log(10000.0) / D))
    pe = jnp.zeros((L, D), jnp.float32)
    pe = pe.at[:, 0::2].set(jnp.sin(pos * div))
    pe = pe.at[:, 1::2].set(jnp.cos(pos * div))
    return pe


def _keep_f32(mask_bool, B, Lq, Lk):
    # mask_bool: [B,1,1,Lk] or [B,1,Lq,Lk] bool -> [B, Lq, Lk] float (1=keep, 0=masked)
    return jnp.broadcast_to(mask_bool, (B, 1, Lq, Lk))[:, 0].astype(jnp.float32)


def _block_bias(keep):
    """keep: [B, Lq, Lk] float -> additive bias [B*Lq, B*Lk] with cross-batch blocks masked."""
    B, Lq, Lk = keep.shape
    bias = jnp.full((B * Lq, B * Lk), NEG_INF, jnp.float32)
    for b in range(B):                                       # static (B=2), trace-time only
        blk = jnp.where(keep[b] > 0.5, 0.0, NEG_INF)
        bias = jax.lax.dynamic_update_slice(bias, blk, (b * Lq, b * Lk))
    return bias


def transformer_forward(params, enc_input, dec_input, enc_mask, dec_mask):
    B, Ls = enc_input.shape
    _, Lt = dec_input.shape
    enc_p, dec_p = params["encoder"], params["decoder"]

    # TODO(synk): embedding gather + sinusoidal PE kept as plain JAX ops (tiny, no clean Pallas
    # gather win at this size); dropout omitted (eval-mode forward).
    x_src = jnp.take(enc_p["embed"], enc_input, axis=0) * math.sqrt(D_MODEL)
    x_src = x_src + sinusoidal_pe(Ls, D_MODEL)[None]
    x_tgt = jnp.take(dec_p["embed"], dec_input, axis=0) * math.sqrt(D_MODEL)
    x_tgt = x_tgt + sinusoidal_pe(Lt, D_MODEL)[None]

    # additive attention biases built once in JAX (block-diagonal across batches)
    enc_bias = _block_bias(_keep_f32(enc_mask, B, Ls, Ls))     # [B*Ls, B*Ls]
    self_bias = _block_bias(_keep_f32(dec_mask, B, Lt, Lt))    # [B*Lt, B*Lt]
    cross_bias = _block_bias(_keep_f32(enc_mask, B, Lt, Ls))   # [B*Lt, B*Ls]

    est, dst = enc_p["stack"], dec_p["stack"]
    logits_pad = pl.pallas_call(
        _transformer_kernel,
        out_shape=jax.ShapeDtypeStruct((B * Lt, PAD_VOCAB), jnp.float32),
        compiler_params=_COMPILER_PARAMS,
    )(x_src.reshape(B * Ls, D_MODEL), x_tgt.reshape(B * Lt, D_MODEL),
      enc_bias, self_bias, cross_bias,
      *[est[k] for k in ENC_KEYS], *[dst[k] for k in DEC_KEYS],
      dec_p["w_out"], dec_p["b_out"])

    return logits_pad.reshape(B, Lt, PAD_VOCAB)[:, :, :VOCAB]   # [B, Lt, VOCAB]

# ----------------------------- parameter init --------------------------------

def init_params(key):
    kiter = iter(jax.random.split(key, 256))

    def w(shape, scale=0.05):
        return jax.random.normal(next(kiter), shape, jnp.float32) * scale

    def enc_layer_params():
        wq, wk, wv = w((D_MODEL, D_MODEL)), w((D_MODEL, D_MODEL)), w((D_MODEL, D_MODEL))
        return dict(
            wqkv=jnp.concatenate([wq, wk, wv], axis=1),
            bqkv=jnp.zeros((1, 3 * D_MODEL), jnp.float32),
            wo=w((D_MODEL, D_MODEL)), bo=jnp.zeros((1, D_MODEL), jnp.float32),
            ln1g=jnp.ones((1, D_MODEL), jnp.float32), ln1b=jnp.zeros((1, D_MODEL), jnp.float32),
            w1=w((D_MODEL, D_FF)), b1=jnp.zeros((1, D_FF), jnp.float32),
            w2=w((D_FF, D_MODEL)), b2=jnp.zeros((1, D_MODEL), jnp.float32),
            ln2g=jnp.ones((1, D_MODEL), jnp.float32), ln2b=jnp.zeros((1, D_MODEL), jnp.float32),
        )

    def dec_layer_params():
        wq, wk, wv = w((D_MODEL, D_MODEL)), w((D_MODEL, D_MODEL)), w((D_MODEL, D_MODEL))
        cq, ck, cv = w((D_MODEL, D_MODEL)), w((D_MODEL, D_MODEL)), w((D_MODEL, D_MODEL))
        return dict(
            sa_wqkv=jnp.concatenate([wq, wk, wv], axis=1),
            sa_bqkv=jnp.zeros((1, 3 * D_MODEL), jnp.float32),
            sa_wo=w((D_MODEL, D_MODEL)), sa_bo=jnp.zeros((1, D_MODEL), jnp.float32),
            ca_wq=cq, ca_bq=jnp.zeros((1, D_MODEL), jnp.float32),
            ca_wkv=jnp.concatenate([ck, cv], axis=1),
            ca_bkv=jnp.zeros((1, 2 * D_MODEL), jnp.float32),
            ca_wo=w((D_MODEL, D_MODEL)), ca_bo=jnp.zeros((1, D_MODEL), jnp.float32),
            w1=w((D_MODEL, D_FF)), b1=jnp.zeros((1, D_FF), jnp.float32),
            w2=w((D_FF, D_MODEL)), b2=jnp.zeros((1, D_MODEL), jnp.float32),
            ln1g=jnp.ones((1, D_MODEL), jnp.float32), ln1b=jnp.zeros((1, D_MODEL), jnp.float32),
            ln2g=jnp.ones((1, D_MODEL), jnp.float32), ln2b=jnp.zeros((1, D_MODEL), jnp.float32),
            ln3g=jnp.ones((1, D_MODEL), jnp.float32), ln3b=jnp.zeros((1, D_MODEL), jnp.float32),
        )

    enc_layers = [enc_layer_params() for _ in range(NUM_LAYERS)]
    dec_layers = [dec_layer_params() for _ in range(NUM_LAYERS)]
    enc_stack = {k: jnp.stack([lp[k] for lp in enc_layers]) for k in ENC_KEYS}
    dec_stack = {k: jnp.stack([lp[k] for lp in dec_layers]) for k in DEC_KEYS}

    w_out = w((D_MODEL, VOCAB))
    w_out_pad = jnp.zeros((D_MODEL, PAD_VOCAB), jnp.float32).at[:, :VOCAB].set(w_out)
    b_out_pad = jnp.zeros((1, PAD_VOCAB), jnp.float32)

    return dict(
        encoder=dict(embed=w((VOCAB, D_MODEL), 0.1), stack=enc_stack),
        decoder=dict(embed=w((VOCAB, D_MODEL), 0.1), stack=dec_stack,
                     w_out=w_out_pad, b_out=b_out_pad),
    )

# ----------------------------------- main ------------------------------------

if __name__ == "__main__":
    key = jax.random.PRNGKey(0)
    k_param, k_src, k_tgt = jax.random.split(key, 3)
    params = init_params(k_param)

    B, Ls, Lt = 2, 8, 8
    enc_input = jax.random.randint(k_src, (B, Ls), 1, VOCAB, dtype=jnp.int32)
    dec_input = jax.random.randint(k_tgt, (B, Lt), 1, VOCAB, dtype=jnp.int32)
    # Introduce some padding in the second source sequence.
    enc_input = enc_input.at[1, -2:].set(PAD_ID)

    enc_mask = (enc_input != PAD_ID)[:, None, None, :]                       # [B,1,1,Ls] bool
    causal = jnp.tril(jnp.ones((Lt, Lt), dtype=bool))
    dec_mask = (dec_input != PAD_ID)[:, None, None, :] & causal[None, None]  # [B,1,Lt,Lt] bool

    fwd = jax.jit(transformer_forward)
    out = fwd(params, enc_input, dec_input, enc_mask, dec_mask)
    jax.block_until_ready(out)
    assert out.shape == (B, Lt, VOCAB) and out.dtype == jnp.float32
    assert bool(jnp.all(jnp.isfinite(out)))
    print("KERNEL_OK")
</pallas_src>

<mosaic_0001>
module attributes {stable_mosaic.version = 11 : i64} {
  func.func @_transformer_kernel(%arg0: memref<16x32xf32, #tpu.memory_space<vmem>>, %arg1: memref<16x32xf32, #tpu.memory_space<vmem>>, %arg2: memref<16x16xf32, #tpu.memory_space<vmem>>, %arg3: memref<16x16xf32, #tpu.memory_space<vmem>>, %arg4: memref<16x16xf32, #tpu.memory_space<vmem>>, %arg5: memref<2x32x96xf32, #tpu.memory_space<vmem>>, %arg6: memref<2x1x96xf32, #tpu.memory_space<vmem>>, %arg7: memref<2x32x32xf32, #tpu.memory_space<vmem>>, %arg8: memref<2x1x32xf32, #tpu.memory_space<vmem>>, %arg9: memref<2x1x32xf32, #tpu.memory_space<vmem>>, %arg10: memref<2x1x32xf32, #tpu.memory_space<vmem>>, %arg11: memref<2x32x64xf32, #tpu.memory_space<vmem>>, %arg12: memref<2x1x64xf32, #tpu.memory_space<vmem>>, %arg13: memref<2x64x32xf32, #tpu.memory_space<vmem>>, %arg14: memref<2x1x32xf32, #tpu.memory_space<vmem>>, %arg15: memref<2x1x32xf32, #tpu.memory_space<vmem>>, %arg16: memref<2x1x32xf32, #tpu.memory_space<vmem>>, %arg17: memref<2x32x96xf32, #tpu.memory_space<vmem>>, %arg18: memref<2x1x96xf32, #tpu.memory_space<vmem>>, %arg19: memref<2x32x32xf32, #tpu.memory_space<vmem>>, %arg20: memref<2x1x32xf32, #tpu.memory_space<vmem>>, %arg21: memref<2x32x32xf32, #tpu.memory_space<vmem>>, %arg22: memref<2x1x32xf32, #tpu.memory_space<vmem>>, %arg23: memref<2x32x64xf32, #tpu.memory_space<vmem>>, %arg24: memref<2x1x64xf32, #tpu.memory_space<vmem>>, %arg25: memref<2x32x32xf32, #tpu.memory_space<vmem>>, %arg26: memref<2x1x32xf32, #tpu.memory_space<vmem>>, %arg27: memref<2x32x64xf32, #tpu.memory_space<vmem>>, %arg28: memref<2x1x64xf32, #tpu.memory_space<vmem>>, %arg29: memref<2x64x32xf32, #tpu.memory_space<vmem>>, %arg30: memref<2x1x32xf32, #tpu.memory_space<vmem>>, %arg31: memref<2x1x32xf32, #tpu.memory_space<vmem>>, %arg32: memref<2x1x32xf32, #tpu.memory_space<vmem>>, %arg33: memref<2x1x32xf32, #tpu.memory_space<vmem>>, %arg34: memref<2x1x32xf32, #tpu.memory_space<vmem>>, %arg35: memref<2x1x32xf32, #tpu.memory_space<vmem>>, %arg36: memref<2x1x32xf32, #tpu.memory_space<vmem>>, %arg37: memref<32x128xf32, #tpu.memory_space<vmem>>, %arg38: memref<1x128xf32, #tpu.memory_space<vmem>>, %arg39: memref<16x128xf32, #tpu.memory_space<vmem>>) attributes {dimension_semantics = [], scalar_prefetch = 0 : i64, scratch_operands = 0 : i64, tpu.core_type = #tpu.core_type<tc>} {
    %c0 = arith.constant 0 : index
    %c0_0 = arith.constant 0 : index
    %0 = vector.load %arg2[%c0, %c0_0] : memref<16x16xf32, #tpu.memory_space<vmem>>, vector<16x16xf32>
    %c0_1 = arith.constant 0 : index
    %c0_2 = arith.constant 0 : index
    %1 = vector.load %arg3[%c0_1, %c0_2] : memref<16x16xf32, #tpu.memory_space<vmem>>, vector<16x16xf32>
    %c0_3 = arith.constant 0 : index
    %c0_4 = arith.constant 0 : index
    %2 = vector.load %arg4[%c0_3, %c0_4] : memref<16x16xf32, #tpu.memory_space<vmem>>, vector<16x16xf32>
    %c0_5 = arith.constant 0 : index
    %c0_6 = arith.constant 0 : index
    %3 = vector.load %arg0[%c0_5, %c0_6] : memref<16x32xf32, #tpu.memory_space<vmem>>, vector<16x32xf32>
    %c0_7 = arith.constant 0 : index
    %c0_8 = arith.constant 0 : index
    %c0_9 = arith.constant 0 : index
    %4 = vector.load %arg5[%c0_7, %c0_8, %c0_9] : memref<2x32x96xf32, #tpu.memory_space<vmem>>, vector<1x32x96xf32>
    %5 = vector.shape_cast %4 : vector<1x32x96xf32> to vector<32x96xf32>
    %c0_10 = arith.constant 0 : index
    %c0_11 = arith.constant 0 : index
    %c0_12 = arith.constant 0 : index
    %6 = vector.load %arg6[%c0_10, %c0_11, %c0_12] : memref<2x1x96xf32, #tpu.memory_space<vmem>>, vector<1x1x96xf32>
    %7 = vector.shape_cast %6 : vector<1x1x96xf32> to vector<1x96xf32>
    %cst = arith.constant dense<0.000000e+00> : vector<16x96xf32>
    %8 = tpu.matmul %3, %5, %cst {dimension_numbers = #tpu.dot_dimension_numbers<[1], [0], [0], [1], [0, 0, 1, 1], [], []>} : vector<16x32xf32>, vector<32x96xf32>, vector<16x96xf32> -> vector<16x96xf32>
    %9 = vector.broadcast %7 : vector<1x96xf32> to vector<16x96xf32>
    %10 = arith.addf %8, %9 : vector<16x96xf32>
    %11 = vector.extract_strided_slice %10 {offsets = [0, 0], sizes = [16, 32], strides = [1, 1]} : vector<16x96xf32> to vector<16x32xf32>
    %12 = vector.extract_strided_slice %10 {offsets = [0, 32], sizes = [16, 32], strides = [1, 1]} : vector<16x96xf32> to vector<16x32xf32>
    %13 = vector.extract_strided_slice %10 {offsets = [0, 64], sizes = [16, 32], strides = [1, 1]} : vector<16x96xf32> to vector<16x32xf32>
    %c0_13 = arith.constant 0 : index
    %c0_14 = arith.constant 0 : index
    %c0_15 = arith.constant 0 : index
    %14 = vector.load %arg7[%c0_13, %c0_14, %c0_15] : memref<2x32x32xf32, #tpu.memory_space<vmem>>, vector<1x32x32xf32>
    %15 = vector.shape_cast %14 : vector<1x32x32xf32> to vector<32x32xf32>
    %c0_16 = arith.constant 0 : index
    %c0_17 = arith.constant 0 : index
    %c0_18 = arith.constant 0 : index
    %16 = vector.load %arg8[%c0_16, %c0_17, %c0_18] : memref<2x1x32xf32, #tpu.memory_space<vmem>>, vector<1x1x32xf32>
    %17 = vector.shape_cast %16 : vector<1x1x32xf32> to vector<1x32xf32>
    %cst_19 = arith.constant 0.353553385 : f32
    %18 = vector.broadcast %cst_19 : f32 to vector<16x32xf32>
    %19 = arith.mulf %11, %18 : vector<16x32xf32>
    %20 = vector.extract_strided_slice %19 {offsets = [0, 0], sizes = [16, 8], strides = [1, 1]} : vector<16x32xf32> to vector<16x8xf32>
    %21 = vector.extract_strided_slice %12 {offsets = [0, 0], sizes = [16, 8], strides = [1, 1]} : vector<16x32xf32> to vector<16x8xf32>
    %cst_20 = arith.constant dense<0.000000e+00> : vector<16x16xf32>
    %22 = tpu.matmul %20, %21, %cst_20 {dimension_numbers = #tpu.dot_dimension_numbers<[1], [1], [0], [0], [0, 0, 1, 0], [], []>} : vector<16x8xf32>, vector<16x8xf32>, vector<16x16xf32> -> vector<16x16xf32>
    %23 = arith.addf %22, %0 : vector<16x16xf32>
    %cst_21 = arith.constant dense<0xFF800000> : vector<16xf32>
    %24 = vector.multi_reduction <maximumf>, %23, %cst_21 [1] : vector<16x16xf32> to vector<16xf32>
    %25 = vector.shape_cast %24 : vector<16xf32> to vector<16x1xf32>
    %26 = vector.broadcast %25 : vector<16x1xf32> to vector<16x16xf32>
    %27 = arith.subf %23, %26 : vector<16x16xf32>
    %28 = math.exp %27 : vector<16x16xf32>
    %cst_22 = arith.constant dense<0.000000e+00> : vector<16xf32>
    %29 = vector.multi_reduction <add>, %28, %cst_22 [1] : vector<16x16xf32> to vector<16xf32>
    %30 = vector.shape_cast %29 : vector<16xf32> to vector<16x1xf32>
    %31 = vector.broadcast %30 : vector<16x1xf32> to vector<16x16xf32>
    %32 = arith.divf %28, %31 : vector<16x16xf32>
    %33 = vector.extract_strided_slice %13 {offsets = [0, 0], sizes = [16, 8], strides = [1, 1]} : vector<16x32xf32> to vector<16x8xf32>
    %cst_23 = arith.constant dense<0.000000e+00> : vector<16x8xf32>
    %34 = tpu.matmul %32, %33, %cst_23 {dimension_numbers = #tpu.dot_dimension_numbers<[1], [0], [0], [1], [0, 0, 1, 1], [], []>} : vector<16x16xf32>, vector<16x8xf32>, vector<16x8xf32> -> vector<16x8xf32>
    %35 = vector.extract_strided_slice %15 {offsets = [0, 0], sizes = [8, 32], strides = [1, 1]} : vector<32x32xf32> to vector<8x32xf32>
    %cst_24 = arith.constant dense<0.000000e+00> : vector<16x32xf32>
    %36 = tpu.matmul %34, %35, %cst_24 {dimension_numbers = #tpu.dot_dimension_numbers<[1], [0], [0], [1], [0, 0, 1, 1], [], []>} : vector<16x8xf32>, vector<8x32xf32>, vector<16x32xf32> -> vector<16x32xf32>
    %37 = vector.extract_strided_slice %19 {offsets = [0, 8], sizes = [16, 8], strides = [1, 1]} : vector<16x32xf32> to vector<16x8xf32>
    %38 = vector.extract_strided_slice %12 {offsets = [0, 8], sizes = [16, 8], strides = [1, 1]} : vector<16x32xf32> to vector<16x8xf32>
    %cst_25 = arith.constant dense<0.000000e+00> : vector<16x16xf32>
    %39 = tpu.matmul %37, %38, %cst_25 {dimension_numbers = #tpu.dot_dimension_numbers<[1], [1], [0], [0], [0, 0, 1, 0], [], []>} : vector<16x8xf32>, vector<16x8xf32>, vector<16x16xf32> -> vector<16x16xf32>
    %40 = arith.addf %39, %0 : vector<16x16xf32>
    %cst_26 = arith.constant dense<0xFF800000> : vector<16xf32>
    %41 = vector.multi_reduction <maximumf>, %40, %cst_26 [1] : vector<16x16xf32> to vector<16xf32>
    %42 = vector.shape_cast %41 : vector<16xf32> to vector<16x1xf32>
    %43 = vector.broadcast %42 : vector<16x1xf32> to vector<16x16xf32>
    %44 = arith.subf %40, %43 : vector<16x16xf32>
    %45 = math.exp %44 : vector<16x16xf32>
    %cst_27 = arith.constant dense<0.000000e+00> : vector<16xf32>
    %46 = vector.multi_reduction <add>, %45, %cst_27 [1] : vector<16x16xf32> to vector<16xf32>
    %47 = vector.shape_cast %46 : vector<16xf32> to vector<16x1xf32>
    %48 = vector.broadcast %47 : vector<16x1xf32> to vector<16x16xf32>
    %49 = arith.divf %45, %48 : vector<16x16xf32>
    %50 = vector.extract_strided_slice %13 {offsets = [0, 8], sizes = [16, 8], strides = [1, 1]} : vector<16x32xf32> to vector<16x8xf32>
    %cst_28 = arith.constant dense<0.000000e+00> : vector<16x8xf32>
    %51 = tpu.matmul %49, %50, %cst_28 {dimension_numbers = #tpu.dot_dimension_numbers<[1], [0], [0], [1], [0, 0, 1, 1], [], []>} : vector<16x16xf32>, vector<16x8xf32>, vector<16x8xf32> -> vector<16x8xf32>
    %52 = vector.extract_strided_slice %15 {offsets = [8, 0], sizes = [8, 32], strides = [1, 1]} : vector<32x32xf32> to vector<8x32xf32>
    %cst_29 = arith.constant dense<0.000000e+00> : vector<16x32xf32>
    %53 = tpu.matmul %51, %52, %cst_29 {dimension_numbers = #tpu.dot_dimension_numbers<[1], [0], [0], [1], [0, 0, 1, 1], [], []>} : vector<16x8xf32>, vector<8x32xf32>, vector<16x32xf32> -> vector<16x32xf32>
    %54 = arith.addf %36, %53 : vector<16x32xf32>
    %55 = vector.extract_strided_slice %19 {offsets = [0, 16], sizes = [16, 8], strides = [1, 1]} : vector<16x32xf32> to vector<16x8xf32>
    %56 = vector.extract_strided_slice %12 {offsets = [0, 16], sizes = [16, 8], strides = [1, 1]} : vector<16x32xf32> to vector<16x8xf32>
    %cst_30 = arith.constant dense<0.000000e+00> : vector<16x16xf32>
    %57 = tpu.matmul %55, %56, %cst_30 {dimension_numbers = #tpu.dot_dimension_numbers<[1], [1], [0], [0], [0, 0, 1, 0], [], []>} : vector<16x8xf32>, vector<16x8xf32>, vector<16x16xf32> -> vector<16x16xf32>
    %58 = arith.addf %57, %0 : vector<16x16xf32>
    %cst_31 = arith.constant dense<0xFF800000> : vector<16xf32>
    %59 = vector.multi_reduction <maximumf>, %58, %cst_31 [1] : vector<16x16xf32> to vector<16xf32>
    %60 = vector.shape_cast %59 : vector<16xf32> to vector<16x1xf32>
    %61 = vector.broadcast %60 : vector<16x1xf32> to vector<16x16xf32>
    %62 = arith.subf %58, %61 : vector<16x16xf32>
    %63 = math.exp %62 : vector<16x16xf32>
    %cst_32 = arith.constant dense<0.000000e+00> : vector<16xf32>
    %64 = vector.multi_reduction <add>, %63, %cst_32 [1] : vector<16x16xf32> to vector<16xf32>
    %65 = vector.shape_cast %64 : vector<16xf32> to vector<16x1xf32>
    %66 = vector.broadcast %65 : vector<16x1xf32> to vector<16x16xf32>
    %67 = arith.divf %63, %66 : vector<16x16xf32>
    %68 = vector.extract_strided_slice %13 {offsets = [0, 16], sizes = [16, 8], strides = [1, 1]} : vector<16x32xf32> to vector<16x8xf32>
    %cst_33 = arith.constant dense<0.000000e+00> : vector<16x8xf32>
    %69 = tpu.matmul %67, %68, %cst_33 {dimension_numbers = #tpu.dot_dimension_numbers<[1], [0], [0], [1], [0, 0, 1, 1], [], []>} : vector<16x16xf32>, vector<16x8xf32>, vector<16x8xf32> -> vector<16x8xf32>
    %70 = vector.extract_strided_slice %15 {offsets = [16, 0], sizes = [8, 32], strides = [1, 1]} : vector<32x32xf32> to vector<8x32xf32>
    %cst_34 = arith.constant dense<0.000000e+00> : vector<16x32xf32>
    %71 = tpu.matmul %69, %70, %cst_34 {dimension_numbers = #tpu.dot_dimension_numbers<[1], [0], [0], [1], [0, 0, 1, 1], [], []>} : vector<16x8xf32>, vector<8x32xf32>, vector<16x32xf32> -> vector<16x32xf32>
    %72 = arith.addf %54, %71 : vector<16x32xf32>
    %73 = vector.extract_strided_slice %19 {offsets = [0, 24], sizes = [16, 8], strides = [1, 1]} : vector<16x32xf32> to vector<16x8xf32>
    %74 = vector.extract_strided_slice %12 {offsets = [0, 24], sizes = [16, 8], strides = [1, 1]} : vector<16x32xf32> to vector<16x8xf32>
    %cst_35 = arith.constant dense<0.000000e+00> : vector<16x16xf32>
    %75 = tpu.matmul %73, %74, %cst_35 {dimension_numbers = #tpu.dot_dimension_numbers<[1], [1], [0], [0], [0, 0, 1, 0], [], []>} : vector<16x8xf32>, vector<16x8xf32>, vector<16x16xf32> -> vector<16x16xf32>
    %76 = arith.addf %75, %0 : vector<16x16xf32>
    %cst_36 = arith.constant dense<0xFF800000> : vector<16xf32>
    %77 = vector.multi_reduction <maximumf>, %76, %cst_36 [1] : vector<16x16xf32> to vector<16xf32>
    %78 = vector.shape_cast %77 : vector<16xf32> to vector<16x1xf32>
    %79 = vector.broadcast %78 : vector<16x1xf32> to vector<16x16xf32>
    %80 = arith.subf %76, %79 : vector<16x16xf32>
    %81 = math.exp %80 : vector<16x16xf32>
    %cst_37 = arith.constant dense<0.000000e+00> : vector<16xf32>
    %82 = vector.multi_reduction <add>, %81, %cst_37 [1] : vector<16x16xf32> to vector<16xf32>
    %83 = vector.shape_cast %82 : vector<16xf32> to vector<16x1xf32>
    %84 = vector.broadcast %83 : vector<16x1xf32> to vector<16x16xf32>
    %85 = arith.divf %81, %84 : vector<16x16xf32>
    %86 = vector.extract_strided_slice %13 {offsets = [0, 24], sizes = [16, 8], strides = [1, 1]} : vector<16x32xf32> to vector<16x8xf32>
    %cst_38 = arith.constant dense<0.000000e+00> : vector<16x8xf32>
    %87 = tpu.matmul %85, %86, %cst_38 {dimension_numbers = #tpu.dot_dimension_numbers<[1], [0], [0], [1], [0, 0, 1, 1], [], []>} : vector<16x16xf32>, vector<16x8xf32>, vector<16x8xf32> -> vector<16x8xf32>
    %88 = vector.extract_strided_slice %15 {offsets = [24, 0], sizes = [8, 32], strides = [1, 1]} : vector<32x32xf32> to vector<8x32xf32>
    %cst_39 = arith.constant dense<0.000000e+00> : vector<16x32xf32>
    %89 = tpu.matmul %87, %88, %cst_39 {dimension_numbers = #tpu.dot_dimension_numbers<[1], [0], [0], [1], [0, 0, 1, 1], [], []>} : vector<16x8xf32>, vector<8x32xf32>, vector<16x32xf32> -> vector<16x32xf32>
    %90 = arith.addf %72, %89 : vector<16x32xf32>
    %91 = vector.broadcast %17 : vector<1x32xf32> to vector<16x32xf32>
    %92 = arith.addf %90, %91 : vector<16x32xf32>
    %93 = arith.addf %3, %92 : vector<16x32xf32>
    %c0_40 = arith.constant 0 : index
    %c0_41 = arith.constant 0 : index
    %c0_42 = arith.constant 0 : index
    %94 = vector.load %arg9[%c0_40, %c0_41, %c0_42] : memref<2x1x32xf32, #tpu.memory_space<vmem>>, vector<1x1x32xf32>
    %95 = vector.shape_cast %94 : vector<1x1x32xf32> to vector<1x32xf32>
    %c0_43 = arith.constant 0 : index
    %c0_44 = arith.constant 0 : index
    %c0_45 = arith.constant 0 : index
    %96 = vector.load %arg10[%c0_43, %c0_44, %c0_45] : memref<2x1x32xf32, #tpu.memory_space<vmem>>, vector<1x1x32xf32>
    %97 = vector.shape_cast %96 : vector<1x1x32xf32> to vector<1x32xf32>
    %cst_46 = arith.constant dense<0.000000e+00> : vector<16xf32>
    %98 = vector.multi_reduction <add>, %93, %cst_46 [1] : vector<16x32xf32> to vector<16xf32>
    %99 = vector.shape_cast %98 : vector<16xf32> to vector<16x1xf32>
    %cst_47 = arith.constant 3.200000e+01 : f32
    %100 = vector.broadcast %cst_47 : f32 to vector<16x1xf32>
    %101 = arith.divf %99, %100 : vector<16x1xf32>
    %102 = vector.broadcast %101 : vector<16x1xf32> to vector<16x32xf32>
    %103 = arith.subf %93, %102 : vector<16x32xf32>
    %104 = arith.mulf %103, %103 : vector<16x32xf32>
    %cst_48 = arith.constant dense<0.000000e+00> : vector<16xf32>
    %105 = vector.multi_reduction <add>, %104, %cst_48 [1] : vector<16x32xf32> to vector<16xf32>
    %106 = vector.shape_cast %105 : vector<16xf32> to vector<16x1xf32>
    %cst_49 = arith.constant 3.200000e+01 : f32
    %107 = vector.broadcast %cst_49 : f32 to vector<16x1xf32>
    %108 = arith.divf %106, %107 : vector<16x1xf32>
    %109 = vector.broadcast %101 : vector<16x1xf32> to vector<16x32xf32>
    %110 = arith.subf %93, %109 : vector<16x32xf32>
    %cst_50 = arith.constant 9.99999974E-6 : f32
    %111 = vector.broadcast %cst_50 : f32 to vector<16x1xf32>
    %112 = arith.addf %108, %111 : vector<16x1xf32>
    %113 = math.rsqrt %112 : vector<16x1xf32>
    %114 = vector.broadcast %113 : vector<16x1xf32> to vector<16x32xf32>
    %115 = arith.mulf %110, %114 : vector<16x32xf32>
    %116 = vector.broadcast %95 : vector<1x32xf32> to vector<16x32xf32>
    %117 = arith.mulf %115, %116 : vector<16x32xf32>
    %118 = vector.broadcast %97 : vector<1x32xf32> to vector<16x32xf32>
    %119 = arith.addf %117, %118 : vector<16x32xf32>
    %c0_51 = arith.constant 0 : index
    %c0_52 = arith.constant 0 : index
    %c0_53 = arith.constant 0 : index
    %120 = vector.load %arg11[%c0_51, %c0_52, %c0_53] : memref<2x32x64xf32, #tpu.memory_space<vmem>>, vector<1x32x64xf32>
    %121 = vector.shape_cast %120 : vector<1x32x64xf32> to vector<32x64xf32>
    %c0_54 = arith.constant 0 : index
    %c0_55 = arith.constant 0 : index
    %c0_56 = arith.constant 0 : index
    %122 = vector.load %arg12[%c0_54, %c0_55, %c0_56] : memref<2x1x64xf32, #tpu.memory_space<vmem>>, vector<1x1x64xf32>
    %123 = vector.shape_cast %122 : vector<1x1x64xf32> to vector<1x64xf32>
    %cst_57 = arith.constant dense<0.000000e+00> : vector<16x64xf32>
    %124 = tpu.matmul %119, %121, %cst_57 {dimension_numbers = #tpu.dot_dimension_numbers<[1], [0], [0], [1], [0, 0, 1, 1], [], []>} : vector<16x32xf32>, vector<32x64xf32>, vector<16x64xf32> -> vector<16x64xf32>
    %125 = vector.broadcast %123 : vector<1x64xf32> to vector<16x64xf32>
    %126 = arith.addf %124, %125 : vector<16x64xf32>
    %cst_58 = arith.constant 0.000000e+00 : f32
    %127 = vector.broadcast %cst_58 : f32 to vector<16x64xf32>
    %128 = arith.maximumf %126, %127 : vector<16x64xf32>
    %c0_59 = arith.constant 0 : index
    %c0_60 = arith.constant 0 : index
    %c0_61 = arith.constant 0 : index
    %129 = vector.load %arg13[%c0_59, %c0_60, %c0_61] : memref<2x64x32xf32, #tpu.memory_space<vmem>>, vector<1x64x32xf32>
    %130 = vector.shape_cast %129 : vector<1x64x32xf32> to vector<64x32xf32>
    %c0_62 = arith.constant 0 : index
    %c0_63 = arith.constant 0 : index
    %c0_64 = arith.constant 0 : index
    %131 = vector.load %arg14[%c0_62, %c0_63, %c0_64] : memref<2x1x32xf32, #tpu.memory_space<vmem>>, vector<1x1x32xf32>
    %132 = vector.shape_cast %131 : vector<1x1x32xf32> to vector<1x32xf32>
    %cst_65 = arith.constant dense<0.000000e+00> : vector<16x32xf32>
    %133 = tpu.matmul %128, %130, %cst_65 {dimension_numbers = #tpu.dot_dimension_numbers<[1], [0], [0], [1], [0, 0, 1, 1], [], []>} : vector<16x64xf32>, vector<64x32xf32>, vector<16x32xf32> -> vector<16x32xf32>
    %134 = vector.broadcast %132 : vector<1x32xf32> to vector<16x32xf32>
    %135 = arith.addf %133, %134 : vector<16x32xf32>
    %136 = arith.addf %119, %135 : vector<16x32xf32>
    %c0_66 = arith.constant 0 : index
    %c0_67 = arith.constant 0 : index
    %c0_68 = arith.constant 0 : index
    %137 = vector.load %arg15[%c0_66, %c0_67, %c0_68] : memref<2x1x32xf32, #tpu.memory_space<vmem>>, vector<1x1x32xf32>
    %138 = vector.shape_cast %137 : vector<1x1x32xf32> to vector<1x32xf32>
    %c0_69 = arith.constant 0 : index
    %c0_70 = arith.constant 0 : index
    %c0_71 = arith.constant 0 : index
    %139 = vector.load %arg16[%c0_69, %c0_70, %c0_71] : memref<2x1x32xf32, #tpu.memory_space<vmem>>, vector<1x1x32xf32>
    %140 = vector.shape_cast %139 : vector<1x1x32xf32> to vector<1x32xf32>
    %cst_72 = arith.constant dense<0.000000e+00> : vector<16xf32>
    %141 = vector.multi_reduction <add>, %136, %cst_72 [1] : vector<16x32xf32> to vector<16xf32>
    %142 = vector.shape_cast %141 : vector<16xf32> to vector<16x1xf32>
    %cst_73 = arith.constant 3.200000e+01 : f32
    %143 = vector.broadcast %cst_73 : f32 to vector<16x1xf32>
    %144 = arith.divf %142, %143 : vector<16x1xf32>
    %145 = vector.broadcast %144 : vector<16x1xf32> to vector<16x32xf32>
    %146 = arith.subf %136, %145 : vector<16x32xf32>
    %147 = arith.mulf %146, %146 : vector<16x32xf32>
    %cst_74 = arith.constant dense<0.000000e+00> : vector<16xf32>
    %148 = vector.multi_reduction <add>, %147, %cst_74 [1] : vector<16x32xf32> to vector<16xf32>
    %149 = vector.shape_cast %148 : vector<16xf32> to vector<16x1xf32>
    %cst_75 = arith.constant 3.200000e+01 : f32
    %150 = vector.broadcast %cst_75 : f32 to vector<16x1xf32>
    %151 = arith.divf %149, %150 : vector<16x1xf32>
    %152 = vector.broadcast %144 : vector<16x1xf32> to vector<16x32xf32>
    %153 = arith.subf %136, %152 : vector<16x32xf32>
    %cst_76 = arith.constant 9.99999974E-6 : f32
    %154 = vector.broadcast %cst_76 : f32 to vector<16x1xf32>
    %155 = arith.addf %151, %154 : vector<16x1xf32>
    %156 = math.rsqrt %155 : vector<16x1xf32>
    %157 = vector.broadcast %156 : vector<16x1xf32> to vector<16x32xf32>
    %158 = arith.mulf %153, %157 : vector<16x32xf32>
    %159 = vector.broadcast %138 : vector<1x32xf32> to vector<16x32xf32>
    %160 = arith.mulf %158, %159 : vector<16x32xf32>
    %161 = vector.broadcast %140 : vector<1x32xf32> to vector<16x32xf32>
    %162 = arith.addf %160, %161 : vector<16x32xf32>
    %c1 = arith.constant 1 : index
    %c0_77 = arith.constant 0 : index
    %c0_78 = arith.constant 0 : index
    %163 = vector.load %arg5[%c1, %c0_77, %c0_78] : memref<2x32x96xf32, #tpu.memory_space<vmem>>, vector<1x32x96xf32>
    %164 = vector.shape_cast %163 : vector<1x32x96xf32> to vector<32x96xf32>
    %c1_79 = arith.constant 1 : index
    %c0_80 = arith.constant 0 : index
    %c0_81 = arith.constant 0 : index
    %165 = vector.load %arg6[%c1_79, %c0_80, %c0_81] : memref<2x1x96xf32, #tpu.memory_space<vmem>>, vector<1x1x96xf32>
    %166 = vector.shape_cast %165 : vector<1x1x96xf32> to vector<1x96xf32>
    %cst_82 = arith.constant dense<0.000000e+00> : vector<16x96xf32>
    %167 = tpu.matmul %162, %164, %cst_82 {dimension_numbers = #tpu.dot_dimension_numbers<[1], [0], [0], [1], [0, 0, 1, 1], [], []>} : vector<16x32xf32>, vector<32x96xf32>, vector<16x96xf32> -> vector<16x96xf32>
    %168 = vector.broadcast %166 : vector<1x96xf32> to vector<16x96xf32>
    %169 = arith.addf %167, %168 : vector<16x96xf32>
    %170 = vector.extract_strided_slice %169 {offsets = [0, 0], sizes = [16, 32], strides = [1, 1]} : vector<16x96xf32> to vector<16x32xf32>
    %171 = vector.extract_strided_slice %169 {offsets = [0, 32], sizes = [16, 32], strides = [1, 1]} : vector<16x96xf32> to vector<16x32xf32>
    %172 = vector.extract_strided_slice %169 {offsets = [0, 64], sizes = [16, 32], strides = [1, 1]} : vector<16x96xf32> to vector<16x32xf32>
    %c1_83 = arith.constant 1 : index
    %c0_84 = arith.constant 0 : index
    %c0_85 = arith.constant 0 : index
    %173 = vector.load %arg7[%c1_83, %c0_84, %c0_85] : memref<2x32x32xf32, #tpu.memory_space<vmem>>, vector<1x32x32xf32>
    %174 = vector.shape_cast %173 : vector<1x32x32xf32> to vector<32x32xf32>
    %c1_86 = arith.constant 1 : index
    %c0_87 = arith.constant 0 : index
    %c0_88 = arith.constant 0 : index
    %175 = vector.load %arg8[%c1_86, %c0_87, %c0_88] : memref<2x1x32xf32, #tpu.memory_space<vmem>>, vector<1x1x32xf32>
    %176 = vector.shape_cast %175 : vector<1x1x32xf32> to vector<1x32xf32>
    %cst_89 = arith.constant 0.353553385 : f32
    %177 = vector.broadcast %cst_89 : f32 to vector<16x32xf32>
    %178 = arith.mulf %170, %177 : vector<16x32xf32>
    %179 = vector.extract_strided_slice %178 {offsets = [0, 0], sizes = [16, 8], strides = [1, 1]} : vector<16x32xf32> to vector<16x8xf32>
    %180 = vector.extract_strided_slice %171 {offsets = [0, 0], sizes = [16, 8], strides = [1, 1]} : vector<16x32xf32> to vector<16x8xf32>
    %cst_90 = arith.constant dense<0.000000e+00> : vector<16x16xf32>
    %181 = tpu.matmul %179, %180, %cst_90 {dimension_numbers = #tpu.dot_dimension_numbers<[1], [1], [0], [0], [0, 0, 1, 0], [], []>} : vector<16x8xf32>, vector<16x8xf32>, vector<16x16xf32> -> vector<16x16xf32>
    %182 = arith.addf %181, %0 : vector<16x16xf32>
    %cst_91 = arith.constant dense<0xFF800000> : vector<16xf32>
    %183 = vector.multi_reduction <maximumf>, %182, %cst_91 [1] : vector<16x16xf32> to vector<16xf32>
    %184 = vector.shape_cast %183 : vector<16xf32> to vector<16x1xf32>
    %185 = vector.broadcast %184 : vector<16x1xf32> to vector<16x16xf32>
    %186 = arith.subf %182, %185 : vector<16x16xf32>
    %187 = math.exp %186 : vector<16x16xf32>
    %cst_92 = arith.constant dense<0.000000e+00> : vector<16xf32>
    %188 = vector.multi_reduction <add>, %187, %cst_92 [1] : vector<16x16xf32> to vector<16xf32>
    %189 = vector.shape_cast %188 : vector<16xf32> to vector<16x1xf32>
    %190 = vector.broadcast %189 : vector<16x1xf32> to vector<16x16xf32>
    %191 = arith.divf %187, %190 : vector<16x16xf32>
    %192 = vector.extract_strided_slice %172 {offsets = [0, 0], sizes = [16, 8], strides = [1, 1]} : vector<16x32xf32> to vector<16x8xf32>
    %cst_93 = arith.constant dense<0.000000e+00> : vector<16x8xf32>
    %193 = tpu.matmul %191, %192, %cst_93 {dimension_numbers = #tpu.dot_dimension_numbers<[1], [0], [0], [1], [0, 0, 1, 1], [], []>} : vector<16x16xf32>, vector<16x8xf32>, vector<16x8xf32> -> vector<16x8xf32>
    %194 = vector.extract_strided_slice %174 {offsets = [0, 0], sizes = [8, 32], strides = [1, 1]} : vector<32x32xf32> to vector<8x32xf32>
    %cst_94 = arith.constant dense<0.000000e+00> : vector<16x32xf32>
    %195 = tpu.matmul %193, %194, %cst_94 {dimension_numbers = #tpu.dot_dimension_numbers<[1], [0], [0], [1], [0, 0, 1, 1], [], []>} : vector<16x8xf32>, vector<8x32xf32>, vector<16x32xf32> -> vector<16x32xf32>
    %196 = vector.extract_strided_slice %178 {offsets = [0, 8], sizes = [16, 8], strides = [1, 1]} : vector<16x32xf32> to vector<16x8xf32>
    %197 = vector.extract_strided_slice %171 {offsets = [0, 8], sizes = [16, 8], strides = [1, 1]} : vector<16x32xf32> to vector<16x8xf32>
    %cst_95 = arith.constant dense<0.000000e+00> : vector<16x16xf32>
    %198 = tpu.matmul %196, %197, %cst_95 {dimension_numbers = #tpu.dot_dimension_numbers<[1], [1], [0], [0], [0, 0, 1, 0], [], []>} : vector<16x8xf32>, vector<16x8xf32>, vector<16x16xf32> -> vector<16x16xf32>
    %199 = arith.addf %198, %0 : vector<16x16xf32>
    %cst_96 = arith.constant dense<0xFF800000> : vector<16xf32>
    %200 = vector.multi_reduction <maximumf>, %199, %cst_96 [1] : vector<16x16xf32> to vector<16xf32>
    %201 = vector.shape_cast %200 : vector<16xf32> to vector<16x1xf32>
    %202 = vector.broadcast %201 : vector<16x1xf32> to vector<16x16xf32>
    %203 = arith.subf %199, %202 : vector<16x16xf32>
    %204 = math.exp %203 : vector<16x16xf32>
    %cst_97 = arith.constant dense<0.000000e+00> : vector<16xf32>
    %205 = vector.multi_reduction <add>, %204, %cst_97 [1] : vector<16x16xf32> to vector<16xf32>
    %206 = vector.shape_cast %205 : vector<16xf32> to vector<16x1xf32>
    %207 = vector.broadcast %206 : vector<16x1xf32> to vector<16x16xf32>
    %208 = arith.divf %204, %207 : vector<16x16xf32>
    %209 = vector.extract_strided_slice %172 {offsets = [0, 8], sizes = [16, 8], strides = [1, 1]} : vector<16x32xf32> to vector<16x8xf32>
    %cst_98 = arith.constant dense<0.000000e+00> : vector<16x8xf32>
    %210 = tpu.matmul %208, %209, %cst_98 {dimension_numbers = #tpu.dot_dimension_numbers<[1], [0], [0], [1], [0, 0, 1, 1], [], []>} : vector<16x16xf32>, vector<16x8xf32>, vector<16x8xf32> -> vector<16x8xf32>
    %211 = vector.extract_strided_slice %174 {offsets = [8, 0], sizes = [8, 32], strides = [1, 1]} : vector<32x32xf32> to vector<8x32xf32>
    %cst_99 = arith.constant dense<0.000000e+00> : vector<16x32xf32>
    %212 = tpu.matmul %210, %211, %cst_99 {dimension_numbers = #tpu.dot_dimension_numbers<[1], [0], [0], [1], [0, 0, 1, 1], [], []>} : vector<16x8xf32>, vector<8x32xf32>, vector<16x32xf32> -> vector<16x32xf32>
    %213 = arith.addf %195, %212 : vector<16x32xf32>
    %214 = vector.extract_strided_slice %178 {offsets = [0, 16], sizes = [16, 8], strides = [1, 1]} : vector<16x32xf32> to vector<16x8xf32>
    %215 = vector.extract_strided_slice %171 {offsets = [0, 16], sizes = [16, 8], strides = [1, 1]} : vector<16x32xf32> to vector<16x8xf32>
    %cst_100 = arith.constant dense<0.000000e+00> : vector<16x16xf32>
    %216 = tpu.matmul %214, %215, %cst_100 {dimension_numbers = #tpu.dot_dimension_numbers<[1], [1], [0], [0], [0, 0, 1, 0], [], []>} : vector<16x8xf32>, vector<16x8xf32>, vector<16x16xf32> -> vector<16x16xf32>
    %217 = arith.addf %216, %0 : vector<16x16xf32>
    %cst_101 = arith.constant dense<0xFF800000> : vector<16xf32>
    %218 = vector.multi_reduction <maximumf>, %217, %cst_101 [1] : vector<16x16xf32> to vector<16xf32>
    %219 = vector.shape_cast %218 : vector<16xf32> to vector<16x1xf32>
    %220 = vector.broadcast %219 : vector<16x1xf32> to vector<16x16xf32>
    %221 = arith.subf %217, %220 : vector<16x16xf32>
    %222 = math.exp %221 : vector<16x16xf32>
    %cst_102 = arith.constant dense<0.000000e+00> : vector<16xf32>
    %223 = vector.multi_reduction <add>, %222, %cst_102 [1] : vector<16x16xf32> to vector<16xf32>
    %224 = vector.shape_cast %223 : vector<16xf32> to vector<16x1xf32>
    %225 = vector.broadcast %224 : vector<16x1xf32> to vector<16x16xf32>
    %226 = arith.divf %222, %225 : vector<16x16xf32>
    %227 = vector.extract_strided_slice %172 {offsets = [0, 16], sizes = [16, 8], strides = [1, 1]} : vector<16x32xf32> to vector<16x8xf32>
    %cst_103 = arith.constant dense<0.000000e+00> : vector<16x8xf32>
    %228 = tpu.matmul %226, %227, %cst_103 {dimension_numbers = #tpu.dot_dimension_numbers<[1], [0], [0], [1], [0, 0, 1, 1], [], []>} : vector<16x16xf32>, vector<16x8xf32>, vector<16x8xf32> -> vector<16x8xf32>
    %229 = vector.extract_strided_slice %174 {offsets = [16, 0], sizes = [8, 32], strides = [1, 1]} : vector<32x32xf32> to vector<8x32xf32>
    %cst_104 = arith.constant dense<0.000000e+00> : vector<16x32xf32>
    %230 = tpu.matmul %228, %229, %cst_104 {dimension_numbers = #tpu.dot_dimension_numbers<[1], [0], [0], [1], [0, 0, 1, 1], [], []>} : vector<16x8xf32>, vector<8x32xf32>, vector<16x32xf32> -> vector<16x32xf32>
    %231 = arith.addf %213, %230 : vector<16x32xf32>
    %232 = vector.extract_strided_slice %178 {offsets = [0, 24], sizes = [16, 8], strides = [1, 1]} : vector<16x32xf32> to vector<16x8xf32>
    %233 = vector.extract_strided_slice %171 {offsets = [0, 24], sizes = [16, 8], strides = [1, 1]} : vector<16x32xf32> to vector<16x8xf32>
    %cst_105 = arith.constant dense<0.000000e+00> : vector<16x16xf32>
    %234 = tpu.matmul %232, %233, %cst_105 {dimension_numbers = #tpu.dot_dimension_numbers<[1], [1], [0], [0], [0, 0, 1, 0], [], []>} : vector<16x8xf32>, vector<16x8xf32>, vector<16x16xf32> -> vector<16x16xf32>
    %235 = arith.addf %234, %0 : vector<16x16xf32>
    %cst_106 = arith.constant dense<0xFF800000> : vector<16xf32>
    %236 = vector.multi_reduction <maximumf>, %235, %cst_106 [1] : vector<16x16xf32> to vector<16xf32>
    %237 = vector.shape_cast %236 : vector<16xf32> to vector<16x1xf32>
    %238 = vector.broadcast %237 : vector<16x1xf32> to vector<16x16xf32>
    %239 = arith.subf %235, %238 : vector<16x16xf32>
    %240 = math.exp %239 : vector<16x16xf32>
    %cst_107 = arith.constant dense<0.000000e+00> : vector<16xf32>
    %241 = vector.multi_reduction <add>, %240, %cst_107 [1] : vector<16x16xf32> to vector<16xf32>
    %242 = vector.shape_cast %241 : vector<16xf32> to vector<16x1xf32>
    %243 = vector.broadcast %242 : vector<16x1xf32> to vector<16x16xf32>
    %244 = arith.divf %240, %243 : vector<16x16xf32>
    %245 = vector.extract_strided_slice %172 {offsets = [0, 24], sizes = [16, 8], strides = [1, 1]} : vector<16x32xf32> to vector<16x8xf32>
    %cst_108 = arith.constant dense<0.000000e+00> : vector<16x8xf32>
    %246 = tpu.matmul %244, %245, %cst_108 {dimension_numbers = #tpu.dot_dimension_numbers<[1], [0], [0], [1], [0, 0, 1, 1], [], []>} : vector<16x16xf32>, vector<16x8xf32>, vector<16x8xf32> -> vector<16x8xf32>
    %247 = vector.extract_strided_slice %174 {offsets = [24, 0], sizes = [8, 32], strides = [1, 1]} : vector<32x32xf32> to vector<8x32xf32>
    %cst_109 = arith.constant dense<0.000000e+00> : vector<16x32xf32>
    %248 = tpu.matmul %246, %247, %cst_109 {dimension_numbers = #tpu.dot_dimension_numbers<[1], [0], [0], [1], [0, 0, 1, 1], [], []>} : vector<16x8xf32>, vector<8x32xf32>, vector<16x32xf32> -> vector<16x32xf32>
    %249 = arith.addf %231, %248 : vector<16x32xf32>
    %250 = vector.broadcast %176 : vector<1x32xf32> to vector<16x32xf32>
    %251 = arith.addf %249, %250 : vector<16x32xf32>
    %252 = arith.addf %162, %251 : vector<16x32xf32>
    %c1_110 = arith.constant 1 : index
    %c0_111 = arith.constant 0 : index
    %c0_112 = arith.constant 0 : index
    %253 = vector.load %arg9[%c1_110, %c0_111, %c0_112] : memref<2x1x32xf32, #tpu.memory_space<vmem>>, vector<1x1x32xf32>
    %254 = vector.shape_cast %253 : vector<1x1x32xf32> to vector<1x32xf32>
    %c1_113 = arith.constant 1 : index
    %c0_114 = arith.constant 0 : index
    %c0_115 = arith.constant 0 : index
    %255 = vector.load %arg10[%c1_113, %c0_114, %c0_115] : memref<2x1x32xf32, #tpu.memory_space<vmem>>, vector<1x1x32xf32>
    %256 = vector.shape_cast %255 : vector<1x1x32xf32> to vector<1x32xf32>
    %cst_116 = arith.constant dense<0.000000e+00> : vector<16xf32>
    %257 = vector.multi_reduction <add>, %252, %cst_116 [1] : vector<16x32xf32> to vector<16xf32>
    %258 = vector.shape_cast %257 : vector<16xf32> to vector<16x1xf32>
    %cst_117 = arith.constant 3.200000e+01 : f32
    %259 = vector.broadcast %cst_117 : f32 to vector<16x1xf32>
    %260 = arith.divf %258, %259 : vector<16x1xf32>
    %261 = vector.broadcast %260 : vector<16x1xf32> to vector<16x32xf32>
    %262 = arith.subf %252, %261 : vector<16x32xf32>
    %263 = arith.mulf %262, %262 : vector<16x32xf32>
    %cst_118 = arith.constant dense<0.000000e+00> : vector<16xf32>
    %264 = vector.multi_reduction <add>, %263, %cst_118 [1] : vector<16x32xf32> to vector<16xf32>
    %265 = vector.shape_cast %264 : vector<16xf32> to vector<16x1xf32>
    %cst_119 = arith.constant 3.200000e+01 : f32
    %266 = vector.broadcast %cst_119 : f32 to vector<16x1xf32>
    %267 = arith.divf %265, %266 : vector<16x1xf32>
    %268 = vector.broadcast %260 : vector<16x1xf32> to vector<16x32xf32>
    %269 = arith.subf %252, %268 : vector<16x32xf32>
    %cst_120 = arith.constant 9.99999974E-6 : f32
    %270 = vector.broadcast %cst_120 : f32 to vector<16x1xf32>
    %271 = arith.addf %267, %270 : vector<16x1xf32>
    %272 = math.rsqrt %271 : vector<16x1xf32>
    %273 = vector.broadcast %272 : vector<16x1xf32> to vector<16x32xf32>
    %274 = arith.mulf %269, %273 : vector<16x32xf32>
    %275 = vector.broadcast %254 : vector<1x32xf32> to vector<16x32xf32>
    %276 = arith.mulf %274, %275 : vector<16x32xf32>
    %277 = vector.broadcast %256 : vector<1x32xf32> to vector<16x32xf32>
    %278 = arith.addf %276, %277 : vector<16x32xf32>
    %c1_121 = arith.constant 1 : index
    %c0_122 = arith.constant 0 : index
    %c0_123 = arith.constant 0 : index
    %279 = vector.load %arg11[%c1_121, %c0_122, %c0_123] : memref<2x32x64xf32, #tpu.memory_space<vmem>>, vector<1x32x64xf32>
    %280 = vector.shape_cast %279 : vector<1x32x64xf32> to vector<32x64xf32>
    %c1_124 = arith.constant 1 : index
    %c0_125 = arith.constant 0 : index
    %c0_126 = arith.constant 0 : index
    %281 = vector.load %arg12[%c1_124, %c0_125, %c0_126] : memref<2x1x64xf32, #tpu.memory_space<vmem>>, vector<1x1x64xf32>
    %282 = vector.shape_cast %281 : vector<1x1x64xf32> to vector<1x64xf32>
    %cst_127 = arith.constant dense<0.000000e+00> : vector<16x64xf32>
    %283 = tpu.matmul %278, %280, %cst_127 {dimension_numbers = #tpu.dot_dimension_numbers<[1], [0], [0], [1], [0, 0, 1, 1], [], []>} : vector<16x32xf32>, vector<32x64xf32>, vector<16x64xf32> -> vector<16x64xf32>
    %284 = vector.broadcast %282 : vector<1x64xf32> to vector<16x64xf32>
    %285 = arith.addf %283, %284 : vector<16x64xf32>
    %cst_128 = arith.constant 0.000000e+00 : f32
    %286 = vector.broadcast %cst_128 : f32 to vector<16x64xf32>
    %287 = arith.maximumf %285, %286 : vector<16x64xf32>
    %c1_129 = arith.constant 1 : index
    %c0_130 = arith.constant 0 : index
    %c0_131 = arith.constant 0 : index
    %288 = vector.load %arg13[%c1_129, %c0_130, %c0_131] : memref<2x64x32xf32, #tpu.memory_space<vmem>>, vector<1x64x32xf32>
    %289 = vector.shape_cast %288 : vector<1x64x32xf32> to vector<64x32xf32>
    %c1_132 = arith.constant 1 : index
    %c0_133 = arith.constant 0 : index
    %c0_134 = arith.constant 0 : index
    %290 = vector.load %arg14[%c1_132, %c0_133, %c0_134] : memref<2x1x32xf32, #tpu.memory_space<vmem>>, vector<1x1x32xf32>
    %291 = vector.shape_cast %290 : vector<1x1x32xf32> to vector<1x32xf32>
    %cst_135 = arith.constant dense<0.000000e+00> : vector<16x32xf32>
    %292 = tpu.matmul %287, %289, %cst_135 {dimension_numbers = #tpu.dot_dimension_numbers<[1], [0], [0], [1], [0, 0, 1, 1], [], []>} : vector<16x64xf32>, vector<64x32xf32>, vector<16x32xf32> -> vector<16x32xf32>
    %293 = vector.broadcast %291 : vector<1x32xf32> to vector<16x32xf32>
    %294 = arith.addf %292, %293 : vector<16x32xf32>
    %295 = arith.addf %278, %294 : vector<16x32xf32>
    %c1_136 = arith.constant 1 : index
    %c0_137 = arith.constant 0 : index
    %c0_138 = arith.constant 0 : index
    %296 = vector.load %arg15[%c1_136, %c0_137, %c0_138] : memref<2x1x32xf32, #tpu.memory_space<vmem>>, vector<1x1x32xf32>
    %297 = vector.shape_cast %296 : vector<1x1x32xf32> to vector<1x32xf32>
    %c1_139 = arith.constant 1 : index
    %c0_140 = arith.constant 0 : index
    %c0_141 = arith.constant 0 : index
    %298 = vector.load %arg16[%c1_139, %c0_140, %c0_141] : memref<2x1x32xf32, #tpu.memory_space<vmem>>, vector<1x1x32xf32>
    %299 = vector.shape_cast %298 : vector<1x1x32xf32> to vector<1x32xf32>
    %cst_142 = arith.constant dense<0.000000e+00> : vector<16xf32>
    %300 = vector.multi_reduction <add>, %295, %cst_142 [1] : vector<16x32xf32> to vector<16xf32>
    %301 = vector.shape_cast %300 : vector<16xf32> to vector<16x1xf32>
    %cst_143 = arith.constant 3.200000e+01 : f32
    %302 = vector.broadcast %cst_143 : f32 to vector<16x1xf32>
    %303 = arith.divf %301, %302 : vector<16x1xf32>
    %304 = vector.broadcast %303 : vector<16x1xf32> to vector<16x32xf32>
    %305 = arith.subf %295, %304 : vector<16x32xf32>
    %306 = arith.mulf %305, %305 : vector<16x32xf32>
    %cst_144 = arith.constant dense<0.000000e+00> : vector<16xf32>
    %307 = vector.multi_reduction <add>, %306, %cst_144 [1] : vector<16x32xf32> to vector<16xf32>
    %308 = vector.shape_cast %307 : vector<16xf32> to vector<16x1xf32>
    %cst_145 = arith.constant 3.200000e+01 : f32
    %309 = vector.broadcast %cst_145 : f32 to vector<16x1xf32>
    %310 = arith.divf %308, %309 : vector<16x1xf32>
    %311 = vector.broadcast %303 : vector<16x1xf32> to vector<16x32xf32>
    %312 = arith.subf %295, %311 : vector<16x32xf32>
    %cst_146 = arith.constant 9.99999974E-6 : f32
    %313 = vector.broadcast %cst_146 : f32 to vector<16x1xf32>
    %314 = arith.addf %310, %313 : vector<16x1xf32>
    %315 = math.rsqrt %314 : vector<16x1xf32>
    %316 = vector.broadcast %315 : vector<16x1xf32> to vector<16x32xf32>
    %317 = arith.mulf %312, %316 : vector<16x32xf32>
    %318 = vector.broadcast %297 : vector<1x32xf32> to vector<16x32xf32>
    %319 = arith.mulf %317, %318 : vector<16x32xf32>
    %320 = vector.broadcast %299 : vector<1x32xf32> to vector<16x32xf32>
    %321 = arith.addf %319, %320 : vector<16x32xf32>
    %c0_147 = arith.constant 0 : index
    %c0_148 = arith.constant 0 : index
    %322 = vector.load %arg1[%c0_147, %c0_148] : memref<16x32xf32, #tpu.memory_space<vmem>>, vector<16x32xf32>
    %c0_149 = arith.constant 0 : index
    %c0_150 = arith.constant 0 : index
    %c0_151 = arith.constant 0 : index
    %323 = vector.load %arg17[%c0_149, %c0_150, %c0_151] : memref<2x32x96xf32, #tpu.memory_space<vmem>>, vector<1x32x96xf32>
    %324 = vector.shape_cast %323 : vector<1x32x96xf32> to vector<32x96xf32>
    %c0_152 = arith.constant 0 : index
    %c0_153 = arith.constant 0 : index
    %c0_154 = arith.constant 0 : index
    %325 = vector.load %arg18[%c0_152, %c0_153, %c0_154] : memref<2x1x96xf32, #tpu.memory_space<vmem>>, vector<1x1x96xf32>
    %326 = vector.shape_cast %325 : vector<1x1x96xf32> to vector<1x96xf32>
    %cst_155 = arith.constant dense<0.000000e+00> : vector<16x96xf32>
    %327 = tpu.matmul %322, %324, %cst_155 {dimension_numbers = #tpu.dot_dimension_numbers<[1], [0], [0], [1], [0, 0, 1, 1], [], []>} : vector<16x32xf32>, vector<32x96xf32>, vector<16x96xf32> -> vector<16x96xf32>
    %328 = vector.broadcast %326 : vector<1x96xf32> to vector<16x96xf32>
    %329 = arith.addf %327, %328 : vector<16x96xf32>
    %330 = vector.extract_strided_slice %329 {offsets = [0, 0], sizes = [16, 32], strides = [1, 1]} : vector<16x96xf32> to vector<16x32xf32>
    %331 = vector.extract_strided_slice %329 {offsets = [0, 32], sizes = [16, 32], strides = [1, 1]} : vector<16x96xf32> to vector<16x32xf32>
    %332 = vector.extract_strided_slice %329 {offsets = [0, 64], sizes = [16, 32], strides = [1, 1]} : vector<16x96xf32> to vector<16x32xf32>
    %c0_156 = arith.constant 0 : index
    %c0_157 = arith.constant 0 : index
    %c0_158 = arith.constant 0 : index
    %333 = vector.load %arg19[%c0_156, %c0_157, %c0_158] : memref<2x32x32xf32, #tpu.memory_space<vmem>>, vector<1x32x32xf32>
    %334 = vector.shape_cast %333 : vector<1x32x32xf32> to vector<32x32xf32>
    %c0_159 = arith.constant 0 : index
    %c0_160 = arith.constant 0 : index
    %c0_161 = arith.constant 0 : index
    %335 = vector.load %arg20[%c0_159, %c0_160, %c0_161] : memref<2x1x32xf32, #tpu.memory_space<vmem>>, vector<1x1x32xf32>
    %336 = vector.shape_cast %335 : vector<1x1x32xf32> to vector<1x32xf32>
    %cst_162 = arith.constant 0.353553385 : f32
    %337 = vector.broadcast %cst_162 : f32 to vector<16x32xf32>
    %338 = arith.mulf %330, %337 : vector<16x32xf32>
    %339 = vector.extract_strided_slice %338 {offsets = [0, 0], sizes = [16, 8], strides = [1, 1]} : vector<16x32xf32> to vector<16x8xf32>
    %340 = vector.extract_strided_slice %331 {offsets = [0, 0], sizes = [16, 8], strides = [1, 1]} : vector<16x32xf32> to vector<16x8xf32>
    %cst_163 = arith.constant dense<0.000000e+00> : vector<16x16xf32>
    %341 = tpu.matmul %339, %340, %cst_163 {dimension_numbers = #tpu.dot_dimension_numbers<[1], [1], [0], [0], [0, 0, 1, 0], [], []>} : vector<16x8xf32>, vector<16x8xf32>, vector<16x16xf32> -> vector<16x16xf32>
    %342 = arith.addf %341, %1 : vector<16x16xf32>
    %cst_164 = arith.constant dense<0xFF800000> : vector<16xf32>
    %343 = vector.multi_reduction <maximumf>, %342, %cst_164 [1] : vector<16x16xf32> to vector<16xf32>
    %344 = vector.shape_cast %343 : vector<16xf32> to vector<16x1xf32>
    %345 = vector.broadcast %344 : vector<16x1xf32> to vector<16x16xf32>
    %346 = arith.subf %342, %345 : vector<16x16xf32>
    %347 = math.exp %346 : vector<16x16xf32>
    %cst_165 = arith.constant dense<0.000000e+00> : vector<16xf32>
    %348 = vector.multi_reduction <add>, %347, %cst_165 [1] : vector<16x16xf32> to vector<16xf32>
    %349 = vector.shape_cast %348 : vector<16xf32> to vector<16x1xf32>
    %350 = vector.broadcast %349 : vector<16x1xf32> to vector<16x16xf32>
    %351 = arith.divf %347, %350 : vector<16x16xf32>
    %352 = vector.extract_strided_slice %332 {offsets = [0, 0], sizes = [16, 8], strides = [1, 1]} : vector<16x32xf32> to vector<16x8xf32>
    %cst_166 = arith.constant dense<0.000000e+00> : vector<16x8xf32>
    %353 = tpu.matmul %351, %352, %cst_166 {dimension_numbers = #tpu.dot_dimension_numbers<[1], [0], [0], [1], [0, 0, 1, 1], [], []>} : vector<16x16xf32>, vector<16x8xf32>, vector<16x8xf32> -> vector<16x8xf32>
    %354 = vector.extract_strided_slice %334 {offsets = [0, 0], sizes = [8, 32], strides = [1, 1]} : vector<32x32xf32> to vector<8x32xf32>
    %cst_167 = arith.constant dense<0.000000e+00> : vector<16x32xf32>
    %355 = tpu.matmul %353, %354, %cst_167 {dimension_numbers = #tpu.dot_dimension_numbers<[1], [0], [0], [1], [0, 0, 1, 1], [], []>} : vector<16x8xf32>, vector<8x32xf32>, vector<16x32xf32> -> vector<16x32xf32>
    %356 = vector.extract_strided_slice %338 {offsets = [0, 8], sizes = [16, 8], strides = [1, 1]} : vector<16x32xf32> to vector<16x8xf32>
    %357 = vector.extract_strided_slice %331 {offsets = [0, 8], sizes = [16, 8], strides = [1, 1]} : vector<16x32xf32> to vector<16x8xf32>
    %cst_168 = arith.constant dense<0.000000e+00> : vector<16x16xf32>
    %358 = tpu.matmul %356, %357, %cst_168 {dimension_numbers = #tpu.dot_dimension_numbers<[1], [1], [0], [0], [0, 0, 1, 0], [], []>} : vector<16x8xf32>, vector<16x8xf32>, vector<16x16xf32> -> vector<16x16xf32>
    %359 = arith.addf %358, %1 : vector<16x16xf32>
    %cst_169 = arith.constant dense<0xFF800000> : vector<16xf32>
    %360 = vector.multi_reduction <maximumf>, %359, %cst_169 [1] : vector<16x16xf32> to vector<16xf32>
    %361 = vector.shape_cast %360 : vector<16xf32> to vector<16x1xf32>
    %362 = vector.broadcast %361 : vector<16x1xf32> to vector<16x16xf32>
    %363 = arith.subf %359, %362 : vector<16x16xf32>
    %364 = math.exp %363 : vector<16x16xf32>
    %cst_170 = arith.constant dense<0.000000e+00> : vector<16xf32>
    %365 = vector.multi_reduction <add>, %364, %cst_170 [1] : vector<16x16xf32> to vector<16xf32>
    %366 = vector.shape_cast %365 : vector<16xf32> to vector<16x1xf32>
    %367 = vector.broadcast %366 : vector<16x1xf32> to vector<16x16xf32>
    %368 = arith.divf %364, %367 : vector<16x16xf32>
    %369 = vector.extract_strided_slice %332 {offsets = [0, 8], sizes = [16, 8], strides = [1, 1]} : vector<16x32xf32> to vector<16x8xf32>
    %cst_171 = arith.constant dense<0.000000e+00> : vector<16x8xf32>
    %370 = tpu.matmul %368, %369, %cst_171 {dimension_numbers = #tpu.dot_dimension_numbers<[1], [0], [0], [1], [0, 0, 1, 1], [], []>} : vector<16x16xf32>, vector<16x8xf32>, vector<16x8xf32> -> vector<16x8xf32>
    %371 = vector.extract_strided_slice %334 {offsets = [8, 0], sizes = [8, 32], strides = [1, 1]} : vector<32x32xf32> to vector<8x32xf32>
    %cst_172 = arith.constant dense<0.000000e+00> : vector<16x32xf32>
    %372 = tpu.matmul %370, %371, %cst_172 {dimension_numbers = #tpu.dot_dimension_numbers<[1], [0], [0], [1], [0, 0, 1, 1], [], []>} : vector<16x8xf32>, vector<8x32xf32>, vector<16x32xf32> -> vector<16x32xf32>
    %373 = arith.addf %355, %372 : vector<16x32xf32>
    %374 = vector.extract_strided_slice %338 {offsets = [0, 16], sizes = [16, 8], strides = [1, 1]} : vector<16x32xf32> to vector<16x8xf32>
    %375 = vector.extract_strided_slice %331 {offsets = [0, 16], sizes = [16, 8], strides = [1, 1]} : vector<16x32xf32> to vector<16x8xf32>
    %cst_173 = arith.constant dense<0.000000e+00> : vector<16x16xf32>
    %376 = tpu.matmul %374, %375, %cst_173 {dimension_numbers = #tpu.dot_dimension_numbers<[1], [1], [0], [0], [0, 0, 1, 0], [], []>} : vector<16x8xf32>, vector<16x8xf32>, vector<16x16xf32> -> vector<16x16xf32>
    %377 = arith.addf %376, %1 : vector<16x16xf32>
    %cst_174 = arith.constant dense<0xFF800000> : vector<16xf32>
    %378 = vector.multi_reduction <maximumf>, %377, %cst_174 [1] : vector<16x16xf32> to vector<16xf32>
    %379 = vector.shape_cast %378 : vector<16xf32> to vector<16x1xf32>
    %380 = vector.broadcast %379 : vector<16x1xf32> to vector<16x16xf32>
    %381 = arith.subf %377, %380 : vector<16x16xf32>
    %382 = math.exp %381 : vector<16x16xf32>
    %cst_175 = arith.constant dense<0.000000e+00> : vector<16xf32>
    %383 = vector.multi_reduction <add>, %382, %cst_175 [1] : vector<16x16xf32> to vector<16xf32>
    %384 = vector.shape_cast %383 : vector<16xf32> to vector<16x1xf32>
    %385 = vector.broadcast %384 : vector<16x1xf32> to vector<16x16xf32>
    %386 = arith.divf %382, %385 : vector<16x16xf32>
    %387 = vector.extract_strided_slice %332 {offsets = [0, 16], sizes = [16, 8], strides = [1, 1]} : vector<16x32xf32> to vector<16x8xf32>
    %cst_176 = arith.constant dense<0.000000e+00> : vector<16x8xf32>
    %388 = tpu.matmul %386, %387, %cst_176 {dimension_numbers = #tpu.dot_dimension_numbers<[1], [0], [0], [1], [0, 0, 1, 1], [], []>} : vector<16x16xf32>, vector<16x8xf32>, vector<16x8xf32> -> vector<16x8xf32>
    %389 = vector.extract_strided_slice %334 {offsets = [16, 0], sizes = [8, 32], strides = [1, 1]} : vector<32x32xf32> to vector<8x32xf32>
    %cst_177 = arith.constant dense<0.000000e+00> : vector<16x32xf32>
    %390 = tpu.matmul %388, %389, %cst_177 {dimension_numbers = #tpu.dot_dimension_numbers<[1], [0], [0], [1], [0, 0, 1, 1], [], []>} : vector<16x8xf32>, vector<8x32xf32>, vector<16x32xf32> -> vector<16x32xf32>
    %391 = arith.addf %373, %390 : vector<16x32xf32>
    %392 = vector.extract_strided_slice %338 {offsets = [0, 24], sizes = [16, 8], strides = [1, 1]} : vector<16x32xf32> to vector<16x8xf32>
    %393 = vector.extract_strided_slice %331 {offsets = [0, 24], sizes = [16, 8], strides = [1, 1]} : vector<16x32xf32> to vector<16x8xf32>
    %cst_178 = arith.constant dense<0.000000e+00> : vector<16x16xf32>
    %394 = tpu.matmul %392, %393, %cst_178 {dimension_numbers = #tpu.dot_dimension_numbers<[1], [1], [0], [0], [0, 0, 1, 0], [], []>} : vector<16x8xf32>, vector<16x8xf32>, vector<16x16xf32> -> vector<16x16xf32>
    %395 = arith.addf %394, %1 : vector<16x16xf32>
    %cst_179 = arith.constant dense<0xFF800000> : vector<16xf32>
    %396 = vector.multi_reduction <maximumf>, %395, %cst_179 [1] : vector<16x16xf32> to vector<16xf32>
    %397 = vector.shape_cast %396 : vector<16xf32> to vector<16x1xf32>
    %398 = vector.broadcast %397 : vector<16x1xf32> to vector<16x16xf32>
    %399 = arith.subf %395, %398 : vector<16x16xf32>
    %400 = math.exp %399 : vector<16x16xf32>
    %cst_180 = arith.constant dense<0.000000e+00> : vector<16xf32>
    %401 = vector.multi_reduction <add>, %400, %cst_180 [1] : vector<16x16xf32> to vector<16xf32>
    %402 = vector.shape_cast %401 : vector<16xf32> to vector<16x1xf32>
    %403 = vector.broadcast %402 : vector<16x1xf32> to vector<16x16xf32>
    %404 = arith.divf %400, %403 : vector<16x16xf32>
    %405 = vector.extract_strided_slice %332 {offsets = [0, 24], sizes = [16, 8], strides = [1, 1]} : vector<16x32xf32> to vector<16x8xf32>
    %cst_181 = arith.constant dense<0.000000e+00> : vector<16x8xf32>
    %406 = tpu.matmul %404, %405, %cst_181 {dimension_numbers = #tpu.dot_dimension_numbers<[1], [0], [0], [1], [0, 0, 1, 1], [], []>} : vector<16x16xf32>, vector<16x8xf32>, vector<16x8xf32> -> vector<16x8xf32>
    %407 = vector.extract_strided_slice %334 {offsets = [24, 0], sizes = [8, 32], strides = [1, 1]} : vector<32x32xf32> to vector<8x32xf32>
    %cst_182 = arith.constant dense<0.000000e+00> : vector<16x32xf32>
    %408 = tpu.matmul %406, %407, %cst_182 {dimension_numbers = #tpu.dot_dimension_numbers<[1], [0], [0], [1], [0, 0, 1, 1], [], []>} : vector<16x8xf32>, vector<8x32xf32>, vector<16x32xf32> -> vector<16x32xf32>
    %409 = arith.addf %391, %408 : vector<16x32xf32>
    %410 = vector.broadcast %336 : vector<1x32xf32> to vector<16x32xf32>
    %411 = arith.addf %409, %410 : vector<16x32xf32>
    %412 = arith.addf %322, %411 : vector<16x32xf32>
    %c0_183 = arith.constant 0 : index
    %c0_184 = arith.constant 0 : index
    %c0_185 = arith.constant 0 : index
    %413 = vector.load %arg31[%c0_183, %c0_184, %c0_185] : memref<2x1x32xf32, #tpu.memory_space<vmem>>, vector<1x1x32xf32>
    %414 = vector.shape_cast %413 : vector<1x1x32xf32> to vector<1x32xf32>
    %c0_186 = arith.constant 0 : index
    %c0_187 = arith.constant 0 : index
    %c0_188 = arith.constant 0 : index
    %415 = vector.load %arg32[%c0_186, %c0_187, %c0_188] : memref<2x1x32xf32, #tpu.memory_space<vmem>>, vector<1x1x32xf32>
    %416 = vector.shape_cast %415 : vector<1x1x32xf32> to vector<1x32xf32>
    %cst_189 = arith.constant dense<0.000000e+00> : vector<16xf32>
    %417 = vector.multi_reduction <add>, %412, %cst_189 [1] : vector<16x32xf32> to vector<16xf32>
    %418 = vector.shape_cast %417 : vector<16xf32> to vector<16x1xf32>
    %cst_190 = arith.constant 3.200000e+01 : f32
    %419 = vector.broadcast %cst_190 : f32 to vector<16x1xf32>
    %420 = arith.divf %418, %419 : vector<16x1xf32>
    %421 = vector.broadcast %420 : vector<16x1xf32> to vector<16x32xf32>
    %422 = arith.subf %412, %421 : vector<16x32xf32>
    %423 = arith.mulf %422, %422 : vector<16x32xf32>
    %cst_191 = arith.constant dense<0.000000e+00> : vector<16xf32>
    %424 = vector.multi_reduction <add>, %423, %cst_191 [1] : vector<16x32xf32> to vector<16xf32>
    %425 = vector.shape_cast %424 : vector<16xf32> to vector<16x1xf32>
    %cst_192 = arith.constant 3.200000e+01 : f32
    %426 = vector.broadcast %cst_192 : f32 to vector<16x1xf32>
    %427 = arith.divf %425, %426 : vector<16x1xf32>
    %428 = vector.broadcast %420 : vector<16x1xf32> to vector<16x32xf32>
    %429 = arith.subf %412, %428 : vector<16x32xf32>
    %cst_193 = arith.constant 9.99999974E-6 : f32
    %430 = vector.broadcast %cst_193 : f32 to vector<16x1xf32>
    %431 = arith.addf %427, %430 : vector<16x1xf32>
    %432 = math.rsqrt %431 : vector<16x1xf32>
    %433 = vector.broadcast %432 : vector<16x1xf32> to vector<16x32xf32>
    %434 = arith.mulf %429, %433 : vector<16x32xf32>
    %435 = vector.broadcast %414 : vector<1x32xf32> to vector<16x32xf32>
    %436 = arith.mulf %434, %435 : vector<16x32xf32>
    %437 = vector.broadcast %416 : vector<1x32xf32> to vector<16x32xf32>
    %438 = arith.addf %436, %437 : vector<16x32xf32>
    %c0_194 = arith.constant 0 : index
    %c0_195 = arith.constant 0 : index
    %c0_196 = arith.constant 0 : index
    %439 = vector.load %arg21[%c0_194, %c0_195, %c0_196] : memref<2x32x32xf32, #tpu.memory_space<vmem>>, vector<1x32x32xf32>
    %440 = vector.shape_cast %439 : vector<1x32x32xf32> to vector<32x32xf32>
    %c0_197 = arith.constant 0 : index
    %c0_198 = arith.constant 0 : index
    %c0_199 = arith.constant 0 : index
    %441 = vector.load %arg22[%c0_197, %c0_198, %c0_199] : memref<2x1x32xf32, #tpu.memory_space<vmem>>, vector<1x1x32xf32>
    %442 = vector.shape_cast %441 : vector<1x1x32xf32> to vector<1x32xf32>
    %cst_200 = arith.constant dense<0.000000e+00> : vector<16x32xf32>
    %443 = tpu.matmul %438, %440, %cst_200 {dimension_numbers = #tpu.dot_dimension_numbers<[1], [0], [0], [1], [0, 0, 1, 1], [], []>} : vector<16x32xf32>, vector<32x32xf32>, vector<16x32xf32> -> vector<16x32xf32>
    %444 = vector.broadcast %442 : vector<1x32xf32> to vector<16x32xf32>
    %445 = arith.addf %443, %444 : vector<16x32xf32>
    %c0_201 = arith.constant 0 : index
    %c0_202 = arith.constant 0 : index
    %c0_203 = arith.constant 0 : index
    %446 = vector.load %arg23[%c0_201, %c0_202, %c0_203] : memref<2x32x64xf32, #tpu.memory_space<vmem>>, vector<1x32x64xf32>
    %447 = vector.shape_cast %446 : vector<1x32x64xf32> to vector<32x64xf32>
    %c0_204 = arith.constant 0 : index
    %c0_205 = arith.constant 0 : index
    %c0_206 = arith.constant 0 : index
    %448 = vector.load %arg24[%c0_204, %c0_205, %c0_206] : memref<2x1x64xf32, #tpu.memory_space<vmem>>, vector<1x1x64xf32>
    %449 = vector.shape_cast %448 : vector<1x1x64xf32> to vector<1x64xf32>
    %cst_207 = arith.constant dense<0.000000e+00> : vector<16x64xf32>
    %450 = tpu.matmul %321, %447, %cst_207 {dimension_numbers = #tpu.dot_dimension_numbers<[1], [0], [0], [1], [0, 0, 1, 1], [], []>} : vector<16x32xf32>, vector<32x64xf32>, vector<16x64xf32> -> vector<16x64xf32>
    %451 = vector.broadcast %449 : vector<1x64xf32> to vector<16x64xf32>
    %452 = arith.addf %450, %451 : vector<16x64xf32>
    %453 = vector.extract_strided_slice %452 {offsets = [0, 0], sizes = [16, 32], strides = [1, 1]} : vector<16x64xf32> to vector<16x32xf32>
    %454 = vector.extract_strided_slice %452 {offsets = [0, 32], sizes = [16, 32], strides = [1, 1]} : vector<16x64xf32> to vector<16x32xf32>
    %c0_208 = arith.constant 0 : index
    %c0_209 = arith.constant 0 : index
    %c0_210 = arith.constant 0 : index
    %455 = vector.load %arg25[%c0_208, %c0_209, %c0_210] : memref<2x32x32xf32, #tpu.memory_space<vmem>>, vector<1x32x32xf32>
    %456 = vector.shape_cast %455 : vector<1x32x32xf32> to vector<32x32xf32>
    %c0_211 = arith.constant 0 : index
    %c0_212 = arith.constant 0 : index
    %c0_213 = arith.constant 0 : index
    %457 = vector.load %arg26[%c0_211, %c0_212, %c0_213] : memref<2x1x32xf32, #tpu.memory_space<vmem>>, vector<1x1x32xf32>
    %458 = vector.shape_cast %457 : vector<1x1x32xf32> to vector<1x32xf32>
    %cst_214 = arith.constant 0.353553385 : f32
    %459 = vector.broadcast %cst_214 : f32 to vector<16x32xf32>
    %460 = arith.mulf %445, %459 : vector<16x32xf32>
    %461 = vector.extract_strided_slice %460 {offsets = [0, 0], sizes = [16, 8], strides = [1, 1]} : vector<16x32xf32> to vector<16x8xf32>
    %462 = vector.extract_strided_slice %453 {offsets = [0, 0], sizes = [16, 8], strides = [1, 1]} : vector<16x32xf32> to vector<16x8xf32>
    %cst_215 = arith.constant dense<0.000000e+00> : vector<16x16xf32>
    %463 = tpu.matmul %461, %462, %cst_215 {dimension_numbers = #tpu.dot_dimension_numbers<[1], [1], [0], [0], [0, 0, 1, 0], [], []>} : vector<16x8xf32>, vector<16x8xf32>, vector<16x16xf32> -> vector<16x16xf32>
    %464 = arith.addf %463, %2 : vector<16x16xf32>
    %cst_216 = arith.constant dense<0xFF800000> : vector<16xf32>
    %465 = vector.multi_reduction <maximumf>, %464, %cst_216 [1] : vector<16x16xf32> to vector<16xf32>
    %466 = vector.shape_cast %465 : vector<16xf32> to vector<16x1xf32>
    %467 = vector.broadcast %466 : vector<16x1xf32> to vector<16x16xf32>
    %468 = arith.subf %464, %467 : vector<16x16xf32>
    %469 = math.exp %468 : vector<16x16xf32>
    %cst_217 = arith.constant dense<0.000000e+00> : vector<16xf32>
    %470 = vector.multi_reduction <add>, %469, %cst_217 [1] : vector<16x16xf32> to vector<16xf32>
    %471 = vector.shape_cast %470 : vector<16xf32> to vector<16x1xf32>
    %472 = vector.broadcast %471 : vector<16x1xf32> to vector<16x16xf32>
    %473 = arith.divf %469, %472 : vector<16x16xf32>
    %474 = vector.extract_strided_slice %454 {offsets = [0, 0], sizes = [16, 8], strides = [1, 1]} : vector<16x32xf32> to vector<16x8xf32>
    %cst_218 = arith.constant dense<0.000000e+00> : vector<16x8xf32>
    %475 = tpu.matmul %473, %474, %cst_218 {dimension_numbers = #tpu.dot_dimension_numbers<[1], [0], [0], [1], [0, 0, 1, 1], [], []>} : vector<16x16xf32>, vector<16x8xf32>, vector<16x8xf32> -> vector<16x8xf32>
    %476 = vector.extract_strided_slice %456 {offsets = [0, 0], sizes = [8, 32], strides = [1, 1]} : vector<32x32xf32> to vector<8x32xf32>
    %cst_219 = arith.constant dense<0.000000e+00> : vector<16x32xf32>
    %477 = tpu.matmul %475, %476, %cst_219 {dimension_numbers = #tpu.dot_dimension_numbers<[1], [0], [0], [1], [0, 0, 1, 1], [], []>} : vector<16x8xf32>, vector<8x32xf32>, vector<16x32xf32> -> vector<16x32xf32>
    %478 = vector.extract_strided_slice %460 {offsets = [0, 8], sizes = [16, 8], strides = [1, 1]} : vector<16x32xf32> to vector<16x8xf32>
    %479 = vector.extract_strided_slice %453 {offsets = [0, 8], sizes = [16, 8], strides = [1, 1]} : vector<16x32xf32> to vector<16x8xf32>
    %cst_220 = arith.constant dense<0.000000e+00> : vector<16x16xf32>
    %480 = tpu.matmul %478, %479, %cst_220 {dimension_numbers = #tpu.dot_dimension_numbers<[1], [1], [0], [0], [0, 0, 1, 0], [], []>} : vector<16x8xf32>, vector<16x8xf32>, vector<16x16xf32> -> vector<16x16xf32>
    %481 = arith.addf %480, %2 : vector<16x16xf32>
    %cst_221 = arith.constant dense<0xFF800000> : vector<16xf32>
    %482 = vector.multi_reduction <maximumf>, %481, %cst_221 [1] : vector<16x16xf32> to vector<16xf32>
    %483 = vector.shape_cast %482 : vector<16xf32> to vector<16x1xf32>
    %484 = vector.broadcast %483 : vector<16x1xf32> to vector<16x16xf32>
    %485 = arith.subf %481, %484 : vector<16x16xf32>
    %486 = math.exp %485 : vector<16x16xf32>
    %cst_222 = arith.constant dense<0.000000e+00> : vector<16xf32>
    %487 = vector.multi_reduction <add>, %486, %cst_222 [1] : vector<16x16xf32> to vector<16xf32>
    %488 = vector.shape_cast %487 : vector<16xf32> to vector<16x1xf32>
    %489 = vector.broadcast %488 : vector<16x1xf32> to vector<16x16xf32>
    %490 = arith.divf %486, %489 : vector<16x16xf32>
    %491 = vector.extract_strided_slice %454 {offsets = [0, 8], sizes = [16, 8], strides = [1, 1]} : vector<16x32xf32> to vector<16x8xf32>
    %cst_223 = arith.constant dense<0.000000e+00> : vector<16x8xf32>
    %492 = tpu.matmul %490, %491, %cst_223 {dimension_numbers = #tpu.dot_dimension_numbers<[1], [0], [0], [1], [0, 0, 1, 1], [], []>} : vector<16x16xf32>, vector<16x8xf32>, vector<16x8xf32> -> vector<16x8xf32>
    %493 = vector.extract_strided_slice %456 {offsets = [8, 0], sizes = [8, 32], strides = [1, 1]} : vector<32x32xf32> to vector<8x32xf32>
    %cst_224 = arith.constant dense<0.000000e+00> : vector<16x32xf32>
    %494 = tpu.matmul %492, %493, %cst_224 {dimension_numbers = #tpu.dot_dimension_numbers<[1], [0], [0], [1], [0, 0, 1, 1], [], []>} : vector<16x8xf32>, vector<8x32xf32>, vector<16x32xf32> -> vector<16x32xf32>
    %495 = arith.addf %477, %494 : vector<16x32xf32>
    %496 = vector.extract_strided_slice %460 {offsets = [0, 16], sizes = [16, 8], strides = [1, 1]} : vector<16x32xf32> to vector<16x8xf32>
    %497 = vector.extract_strided_slice %453 {offsets = [0, 16], sizes = [16, 8], strides = [1, 1]} : vector<16x32xf32> to vector<16x8xf32>
    %cst_225 = arith.constant dense<0.000000e+00> : vector<16x16xf32>
    %498 = tpu.matmul %496, %497, %cst_225 {dimension_numbers = #tpu.dot_dimension_numbers<[1], [1], [0], [0], [0, 0, 1, 0], [], []>} : vector<16x8xf32>, vector<16x8xf32>, vector<16x16xf32> -> vector<16x16xf32>
    %499 = arith.addf %498, %2 : vector<16x16xf32>
    %cst_226 = arith.constant dense<0xFF800000> : vector<16xf32>
    %500 = vector.multi_reduction <maximumf>, %499, %cst_226 [1] : vector<16x16xf32> to vector<16xf32>
    %501 = vector.shape_cast %500 : vector<16xf32> to vector<16x1xf32>
    %502 = vector.broadcast %501 : vector<16x1xf32> to vector<16x16xf32>
    %503 = arith.subf %499, %502 : vector<16x16xf32>
    %504 = math.exp %503 : vector<16x16xf32>
    %cst_227 = arith.constant dense<0.000000e+00> : vector<16xf32>
    %505 = vector.multi_reduction <add>, %504, %cst_227 [1] : vector<16x16xf32> to vector<16xf32>
    %506 = vector.shape_cast %505 : vector<16xf32> to vector<16x1xf32>
    %507 = vector.broadcast %506 : vector<16x1xf32> to vector<16x16xf32>
    %508 = arith.divf %504, %507 : vector<16x16xf32>
    %509 = vector.extract_strided_slice %454 {offsets = [0, 16], sizes = [16, 8], strides = [1, 1]} : vector<16x32xf32> to vector<16x8xf32>
    %cst_228 = arith.constant dense<0.000000e+00> : vector<16x8xf32>
    %510 = tpu.matmul %508, %509, %cst_228 {dimension_numbers = #tpu.dot_dimension_numbers<[1], [0], [0], [1], [0, 0, 1, 1], [], []>} : vector<16x16xf32>, vector<16x8xf32>, vector<16x8xf32> -> vector<16x8xf32>
    %511 = vector.extract_strided_slice %456 {offsets = [16, 0], sizes = [8, 32], strides = [1, 1]} : vector<32x32xf32> to vector<8x32xf32>
    %cst_229 = arith.constant dense<0.000000e+00> : vector<16x32xf32>
    %512 = tpu.matmul %510, %511, %cst_229 {dimension_numbers = #tpu.dot_dimension_numbers<[1], [0], [0], [1], [0, 0, 1, 1], [], []>} : vector<16x8xf32>, vector<8x32xf32>, vector<16x32xf32> -> vector<16x32xf32>
    %513 = arith.addf %495, %512 : vector<16x32xf32>
    %514 = vector.extract_strided_slice %460 {offsets = [0, 24], sizes = [16, 8], strides = [1, 1]} : vector<16x32xf32> to vector<16x8xf32>
    %515 = vector.extract_strided_slice %453 {offsets = [0, 24], sizes = [16, 8], strides = [1, 1]} : vector<16x32xf32> to vector<16x8xf32>
    %cst_230 = arith.constant dense<0.000000e+00> : vector<16x16xf32>
    %516 = tpu.matmul %514, %515, %cst_230 {dimension_numbers = #tpu.dot_dimension_numbers<[1], [1], [0], [0], [0, 0, 1, 0], [], []>} : vector<16x8xf32>, vector<16x8xf32>, vector<16x16xf32> -> vector<16x16xf32>
    %517 = arith.addf %516, %2 : vector<16x16xf32>
    %cst_231 = arith.constant dense<0xFF800000> : vector<16xf32>
    %518 = vector.multi_reduction <maximumf>, %517, %cst_231 [1] : vector<16x16xf32> to vector<16xf32>
    %519 = vector.shape_cast %518 : vector<16xf32> to vector<16x1xf32>
    %520 = vector.broadcast %519 : vector<16x1xf32> to vector<16x16xf32>
    %521 = arith.subf %517, %520 : vector<16x16xf32>
    %522 = math.exp %521 : vector<16x16xf32>
    %cst_232 = arith.constant dense<0.000000e+00> : vector<16xf32>
    %523 = vector.multi_reduction <add>, %522, %cst_232 [1] : vector<16x16xf32> to vector<16xf32>
    %524 = vector.shape_cast %523 : vector<16xf32> to vector<16x1xf32>
    %525 = vector.broadcast %524 : vector<16x1xf32> to vector<16x16xf32>
    %526 = arith.divf %522, %525 : vector<16x16xf32>
    %527 = vector.extract_strided_slice %454 {offsets = [0, 24], sizes = [16, 8], strides = [1, 1]} : vector<16x32xf32> to vector<16x8xf32>
    %cst_233 = arith.constant dense<0.000000e+00> : vector<16x8xf32>
    %528 = tpu.matmul %526, %527, %cst_233 {dimension_numbers = #tpu.dot_dimension_numbers<[1], [0], [0], [1], [0, 0, 1, 1], [], []>} : vector<16x16xf32>, vector<16x8xf32>, vector<16x8xf32> -> vector<16x8xf32>
    %529 = vector.extract_strided_slice %456 {offsets = [24, 0], sizes = [8, 32], strides = [1, 1]} : vector<32x32xf32> to vector<8x32xf32>
    %cst_234 = arith.constant dense<0.000000e+00> : vector<16x32xf32>
    %530 = tpu.matmul %528, %529, %cst_234 {dimension_numbers = #tpu.dot_dimension_numbers<[1], [0], [0], [1], [0, 0, 1, 1], [], []>} : vector<16x8xf32>, vector<8x32xf32>, vector<16x32xf32> -> vector<16x32xf32>
    %531 = arith.addf %513, %530 : vector<16x32xf32>
    %532 = vector.broadcast %458 : vector<1x32xf32> to vector<16x32xf32>
    %533 = arith.addf %531, %532 : vector<16x32xf32>
    %534 = arith.addf %438, %533 : vector<16x32xf32>
    %c0_235 = arith.constant 0 : index
    %c0_236 = arith.constant 0 : index
    %c0_237 = arith.constant 0 : index
    %535 = vector.load %arg33[%c0_235, %c0_236, %c0_237] : memref<2x1x32xf32, #tpu.memory_space<vmem>>, vector<1x1x32xf32>
    %536 = vector.shape_cast %535 : vector<1x1x32xf32> to vector<1x32xf32>
    %c0_238 = arith.constant 0 : index
    %c0_239 = arith.constant 0 : index
    %c0_240 = arith.constant 0 : index
    %537 = vector.load %arg34[%c0_238, %c0_239, %c0_240] : memref<2x1x32xf32, #tpu.memory_space<vmem>>, vector<1x1x32xf32>
    %538 = vector.shape_cast %537 : vector<1x1x32xf32> to vector<1x32xf32>
    %cst_241 = arith.constant dense<0.000000e+00> : vector<16xf32>
    %539 = vector.multi_reduction <add>, %534, %cst_241 [1] : vector<16x32xf32> to vector<16xf32>
    %540 = vector.shape_cast %539 : vector<16xf32> to vector<16x1xf32>
    %cst_242 = arith.constant 3.200000e+01 : f32
    %541 = vector.broadcast %cst_242 : f32 to vector<16x1xf32>
    %542 = arith.divf %540, %541 : vector<16x1xf32>
    %543 = vector.broadcast %542 : vector<16x1xf32> to vector<16x32xf32>
    %544 = arith.subf %534, %543 : vector<16x32xf32>
    %545 = arith.mulf %544, %544 : vector<16x32xf32>
    %cst_243 = arith.constant dense<0.000000e+00> : vector<16xf32>
    %546 = vector.multi_reduction <add>, %545, %cst_243 [1] : vector<16x32xf32> to vector<16xf32>
    %547 = vector.shape_cast %546 : vector<16xf32> to vector<16x1xf32>
    %cst_244 = arith.constant 3.200000e+01 : f32
    %548 = vector.broadcast %cst_244 : f32 to vector<16x1xf32>
    %549 = arith.divf %547, %548 : vector<16x1xf32>
    %550 = vector.broadcast %542 : vector<16x1xf32> to vector<16x32xf32>
    %551 = arith.subf %534, %550 : vector<16x32xf32>
    %cst_245 = arith.constant 9.99999974E-6 : f32
    %552 = vector.broadcast %cst_245 : f32 to vector<16x1xf32>
    %553 = arith.addf %549, %552 : vector<16x1xf32>
    %554 = math.rsqrt %553 : vector<16x1xf32>
    %555 = vector.broadcast %554 : vector<16x1xf32> to vector<16x32xf32>
    %556 = arith.mulf %551, %555 : vector<16x32xf32>
    %557 = vector.broadcast %536 : vector<1x32xf32> to vector<16x32xf32>
    %558 = arith.mulf %556, %557 : vector<16x32xf32>
    %559 = vector.broadcast %538 : vector<1x32xf32> to vector<16x32xf32>
    %560 = arith.addf %558, %559 : vector<16x32xf32>
    %c0_246 = arith.constant 0 : index
    %c0_247 = arith.constant 0 : index
    %c0_248 = arith.constant 0 : index
    %561 = vector.load %arg27[%c0_246, %c0_247, %c0_248] : memref<2x32x64xf32, #tpu.memory_space<vmem>>, vector<1x32x64xf32>
    %562 = vector.shape_cast %561 : vector<1x32x64xf32> to vector<32x64xf32>
    %c0_249 = arith.constant 0 : index
    %c0_250 = arith.constant 0 : index
    %c0_251 = arith.constant 0 : index
    %563 = vector.load %arg28[%c0_249, %c0_250, %c0_251] : memref<2x1x64xf32, #tpu.memory_space<vmem>>, vector<1x1x64xf32>
    %564 = vector.shape_cast %563 : vector<1x1x64xf32> to vector<1x64xf32>
    %cst_252 = arith.constant dense<0.000000e+00> : vector<16x64xf32>
    %565 = tpu.matmul %560, %562, %cst_252 {dimension_numbers = #tpu.dot_dimension_numbers<[1], [0], [0], [1], [0, 0, 1, 1], [], []>} : vector<16x32xf32>, vector<32x64xf32>, vector<16x64xf32> -> vector<16x64xf32>
    %566 = vector.broadcast %564 : vector<1x64xf32> to vector<16x64xf32>
    %567 = arith.addf %565, %566 : vector<16x64xf32>
    %cst_253 = arith.constant 0.000000e+00 : f32
    %568 = vector.broadcast %cst_253 : f32 to vector<16x64xf32>
    %569 = arith.maximumf %567, %568 : vector<16x64xf32>
    %c0_254 = arith.constant 0 : index
    %c0_255 = arith.constant 0 : index
    %c0_256 = arith.constant 0 : index
    %570 = vector.load %arg29[%c0_254, %c0_255, %c0_256] : memref<2x64x32xf32, #tpu.memory_space<vmem>>, vector<1x64x32xf32>
    %571 = vector.shape_cast %570 : vector<1x64x32xf32> to vector<64x32xf32>
    %c0_257 = arith.constant 0 : index
    %c0_258 = arith.constant 0 : index
    %c0_259 = arith.constant 0 : index
    %572 = vector.load %arg30[%c0_257, %c0_258, %c0_259] : memref<2x1x32xf32, #tpu.memory_space<vmem>>, vector<1x1x32xf32>
    %573 = vector.shape_cast %572 : vector<1x1x32xf32> to vector<1x32xf32>
    %cst_260 = arith.constant dense<0.000000e+00> : vector<16x32xf32>
    %574 = tpu.matmul %569, %571, %cst_260 {dimension_numbers = #tpu.dot_dimension_numbers<[1], [0], [0], [1], [0, 0, 1, 1], [], []>} : vector<16x64xf32>, vector<64x32xf32>, vector<16x32xf32> -> vector<16x32xf32>
    %575 = vector.broadcast %573 : vector<1x32xf32> to vector<16x32xf32>
    %576 = arith.addf %574, %575 : vector<16x32xf32>
    %577 = arith.addf %560, %576 : vector<16x32xf32>
    %c0_261 = arith.constant 0 : index
    %c0_262 = arith.constant 0 : index
    %c0_263 = arith.constant 0 : index
    %578 = vector.load %arg35[%c0_261, %c0_262, %c0_263] : memref<2x1x32xf32, #tpu.memory_space<vmem>>, vector<1x1x32xf32>
    %579 = vector.shape_cast %578 : vector<1x1x32xf32> to vector<1x32xf32>
    %c0_264 = arith.constant 0 : index
    %c0_265 = arith.constant 0 : index
    %c0_266 = arith.constant 0 : index
    %580 = vector.load %arg36[%c0_264, %c0_265, %c0_266] : memref<2x1x32xf32, #tpu.memory_space<vmem>>, vector<1x1x32xf32>
    %581 = vector.shape_cast %580 : vector<1x1x32xf32> to vector<1x32xf32>
    %cst_267 = arith.constant dense<0.000000e+00> : vector<16xf32>
    %582 = vector.multi_reduction <add>, %577, %cst_267 [1] : vector<16x32xf32> to vector<16xf32>
    %583 = vector.shape_cast %582 : vector<16xf32> to vector<16x1xf32>
    %cst_268 = arith.constant 3.200000e+01 : f32
    %584 = vector.broadcast %cst_268 : f32 to vector<16x1xf32>
    %585 = arith.divf %583, %584 : vector<16x1xf32>
    %586 = vector.broadcast %585 : vector<16x1xf32> to vector<16x32xf32>
    %587 = arith.subf %577, %586 : vector<16x32xf32>
    %588 = arith.mulf %587, %587 : vector<16x32xf32>
    %cst_269 = arith.constant dense<0.000000e+00> : vector<16xf32>
    %589 = vector.multi_reduction <add>, %588, %cst_269 [1] : vector<16x32xf32> to vector<16xf32>
    %590 = vector.shape_cast %589 : vector<16xf32> to vector<16x1xf32>
    %cst_270 = arith.constant 3.200000e+01 : f32
    %591 = vector.broadcast %cst_270 : f32 to vector<16x1xf32>
    %592 = arith.divf %590, %591 : vector<16x1xf32>
    %593 = vector.broadcast %585 : vector<16x1xf32> to vector<16x32xf32>
    %594 = arith.subf %577, %593 : vector<16x32xf32>
    %cst_271 = arith.constant 9.99999974E-6 : f32
    %595 = vector.broadcast %cst_271 : f32 to vector<16x1xf32>
    %596 = arith.addf %592, %595 : vector<16x1xf32>
    %597 = math.rsqrt %596 : vector<16x1xf32>
    %598 = vector.broadcast %597 : vector<16x1xf32> to vector<16x32xf32>
    %599 = arith.mulf %594, %598 : vector<16x32xf32>
    %600 = vector.broadcast %579 : vector<1x32xf32> to vector<16x32xf32>
    %601 = arith.mulf %599, %600 : vector<16x32xf32>
    %602 = vector.broadcast %581 : vector<1x32xf32> to vector<16x32xf32>
    %603 = arith.addf %601, %602 : vector<16x32xf32>
    %c1_272 = arith.constant 1 : index
    %c0_273 = arith.constant 0 : index
    %c0_274 = arith.constant 0 : index
    %604 = vector.load %arg17[%c1_272, %c0_273, %c0_274] : memref<2x32x96xf32, #tpu.memory_space<vmem>>, vector<1x32x96xf32>
    %605 = vector.shape_cast %604 : vector<1x32x96xf32> to vector<32x96xf32>
    %c1_275 = arith.constant 1 : index
    %c0_276 = arith.constant 0 : index
    %c0_277 = arith.constant 0 : index
    %606 = vector.load %arg18[%c1_275, %c0_276, %c0_277] : memref<2x1x96xf32, #tpu.memory_space<vmem>>, vector<1x1x96xf32>
    %607 = vector.shape_cast %606 : vector<1x1x96xf32> to vector<1x96xf32>
    %cst_278 = arith.constant dense<0.000000e+00> : vector<16x96xf32>
    %608 = tpu.matmul %603, %605, %cst_278 {dimension_numbers = #tpu.dot_dimension_numbers<[1], [0], [0], [1], [0, 0, 1, 1], [], []>} : vector<16x32xf32>, vector<32x96xf32>, vector<16x96xf32> -> vector<16x96xf32>
    %609 = vector.broadcast %607 : vector<1x96xf32> to vector<16x96xf32>
    %610 = arith.addf %608, %609 : vector<16x96xf32>
    %611 = vector.extract_strided_slice %610 {offsets = [0, 0], sizes = [16, 32], strides = [1, 1]} : vector<16x96xf32> to vector<16x32xf32>
    %612 = vector.extract_strided_slice %610 {offsets = [0, 32], sizes = [16, 32], strides = [1, 1]} : vector<16x96xf32> to vector<16x32xf32>
    %613 = vector.extract_strided_slice %610 {offsets = [0, 64], sizes = [16, 32], strides = [1, 1]} : vector<16x96xf32> to vector<16x32xf32>
    %c1_279 = arith.constant 1 : index
    %c0_280 = arith.constant 0 : index
    %c0_281 = arith.constant 0 : index
    %614 = vector.load %arg19[%c1_279, %c0_280, %c0_281] : memref<2x32x32xf32, #tpu.memory_space<vmem>>, vector<1x32x32xf32>
    %615 = vector.shape_cast %614 : vector<1x32x32xf32> to vector<32x32xf32>
    %c1_282 = arith.constant 1 : index
    %c0_283 = arith.constant 0 : index
    %c0_284 = arith.constant 0 : index
    %616 = vector.load %arg20[%c1_282, %c0_283, %c0_284] : memref<2x1x32xf32, #tpu.memory_space<vmem>>, vector<1x1x32xf32>
    %617 = vector.shape_cast %616 : vector<1x1x32xf32> to vector<1x32xf32>
    %cst_285 = arith.constant 0.353553385 : f32
    %618 = vector.broadcast %cst_285 : f32 to vector<16x32xf32>
    %619 = arith.mulf %611, %618 : vector<16x32xf32>
    %620 = vector.extract_strided_slice %619 {offsets = [0, 0], sizes = [16, 8], strides = [1, 1]} : vector<16x32xf32> to vector<16x8xf32>
    %621 = vector.extract_strided_slice %612 {offsets = [0, 0], sizes = [16, 8], strides = [1, 1]} : vector<16x32xf32> to vector<16x8xf32>
    %cst_286 = arith.constant dense<0.000000e+00> : vector<16x16xf32>
    %622 = tpu.matmul %620, %621, %cst_286 {dimension_numbers = #tpu.dot_dimension_numbers<[1], [1], [0], [0], [0, 0, 1, 0], [], []>} : vector<16x8xf32>, vector<16x8xf32>, vector<16x16xf32> -> vector<16x16xf32>
    %623 = arith.addf %622, %1 : vector<16x16xf32>
    %cst_287 = arith.constant dense<0xFF800000> : vector<16xf32>
    %624 = vector.multi_reduction <maximumf>, %623, %cst_287 [1] : vector<16x16xf32> to vector<16xf32>
    %625 = vector.shape_cast %624 : vector<16xf32> to vector<16x1xf32>
    %626 = vector.broadcast %625 : vector<16x1xf32> to vector<16x16xf32>
    %627 = arith.subf %623, %626 : vector<16x16xf32>
    %628 = math.exp %627 : vector<16x16xf32>
    %cst_288 = arith.constant dense<0.000000e+00> : vector<16xf32>
    %629 = vector.multi_reduction <add>, %628, %cst_288 [1] : vector<16x16xf32> to vector<16xf32>
    %630 = vector.shape_cast %629 : vector<16xf32> to vector<16x1xf32>
    %631 = vector.broadcast %630 : vector<16x1xf32> to vector<16x16xf32>
    %632 = arith.divf %628, %631 : vector<16x16xf32>
    %633 = vector.extract_strided_slice %613 {offsets = [0, 0], sizes = [16, 8], strides = [1, 1]} : vector<16x32xf32> to vector<16x8xf32>
    %cst_289 = arith.constant dense<0.000000e+00> : vector<16x8xf32>
    %634 = tpu.matmul %632, %633, %cst_289 {dimension_numbers = #tpu.dot_dimension_numbers<[1], [0], [0], [1], [0, 0, 1, 1], [], []>} : vector<16x16xf32>, vector<16x8xf32>, vector<16x8xf32> -> vector<16x8xf32>
    %635 = vector.extract_strided_slice %615 {offsets = [0, 0], sizes = [8, 32], strides = [1, 1]} : vector<32x32xf32> to vector<8x32xf32>
    %cst_290 = arith.constant dense<0.000000e+00> : vector<16x32xf32>
    %636 = tpu.matmul %634, %635, %cst_290 {dimension_numbers = #tpu.dot_dimension_numbers<[1], [0], [0], [1], [0, 0, 1, 1], [], []>} : vector<16x8xf32>, vector<8x32xf32>, vector<16x32xf32> -> vector<16x32xf32>
    %637 = vector.extract_strided_slice %619 {offsets = [0, 8], sizes = [16, 8], strides = [1, 1]} : vector<16x32xf32> to vector<16x8xf32>
    %638 = vector.extract_strided_slice %612 {offsets = [0, 8], sizes = [16, 8], strides = [1, 1]} : vector<16x32xf32> to vector<16x8xf32>
    %cst_291 = arith.constant dense<0.000000e+00> : vector<16x16xf32>
    %639 = tpu.matmul %637, %638, %cst_291 {dimension_numbers = #tpu.dot_dimension_numbers<[1], [1], [0], [0], [0, 0, 1, 0], [], []>} : vector<16x8xf32>, vector<16x8xf32>, vector<16x16xf32> -> vector<16x16xf32>
    %640 = arith.addf %639, %1 : vector<16x16xf32>
    %cst_292 = arith.constant dense<0xFF800000> : vector<16xf32>
    %641 = vector.multi_reduction <maximumf>, %640, %cst_292 [1] : vector<16x16xf32> to vector<16xf32>
    %642 = vector.shape_cast %641 : vector<16xf32> to vector<16x1xf32>
    %643 = vector.broadcast %642 : vector<16x1xf32> to vector<16x16xf32>
    %644 = arith.subf %640, %643 : vector<16x16xf32>
    %645 = math.exp %644 : vector<16x16xf32>
    %cst_293 = arith.constant dense<0.000000e+00> : vector<16xf32>
    %646 = vector.multi_reduction <add>, %645, %cst_293 [1] : vector<16x16xf32> to vector<16xf32>
    %647 = vector.shape_cast %646 : vector<16xf32> to vector<16x1xf32>
    %648 = vector.broadcast %647 : vector<16x1xf32> to vector<16x16xf32>
    %649 = arith.divf %645, %648 : vector<16x16xf32>
    %650 = vector.extract_strided_slice %613 {offsets = [0, 8], sizes = [16, 8], strides = [1, 1]} : vector<16x32xf32> to vector<16x8xf32>
    %cst_294 = arith.constant dense<0.000000e+00> : vector<16x8xf32>
    %651 = tpu.matmul %649, %650, %cst_294 {dimension_numbers = #tpu.dot_dimension_numbers<[1], [0], [0], [1], [0, 0, 1, 1], [], []>} : vector<16x16xf32>, vector<16x8xf32>, vector<16x8xf32> -> vector<16x8xf32>
    %652 = vector.extract_strided_slice %615 {offsets = [8, 0], sizes = [8, 32], strides = [1, 1]} : vector<32x32xf32> to vector<8x32xf32>
    %cst_295 = arith.constant dense<0.000000e+00> : vector<16x32xf32>
    %653 = tpu.matmul %651, %652, %cst_295 {dimension_numbers = #tpu.dot_dimension_numbers<[1], [0], [0], [1], [0, 0, 1, 1], [], []>} : vector<16x8xf32>, vector<8x32xf32>, vector<16x32xf32> -> vector<16x32xf32>
    %654 = arith.addf %636, %653 : vector<16x32xf32>
    %655 = vector.extract_strided_slice %619 {offsets = [0, 16], sizes = [16, 8], strides = [1, 1]} : vector<16x32xf32> to vector<16x8xf32>
    %656 = vector.extract_strided_slice %612 {offsets = [0, 16], sizes = [16, 8], strides = [1, 1]} : vector<16x32xf32> to vector<16x8xf32>
    %cst_296 = arith.constant dense<0.000000e+00> : vector<16x16xf32>
    %657 = tpu.matmul %655, %656, %cst_296 {dimension_numbers = #tpu.dot_dimension_numbers<[1], [1], [0], [0], [0, 0, 1, 0], [], []>} : vector<16x8xf32>, vector<16x8xf32>, vector<16x16xf32> -> vector<16x16xf32>
    %658 = arith.addf %657, %1 : vector<16x16xf32>
    %cst_297 = arith.constant dense<0xFF800000> : vector<16xf32>
    %659 = vector.multi_reduction <maximumf>, %658, %cst_297 [1] : vector<16x16xf32> to vector<16xf32>
    %660 = vector.shape_cast %659 : vector<16xf32> to vector<16x1xf32>
    %661 = vector.broadcast %660 : vector<16x1xf32> to vector<16x16xf32>
    %662 = arith.subf %658, %661 : vector<16x16xf32>
    %663 = math.exp %662 : vector<16x16xf32>
    %cst_298 = arith.constant dense<0.000000e+00> : vector<16xf32>
    %664 = vector.multi_reduction <add>, %663, %cst_298 [1] : vector<16x16xf32> to vector<16xf32>
    %665 = vector.shape_cast %664 : vector<16xf32> to vector<16x1xf32>
    %666 = vector.broadcast %665 : vector<16x1xf32> to vector<16x16xf32>
    %667 = arith.divf %663, %666 : vector<16x16xf32>
    %668 = vector.extract_strided_slice %613 {offsets = [0, 16], sizes = [16, 8], strides = [1, 1]} : vector<16x32xf32> to vector<16x8xf32>
    %cst_299 = arith.constant dense<0.000000e+00> : vector<16x8xf32>
    %669 = tpu.matmul %667, %668, %cst_299 {dimension_numbers = #tpu.dot_dimension_numbers<[1], [0], [0], [1], [0, 0, 1, 1], [], []>} : vector<16x16xf32>, vector<16x8xf32>, vector<16x8xf32> -> vector<16x8xf32>
    %670 = vector.extract_strided_slice %615 {offsets = [16, 0], sizes = [8, 32], strides = [1, 1]} : vector<32x32xf32> to vector<8x32xf32>
    %cst_300 = arith.constant dense<0.000000e+00> : vector<16x32xf32>
    %671 = tpu.matmul %669, %670, %cst_300 {dimension_numbers = #tpu.dot_dimension_numbers<[1], [0], [0], [1], [0, 0, 1, 1], [], []>} : vector<16x8xf32>, vector<8x32xf32>, vector<16x32xf32> -> vector<16x32xf32>
    %672 = arith.addf %654, %671 : vector<16x32xf32>
    %673 = vector.extract_strided_slice %619 {offsets = [0, 24], sizes = [16, 8], strides = [1, 1]} : vector<16x32xf32> to vector<16x8xf32>
    %674 = vector.extract_strided_slice %612 {offsets = [0, 24], sizes = [16, 8], strides = [1, 1]} : vector<16x32xf32> to vector<16x8xf32>
    %cst_301 = arith.constant dense<0.000000e+00> : vector<16x16xf32>
    %675 = tpu.matmul %673, %674, %cst_301 {dimension_numbers = #tpu.dot_dimension_numbers<[1], [1], [0], [0], [0, 0, 1, 0], [], []>} : vector<16x8xf32>, vector<16x8xf32>, vector<16x16xf32> -> vector<16x16xf32>
    %676 = arith.addf %675, %1 : vector<16x16xf32>
    %cst_302 = arith.constant dense<0xFF800000> : vector<16xf32>
    %677 = vector.multi_reduction <maximumf>, %676, %cst_302 [1] : vector<16x16xf32> to vector<16xf32>
    %678 = vector.shape_cast %677 : vector<16xf32> to vector<16x1xf32>
    %679 = vector.broadcast %678 : vector<16x1xf32> to vector<16x16xf32>
    %680 = arith.subf %676, %679 : vector<16x16xf32>
    %681 = math.exp %680 : vector<16x16xf32>
    %cst_303 = arith.constant dense<0.000000e+00> : vector<16xf32>
    %682 = vector.multi_reduction <add>, %681, %cst_303 [1] : vector<16x16xf32> to vector<16xf32>
    %683 = vector.shape_cast %682 : vector<16xf32> to vector<16x1xf32>
    %684 = vector.broadcast %683 : vector<16x1xf32> to vector<16x16xf32>
    %685 = arith.divf %681, %684 : vector<16x16xf32>
    %686 = vector.extract_strided_slice %613 {offsets = [0, 24], sizes = [16, 8], strides = [1, 1]} : vector<16x32xf32> to vector<16x8xf32>
    %cst_304 = arith.constant dense<0.000000e+00> : vector<16x8xf32>
    %687 = tpu.matmul %685, %686, %cst_304 {dimension_numbers = #tpu.dot_dimension_numbers<[1], [0], [0], [1], [0, 0, 1, 1], [], []>} : vector<16x16xf32>, vector<16x8xf32>, vector<16x8xf32> -> vector<16x8xf32>
    %688 = vector.extract_strided_slice %615 {offsets = [24, 0], sizes = [8, 32], strides = [1, 1]} : vector<32x32xf32> to vector<8x32xf32>
    %cst_305 = arith.constant dense<0.000000e+00> : vector<16x32xf32>
    %689 = tpu.matmul %687, %688, %cst_305 {dimension_numbers = #tpu.dot_dimension_numbers<[1], [0], [0], [1], [0, 0, 1, 1], [], []>} : vector<16x8xf32>, vector<8x32xf32>, vector<16x32xf32> -> vector<16x32xf32>
    %690 = arith.addf %672, %689 : vector<16x32xf32>
    %691 = vector.broadcast %617 : vector<1x32xf32> to vector<16x32xf32>
    %692 = arith.addf %690, %691 : vector<16x32xf32>
    %693 = arith.addf %603, %692 : vector<16x32xf32>
    %c1_306 = arith.constant 1 : index
    %c0_307 = arith.constant 0 : index
    %c0_308 = arith.constant 0 : index
    %694 = vector.load %arg31[%c1_306, %c0_307, %c0_308] : memref<2x1x32xf32, #tpu.memory_space<vmem>>, vector<1x1x32xf32>
    %695 = vector.shape_cast %694 : vector<1x1x32xf32> to vector<1x32xf32>
    %c1_309 = arith.constant 1 : index
    %c0_310 = arith.constant 0 : index
    %c0_311 = arith.constant 0 : index
    %696 = vector.load %arg32[%c1_309, %c0_310, %c0_311] : memref<2x1x32xf32, #tpu.memory_space<vmem>>, vector<1x1x32xf32>
    %697 = vector.shape_cast %696 : vector<1x1x32xf32> to vector<1x32xf32>
    %cst_312 = arith.constant dense<0.000000e+00> : vector<16xf32>
    %698 = vector.multi_reduction <add>, %693, %cst_312 [1] : vector<16x32xf32> to vector<16xf32>
    %699 = vector.shape_cast %698 : vector<16xf32> to vector<16x1xf32>
    %cst_313 = arith.constant 3.200000e+01 : f32
    %700 = vector.broadcast %cst_313 : f32 to vector<16x1xf32>
    %701 = arith.divf %699, %700 : vector<16x1xf32>
    %702 = vector.broadcast %701 : vector<16x1xf32> to vector<16x32xf32>
    %703 = arith.subf %693, %702 : vector<16x32xf32>
    %704 = arith.mulf %703, %703 : vector<16x32xf32>
    %cst_314 = arith.constant dense<0.000000e+00> : vector<16xf32>
    %705 = vector.multi_reduction <add>, %704, %cst_314 [1] : vector<16x32xf32> to vector<16xf32>
    %706 = vector.shape_cast %705 : vector<16xf32> to vector<16x1xf32>
    %cst_315 = arith.constant 3.200000e+01 : f32
    %707 = vector.broadcast %cst_315 : f32 to vector<16x1xf32>
    %708 = arith.divf %706, %707 : vector<16x1xf32>
    %709 = vector.broadcast %701 : vector<16x1xf32> to vector<16x32xf32>
    %710 = arith.subf %693, %709 : vector<16x32xf32>
    %cst_316 = arith.constant 9.99999974E-6 : f32
    %711 = vector.broadcast %cst_316 : f32 to vector<16x1xf32>
    %712 = arith.addf %708, %711 : vector<16x1xf32>
    %713 = math.rsqrt %712 : vector<16x1xf32>
    %714 = vector.broadcast %713 : vector<16x1xf32> to vector<16x32xf32>
    %715 = arith.mulf %710, %714 : vector<16x32xf32>
    %716 = vector.broadcast %695 : vector<1x32xf32> to vector<16x32xf32>
    %717 = arith.mulf %715, %716 : vector<16x32xf32>
    %718 = vector.broadcast %697 : vector<1x32xf32> to vector<16x32xf32>
    %719 = arith.addf %717, %718 : vector<16x32xf32>
    %c1_317 = arith.constant 1 : index
    %c0_318 = arith.constant 0 : index
    %c0_319 = arith.constant 0 : index
    %720 = vector.load %arg21[%c1_317, %c0_318, %c0_319] : memref<2x32x32xf32, #tpu.memory_space<vmem>>, vector<1x32x32xf32>
    %721 = vector.shape_cast %720 : vector<1x32x32xf32> to vector<32x32xf32>
    %c1_320 = arith.constant 1 : index
    %c0_321 = arith.constant 0 : index
    %c0_322 = arith.constant 0 : index
    %722 = vector.load %arg22[%c1_320, %c0_321, %c0_322] : memref<2x1x32xf32, #tpu.memory_space<vmem>>, vector<1x1x32xf32>
    %723 = vector.shape_cast %722 : vector<1x1x32xf32> to vector<1x32xf32>
    %cst_323 = arith.constant dense<0.000000e+00> : vector<16x32xf32>
    %724 = tpu.matmul %719, %721, %cst_323 {dimension_numbers = #tpu.dot_dimension_numbers<[1], [0], [0], [1], [0, 0, 1, 1], [], []>} : vector<16x32xf32>, vector<32x32xf32>, vector<16x32xf32> -> vector<16x32xf32>
    %725 = vector.broadcast %723 : vector<1x32xf32> to vector<16x32xf32>
    %726 = arith.addf %724, %725 : vector<16x32xf32>
    %c1_324 = arith.constant 1 : index
    %c0_325 = arith.constant 0 : index
    %c0_326 = arith.constant 0 : index
    %727 = vector.load %arg23[%c1_324, %c0_325, %c0_326] : memref<2x32x64xf32, #tpu.memory_space<vmem>>, vector<1x32x64xf32>
    %728 = vector.shape_cast %727 : vector<1x32x64xf32> to vector<32x64xf32>
    %c1_327 = arith.constant 1 : index
    %c0_328 = arith.constant 0 : index
    %c0_329 = arith.constant 0 : index
    %729 = vector.load %arg24[%c1_327, %c0_328, %c0_329] : memref<2x1x64xf32, #tpu.memory_space<vmem>>, vector<1x1x64xf32>
    %730 = vector.shape_cast %729 : vector<1x1x64xf32> to vector<1x64xf32>
    %cst_330 = arith.constant dense<0.000000e+00> : vector<16x64xf32>
    %731 = tpu.matmul %321, %728, %cst_330 {dimension_numbers = #tpu.dot_dimension_numbers<[1], [0], [0], [1], [0, 0, 1, 1], [], []>} : vector<16x32xf32>, vector<32x64xf32>, vector<16x64xf32> -> vector<16x64xf32>
    %732 = vector.broadcast %730 : vector<1x64xf32> to vector<16x64xf32>
    %733 = arith.addf %731, %732 : vector<16x64xf32>
    %734 = vector.extract_strided_slice %733 {offsets = [0, 0], sizes = [16, 32], strides = [1, 1]} : vector<16x64xf32> to vector<16x32xf32>
    %735 = vector.extract_strided_slice %733 {offsets = [0, 32], sizes = [16, 32], strides = [1, 1]} : vector<16x64xf32> to vector<16x32xf32>
    %c1_331 = arith.constant 1 : index
    %c0_332 = arith.constant 0 : index
    %c0_333 = arith.constant 0 : index
    %736 = vector.load %arg25[%c1_331, %c0_332, %c0_333] : memref<2x32x32xf32, #tpu.memory_space<vmem>>, vector<1x32x32xf32>
    %737 = vector.shape_cast %736 : vector<1x32x32xf32> to vector<32x32xf32>
    %c1_334 = arith.constant 1 : index
    %c0_335 = arith.constant 0 : index
    %c0_336 = arith.constant 0 : index
    %738 = vector.load %arg26[%c1_334, %c0_335, %c0_336] : memref<2x1x32xf32, #tpu.memory_space<vmem>>, vector<1x1x32xf32>
    %739 = vector.shape_cast %738 : vector<1x1x32xf32> to vector<1x32xf32>
    %cst_337 = arith.constant 0.353553385 : f32
    %740 = vector.broadcast %cst_337 : f32 to vector<16x32xf32>
    %741 = arith.mulf %726, %740 : vector<16x32xf32>
    %742 = vector.extract_strided_slice %741 {offsets = [0, 0], sizes = [16, 8], strides = [1, 1]} : vector<16x32xf32> to vector<16x8xf32>
    %743 = vector.extract_strided_slice %734 {offsets = [0, 0], sizes = [16, 8], strides = [1, 1]} : vector<16x32xf32> to vector<16x8xf32>
    %cst_338 = arith.constant dense<0.000000e+00> : vector<16x16xf32>
    %744 = tpu.matmul %742, %743, %cst_338 {dimension_numbers = #tpu.dot_dimension_numbers<[1], [1], [0], [0], [0, 0, 1, 0], [], []>} : vector<16x8xf32>, vector<16x8xf32>, vector<16x16xf32> -> vector<16x16xf32>
    %745 = arith.addf %744, %2 : vector<16x16xf32>
    %cst_339 = arith.constant dense<0xFF800000> : vector<16xf32>
    %746 = vector.multi_reduction <maximumf>, %745, %cst_339 [1] : vector<16x16xf32> to vector<16xf32>
    %747 = vector.shape_cast %746 : vector<16xf32> to vector<16x1xf32>
    %748 = vector.broadcast %747 : vector<16x1xf32> to vector<16x16xf32>
    %749 = arith.subf %745, %748 : vector<16x16xf32>
    %750 = math.exp %749 : vector<16x16xf32>
    %cst_340 = arith.constant dense<0.000000e+00> : vector<16xf32>
    %751 = vector.multi_reduction <add>, %750, %cst_340 [1] : vector<16x16xf32> to vector<16xf32>
    %752 = vector.shape_cast %751 : vector<16xf32> to vector<16x1xf32>
    %753 = vector.broadcast %752 : vector<16x1xf32> to vector<16x16xf32>
    %754 = arith.divf %750, %753 : vector<16x16xf32>
    %755 = vector.extract_strided_slice %735 {offsets = [0, 0], sizes = [16, 8], strides = [1, 1]} : vector<16x32xf32> to vector<16x8xf32>
    %cst_341 = arith.constant dense<0.000000e+00> : vector<16x8xf32>
    %756 = tpu.matmul %754, %755, %cst_341 {dimension_numbers = #tpu.dot_dimension_numbers<[1], [0], [0], [1], [0, 0, 1, 1], [], []>} : vector<16x16xf32>, vector<16x8xf32>, vector<16x8xf32> -> vector<16x8xf32>
    %757 = vector.extract_strided_slice %737 {offsets = [0, 0], sizes = [8, 32], strides = [1, 1]} : vector<32x32xf32> to vector<8x32xf32>
    %cst_342 = arith.constant dense<0.000000e+00> : vector<16x32xf32>
    %758 = tpu.matmul %756, %757, %cst_342 {dimension_numbers = #tpu.dot_dimension_numbers<[1], [0], [0], [1], [0, 0, 1, 1], [], []>} : vector<16x8xf32>, vector<8x32xf32>, vector<16x32xf32> -> vector<16x32xf32>
    %759 = vector.extract_strided_slice %741 {offsets = [0, 8], sizes = [16, 8], strides = [1, 1]} : vector<16x32xf32> to vector<16x8xf32>
    %760 = vector.extract_strided_slice %734 {offsets = [0, 8], sizes = [16, 8], strides = [1, 1]} : vector<16x32xf32> to vector<16x8xf32>
    %cst_343 = arith.constant dense<0.000000e+00> : vector<16x16xf32>
    %761 = tpu.matmul %759, %760, %cst_343 {dimension_numbers = #tpu.dot_dimension_numbers<[1], [1], [0], [0], [0, 0, 1, 0], [], []>} : vector<16x8xf32>, vector<16x8xf32>, vector<16x16xf32> -> vector<16x16xf32>
    %762 = arith.addf %761, %2 : vector<16x16xf32>
    %cst_344 = arith.constant dense<0xFF800000> : vector<16xf32>
    %763 = vector.multi_reduction <maximumf>, %762, %cst_344 [1] : vector<16x16xf32> to vector<16xf32>
    %764 = vector.shape_cast %763 : vector<16xf32> to vector<16x1xf32>
    %765 = vector.broadcast %764 : vector<16x1xf32> to vector<16x16xf32>
    %766 = arith.subf %762, %765 : vector<16x16xf32>
    %767 = math.exp %766 : vector<16x16xf32>
    %cst_345 = arith.constant dense<0.000000e+00> : vector<16xf32>
    %768 = vector.multi_reduction <add>, %767, %cst_345 [1] : vector<16x16xf32> to vector<16xf32>
    %769 = vector.shape_cast %768 : vector<16xf32> to vector<16x1xf32>
    %770 = vector.broadcast %769 : vector<16x1xf32> to vector<16x16xf32>
    %771 = arith.divf %767, %770 : vector<16x16xf32>
    %772 = vector.extract_strided_slice %735 {offsets = [0, 8], sizes = [16, 8], strides = [1, 1]} : vector<16x32xf32> to vector<16x8xf32>
    %cst_346 = arith.constant dense<0.000000e+00> : vector<16x8xf32>
    %773 = tpu.matmul %771, %772, %cst_346 {dimension_numbers = #tpu.dot_dimension_numbers<[1], [0], [0], [1], [0, 0, 1, 1], [], []>} : vector<16x16xf32>, vector<16x8xf32>, vector<16x8xf32> -> vector<16x8xf32>
    %774 = vector.extract_strided_slice %737 {offsets = [8, 0], sizes = [8, 32], strides = [1, 1]} : vector<32x32xf32> to vector<8x32xf32>
    %cst_347 = arith.constant dense<0.000000e+00> : vector<16x32xf32>
    %775 = tpu.matmul %773, %774, %cst_347 {dimension_numbers = #tpu.dot_dimension_numbers<[1], [0], [0], [1], [0, 0, 1, 1], [], []>} : vector<16x8xf32>, vector<8x32xf32>, vector<16x32xf32> -> vector<16x32xf32>
    %776 = arith.addf %758, %775 : vector<16x32xf32>
    %777 = vector.extract_strided_slice %741 {offsets = [0, 16], sizes = [16, 8], strides = [1, 1]} : vector<16x32xf32> to vector<16x8xf32>
    %778 = vector.extract_strided_slice %734 {offsets = [0, 16], sizes = [16, 8], strides = [1, 1]} : vector<16x32xf32> to vector<16x8xf32>
    %cst_348 = arith.constant dense<0.000000e+00> : vector<16x16xf32>
    %779 = tpu.matmul %777, %778, %cst_348 {dimension_numbers = #tpu.dot_dimension_numbers<[1], [1], [0], [0], [0, 0, 1, 0], [], []>} : vector<16x8xf32>, vector<16x8xf32>, vector<16x16xf32> -> vector<16x16xf32>
    %780 = arith.addf %779, %2 : vector<16x16xf32>
    %cst_349 = arith.constant dense<0xFF800000> : vector<16xf32>
    %781 = vector.multi_reduction <maximumf>, %780, %cst_349 [1] : vector<16x16xf32> to vector<16xf32>
    %782 = vector.shape_cast %781 : vector<16xf32> to vector<16x1xf32>
    %783 = vector.broadcast %782 : vector<16x1xf32> to vector<16x16xf32>
    %784 = arith.subf %780, %783 : vector<16x16xf32>
    %785 = math.exp %784 : vector<16x16xf32>
    %cst_350 = arith.constant dense<0.000000e+00> : vector<16xf32>
    %786 = vector.multi_reduction <add>, %785, %cst_350 [1] : vector<16x16xf32> to vector<16xf32>
    %787 = vector.shape_cast %786 : vector<16xf32> to vector<16x1xf32>
    %788 = vector.broadcast %787 : vector<16x1xf32> to vector<16x16xf32>
    %789 = arith.divf %785, %788 : vector<16x16xf32>
    %790 = vector.extract_strided_slice %735 {offsets = [0, 16], sizes = [16, 8], strides = [1, 1]} : vector<16x32xf32> to vector<16x8xf32>
    %cst_351 = arith.constant dense<0.000000e+00> : vector<16x8xf32>
    %791 = tpu.matmul %789, %790, %cst_351 {dimension_numbers = #tpu.dot_dimension_numbers<[1], [0], [0], [1], [0, 0, 1, 1], [], []>} : vector<16x16xf32>, vector<16x8xf32>, vector<16x8xf32> -> vector<16x8xf32>
    %792 = vector.extract_strided_slice %737 {offsets = [16, 0], sizes = [8, 32], strides = [1, 1]} : vector<32x32xf32> to vector<8x32xf32>
    %cst_352 = arith.constant dense<0.000000e+00> : vector<16x32xf32>
    %793 = tpu.matmul %791, %792, %cst_352 {dimension_numbers = #tpu.dot_dimension_numbers<[1], [0], [0], [1], [0, 0, 1, 1], [], []>} : vector<16x8xf32>, vector<8x32xf32>, vector<16x32xf32> -> vector<16x32xf32>
    %794 = arith.addf %776, %793 : vector<16x32xf32>
    %795 = vector.extract_strided_slice %741 {offsets = [0, 24], sizes = [16, 8], strides = [1, 1]} : vector<16x32xf32> to vector<16x8xf32>
    %796 = vector.extract_strided_slice %734 {offsets = [0, 24], sizes = [16, 8], strides = [1, 1]} : vector<16x32xf32> to vector<16x8xf32>
    %cst_353 = arith.constant dense<0.000000e+00> : vector<16x16xf32>
    %797 = tpu.matmul %795, %796, %cst_353 {dimension_numbers = #tpu.dot_dimension_numbers<[1], [1], [0], [0], [0, 0, 1, 0], [], []>} : vector<16x8xf32>, vector<16x8xf32>, vector<16x16xf32> -> vector<16x16xf32>
    %798 = arith.addf %797, %2 : vector<16x16xf32>
    %cst_354 = arith.constant dense<0xFF800000> : vector<16xf32>
    %799 = vector.multi_reduction <maximumf>, %798, %cst_354 [1] : vector<16x16xf32> to vector<16xf32>
    %800 = vector.shape_cast %799 : vector<16xf32> to vector<16x1xf32>
    %801 = vector.broadcast %800 : vector<16x1xf32> to vector<16x16xf32>
    %802 = arith.subf %798, %801 : vector<16x16xf32>
    %803 = math.exp %802 : vector<16x16xf32>
    %cst_355 = arith.constant dense<0.000000e+00> : vector<16xf32>
    %804 = vector.multi_reduction <add>, %803, %cst_355 [1] : vector<16x16xf32> to vector<16xf32>
    %805 = vector.shape_cast %804 : vector<16xf32> to vector<16x1xf32>
    %806 = vector.broadcast %805 : vector<16x1xf32> to vector<16x16xf32>
    %807 = arith.divf %803, %806 : vector<16x16xf32>
    %808 = vector.extract_strided_slice %735 {offsets = [0, 24], sizes = [16, 8], strides = [1, 1]} : vector<16x32xf32> to vector<16x8xf32>
    %cst_356 = arith.constant dense<0.000000e+00> : vector<16x8xf32>
    %809 = tpu.matmul %807, %808, %cst_356 {dimension_numbers = #tpu.dot_dimension_numbers<[1], [0], [0], [1], [0, 0, 1, 1], [], []>} : vector<16x16xf32>, vector<16x8xf32>, vector<16x8xf32> -> vector<16x8xf32>
    %810 = vector.extract_strided_slice %737 {offsets = [24, 0], sizes = [8, 32], strides = [1, 1]} : vector<32x32xf32> to vector<8x32xf32>
    %cst_357 = arith.constant dense<0.000000e+00> : vector<16x32xf32>
    %811 = tpu.matmul %809, %810, %cst_357 {dimension_numbers = #tpu.dot_dimension_numbers<[1], [0], [0], [1], [0, 0, 1, 1], [], []>} : vector<16x8xf32>, vector<8x32xf32>, vector<16x32xf32> -> vector<16x32xf32>
    %812 = arith.addf %794, %811 : vector<16x32xf32>
    %813 = vector.broadcast %739 : vector<1x32xf32> to vector<16x32xf32>
    %814 = arith.addf %812, %813 : vector<16x32xf32>
    %815 = arith.addf %719, %814 : vector<16x32xf32>
    %c1_358 = arith.constant 1 : index
    %c0_359 = arith.constant 0 : index
    %c0_360 = arith.constant 0 : index
    %816 = vector.load %arg33[%c1_358, %c0_359, %c0_360] : memref<2x1x32xf32, #tpu.memory_space<vmem>>, vector<1x1x32xf32>
    %817 = vector.shape_cast %816 : vector<1x1x32xf32> to vector<1x32xf32>
    %c1_361 = arith.constant 1 : index
    %c0_362 = arith.constant 0 : index
    %c0_363 = arith.constant 0 : index
    %818 = vector.load %arg34[%c1_361, %c0_362, %c0_363] : memref<2x1x32xf32, #tpu.memory_space<vmem>>, vector<1x1x32xf32>
    %819 = vector.shape_cast %818 : vector<1x1x32xf32> to vector<1x32xf32>
    %cst_364 = arith.constant dense<0.000000e+00> : vector<16xf32>
    %820 = vector.multi_reduction <add>, %815, %cst_364 [1] : vector<16x32xf32> to vector<16xf32>
    %821 = vector.shape_cast %820 : vector<16xf32> to vector<16x1xf32>
    %cst_365 = arith.constant 3.200000e+01 : f32
    %822 = vector.broadcast %cst_365 : f32 to vector<16x1xf32>
    %823 = arith.divf %821, %822 : vector<16x1xf32>
    %824 = vector.broadcast %823 : vector<16x1xf32> to vector<16x32xf32>
    %825 = arith.subf %815, %824 : vector<16x32xf32>
    %826 = arith.mulf %825, %825 : vector<16x32xf32>
    %cst_366 = arith.constant dense<0.000000e+00> : vector<16xf32>
    %827 = vector.multi_reduction <add>, %826, %cst_366 [1] : vector<16x32xf32> to vector<16xf32>
    %828 = vector.shape_cast %827 : vector<16xf32> to vector<16x1xf32>
    %cst_367 = arith.constant 3.200000e+01 : f32
    %829 = vector.broadcast %cst_367 : f32 to vector<16x1xf32>
    %830 = arith.divf %828, %829 : vector<16x1xf32>
    %831 = vector.broadcast %823 : vector<16x1xf32> to vector<16x32xf32>
    %832 = arith.subf %815, %831 : vector<16x32xf32>
    %cst_368 = arith.constant 9.99999974E-6 : f32
    %833 = vector.broadcast %cst_368 : f32 to vector<16x1xf32>
    %834 = arith.addf %830, %833 : vector<16x1xf32>
    %835 = math.rsqrt %834 : vector<16x1xf32>
    %836 = vector.broadcast %835 : vector<16x1xf32> to vector<16x32xf32>
    %837 = arith.mulf %832, %836 : vector<16x32xf32>
    %838 = vector.broadcast %817 : vector<1x32xf32> to vector<16x32xf32>
    %839 = arith.mulf %837, %838 : vector<16x32xf32>
    %840 = vector.broadcast %819 : vector<1x32xf32> to vector<16x32xf32>
    %841 = arith.addf %839, %840 : vector<16x32xf32>
    %c1_369 = arith.constant 1 : index
    %c0_370 = arith.constant 0 : index
    %c0_371 = arith.constant 0 : index
    %842 = vector.load %arg27[%c1_369, %c0_370, %c0_371] : memref<2x32x64xf32, #tpu.memory_space<vmem>>, vector<1x32x64xf32>
    %843 = vector.shape_cast %842 : vector<1x32x64xf32> to vector<32x64xf32>
    %c1_372 = arith.constant 1 : index
    %c0_373 = arith.constant 0 : index
    %c0_374 = arith.constant 0 : index
    %844 = vector.load %arg28[%c1_372, %c0_373, %c0_374] : memref<2x1x64xf32, #tpu.memory_space<vmem>>, vector<1x1x64xf32>
    %845 = vector.shape_cast %844 : vector<1x1x64xf32> to vector<1x64xf32>
    %cst_375 = arith.constant dense<0.000000e+00> : vector<16x64xf32>
    %846 = tpu.matmul %841, %843, %cst_375 {dimension_numbers = #tpu.dot_dimension_numbers<[1], [0], [0], [1], [0, 0, 1, 1], [], []>} : vector<16x32xf32>, vector<32x64xf32>, vector<16x64xf32> -> vector<16x64xf32>
    %847 = vector.broadcast %845 : vector<1x64xf32> to vector<16x64xf32>
    %848 = arith.addf %846, %847 : vector<16x64xf32>
    %cst_376 = arith.constant 0.000000e+00 : f32
    %849 = vector.broadcast %cst_376 : f32 to vector<16x64xf32>
    %850 = arith.maximumf %848, %849 : vector<16x64xf32>
    %c1_377 = arith.constant 1 : index
    %c0_378 = arith.constant 0 : index
    %c0_379 = arith.constant 0 : index
    %851 = vector.load %arg29[%c1_377, %c0_378, %c0_379] : memref<2x64x32xf32, #tpu.memory_space<vmem>>, vector<1x64x32xf32>
    %852 = vector.shape_cast %851 : vector<1x64x32xf32> to vector<64x32xf32>
    %c1_380 = arith.constant 1 : index
    %c0_381 = arith.constant 0 : index
    %c0_382 = arith.constant 0 : index
    %853 = vector.load %arg30[%c1_380, %c0_381, %c0_382] : memref<2x1x32xf32, #tpu.memory_space<vmem>>, vector<1x1x32xf32>
    %854 = vector.shape_cast %853 : vector<1x1x32xf32> to vector<1x32xf32>
    %cst_383 = arith.constant dense<0.000000e+00> : vector<16x32xf32>
    %855 = tpu.matmul %850, %852, %cst_383 {dimension_numbers = #tpu.dot_dimension_numbers<[1], [0], [0], [1], [0, 0, 1, 1], [], []>} : vector<16x64xf32>, vector<64x32xf32>, vector<16x32xf32> -> vector<16x32xf32>
    %856 = vector.broadcast %854 : vector<1x32xf32> to vector<16x32xf32>
    %857 = arith.addf %855, %856 : vector<16x32xf32>
    %858 = arith.addf %841, %857 : vector<16x32xf32>
    %c1_384 = arith.constant 1 : index
    %c0_385 = arith.constant 0 : index
    %c0_386 = arith.constant 0 : index
    %859 = vector.load %arg35[%c1_384, %c0_385, %c0_386] : memref<2x1x32xf32, #tpu.memory_space<vmem>>, vector<1x1x32xf32>
    %860 = vector.shape_cast %859 : vector<1x1x32xf32> to vector<1x32xf32>
    %c1_387 = arith.constant 1 : index
    %c0_388 = arith.constant 0 : index
    %c0_389 = arith.constant 0 : index
    %861 = vector.load %arg36[%c1_387, %c0_388, %c0_389] : memref<2x1x32xf32, #tpu.memory_space<vmem>>, vector<1x1x32xf32>
    %862 = vector.shape_cast %861 : vector<1x1x32xf32> to vector<1x32xf32>
    %cst_390 = arith.constant dense<0.000000e+00> : vector<16xf32>
    %863 = vector.multi_reduction <add>, %858, %cst_390 [1] : vector<16x32xf32> to vector<16xf32>
    %864 = vector.shape_cast %863 : vector<16xf32> to vector<16x1xf32>
    %cst_391 = arith.constant 3.200000e+01 : f32
    %865 = vector.broadcast %cst_391 : f32 to vector<16x1xf32>
    %866 = arith.divf %864, %865 : vector<16x1xf32>
    %867 = vector.broadcast %866 : vector<16x1xf32> to vector<16x32xf32>
    %868 = arith.subf %858, %867 : vector<16x32xf32>
    %869 = arith.mulf %868, %868 : vector<16x32xf32>
    %cst_392 = arith.constant dense<0.000000e+00> : vector<16xf32>
    %870 = vector.multi_reduction <add>, %869, %cst_392 [1] : vector<16x32xf32> to vector<16xf32>
    %871 = vector.shape_cast %870 : vector<16xf32> to vector<16x1xf32>
    %cst_393 = arith.constant 3.200000e+01 : f32
    %872 = vector.broadcast %cst_393 : f32 to vector<16x1xf32>
    %873 = arith.divf %871, %872 : vector<16x1xf32>
    %874 = vector.broadcast %866 : vector<16x1xf32> to vector<16x32xf32>
    %875 = arith.subf %858, %874 : vector<16x32xf32>
    %cst_394 = arith.constant 9.99999974E-6 : f32
    %876 = vector.broadcast %cst_394 : f32 to vector<16x1xf32>
    %877 = arith.addf %873, %876 : vector<16x1xf32>
    %878 = math.rsqrt %877 : vector<16x1xf32>
    %879 = vector.broadcast %878 : vector<16x1xf32> to vector<16x32xf32>
    %880 = arith.mulf %875, %879 : vector<16x32xf32>
    %881 = vector.broadcast %860 : vector<1x32xf32> to vector<16x32xf32>
    %882 = arith.mulf %880, %881 : vector<16x32xf32>
    %883 = vector.broadcast %862 : vector<1x32xf32> to vector<16x32xf32>
    %884 = arith.addf %882, %883 : vector<16x32xf32>
    %c0_395 = arith.constant 0 : index
    %c0_396 = arith.constant 0 : index
    %885 = vector.load %arg37[%c0_395, %c0_396] : memref<32x128xf32, #tpu.memory_space<vmem>>, vector<32x128xf32>
    %c0_397 = arith.constant 0 : index
    %c0_398 = arith.constant 0 : index
    %886 = vector.load %arg38[%c0_397, %c0_398] : memref<1x128xf32, #tpu.memory_space<vmem>>, vector<1x128xf32>
    %cst_399 = arith.constant dense<0.000000e+00> : vector<16x128xf32>
    %887 = tpu.matmul %884, %885, %cst_399 {dimension_numbers = #tpu.dot_dimension_numbers<[1], [0], [0], [1], [0, 0, 1, 1], [], []>} : vector<16x32xf32>, vector<32x128xf32>, vector<16x128xf32> -> vector<16x128xf32>
    %888 = vector.broadcast %886 : vector<1x128xf32> to vector<16x128xf32>
    %889 = arith.addf %887, %888 : vector<16x128xf32>
    %c0_400 = arith.constant 0 : index
    %c0_401 = arith.constant 0 : index
    %890 = vector.load %arg39[%c0_400, %c0_401] : memref<16x128xf32, #tpu.memory_space<vmem>>, vector<16x128xf32>
    tpu.vector_store %arg39[%c0_400, %c0_401], %889 {strides = array<i32>} : memref<16x128xf32, #tpu.memory_space<vmem>>, vector<16x128xf32>,
    return
  }
}

</mosaic_0001>

<bundles_post_ra>
// kernel: transformer_forward.1
= control target key start
LH: loop header
LB: loop body
LE: loop exit
PB: predicated region body
PF: predicated region fallthrough
CT: control target
= control target key end

     0   :  { %s10871_s6 = smov 1   ;;  %s10872_s10 = smov 2   ;;  %s12217_s0 = inlined_call_operand.smem [shape: u32[40], index: -1, kind: input, shape index: {}] }
   0x1   :  { %s10932_s5 = sld [smem:[%s12217_s0]]   ;;  %s10873_s14 = smov 3  }
   0x2   :  { %s10937_s9 = sld [smem:[%s12217_s0 + %s10871_s6]]   ;;  %s10874_s18 = smov 4  }
   0x3   :  { %s10942_s13 = sld [smem:[%s12217_s0 + %s10872_s10]]   ;;  %s10875_s22 = smov 5  }
   0x4   :  { %s10947_s17 = sld [smem:[%s12217_s0 + %s10873_s14]]   ;;  %s10876_s26 = smov 6  }
   0x5   :  { %s10952_s21 = sld [smem:[%s12217_s0 + %s10874_s18]]   ;;  %s10877_s30 = smov 7  }
   0x6   :  { %s10957_s25 = sld [smem:[%s12217_s0 + %s10875_s22]]   ;;  %s10878_s4 = smov 8  }
   0x7   :  { %s10962_s29 = sld [smem:[%s12217_s0 + %s10876_s26]]   ;;  %s10879_s10 = smov 9  }
   0x8   :  { %12250 = sst [smem:[#allocation5_spill]] %s10937_s9  ;;  %s10880_s15 = smov 10  }
   0x9   :  { %s10967_s3 = sld [smem:[%s12217_s0 + %s10877_s30]]   ;;  %s10881_s20 = smov 11  }
   0xa   :  { %12251 = sst [smem:[#allocation6_spill]] %s10947_s17  ;;  %s10882_s26 = smov 12  }
   0xb   :  { %12252 = sst [smem:[#allocation7_spill]] %s10952_s21  ;;  %s10883_s1 = smov 13  }
   0xc   :  { %s10972_s8 = sld [smem:[%s12217_s0 + %s10878_s4]]   ;;  %s10884_s7 = smov 14  }
   0xd   :  { %s10977_s14 = sld [smem:[%s12217_s0 + %s10879_s10]]   ;;  %s10886_s22 = smov 16  }
   0xe   :  { %s10982_s19 = sld [smem:[%s12217_s0 + %s10880_s15]]   ;;  %s10885_s15 = smov 15  }
   0xf   :  { %s10987_s24 = sld [smem:[%s12217_s0 + %s10881_s20]]   ;;  %s10887_s28 = smov 17  }
  0x10   :  { %s10992_s30 = sld [smem:[%s12217_s0 + %s10882_s26]]  }
  0x11   :  { %s10997_s6 = sld [smem:[%s12217_s0 + %s10883_s1]]  }
  0x12   :  { %s11002_s12 = sld [smem:[%s12217_s0 + %s10884_s7]]   ;;  %s10888_s7 = smov 18  }
  0x13   :  { %s11007_s20 = sld [smem:[%s12217_s0 + %s10885_s15]]   ;;  %s10889_s15 = smov 19  }
  0x14   :  { %s11012_s27 = sld [smem:[%s12217_s0 + %s10886_s22]]   ;;  %s10890_s22 = smov 20  }
  0x15   :  { %s11017_s4 = sld [smem:[%s12217_s0 + %s10887_s28]]   ;;  %s10891_s28 = smov 21  }
  0x16   :  { %s11022_s21 = sld [smem:[%s12217_s0 + %s10888_s7]]   ;;  %s10892_s7 = smov 22  }
  0x17   :  { %s11027_s17 = sld [smem:[%s12217_s0 + %s10889_s15]]   ;;  %s10893_s15 = smov 23  }
  0x18   :  { %s11032_s9 = sld [smem:[%s12217_s0 + %s10890_s22]]   ;;  %s10894_s22 = smov 24  }
  0x1b   :  { %12253 = sst [smem:[#allocation8_spill]] %s11017_s4 }
  0x1c   :  { %12254 = sst [smem:[#allocation9_spill]] %s11022_s21 }
  0x1d   :  { %12255 = sst [smem:[#allocation10_spill]] %s11027_s17 }
  0x1e   :  { %12256 = sst [smem:[#allocation11_spill]] %s11032_s9 }
  0x1f   :  { %s11037_s4 = sld [smem:[%s12217_s0 + %s10891_s28]]   ;;  %s10895_s28 = smov 25  }
  0x20   :  { %s11042_s21 = sld [smem:[%s12217_s0 + %s10892_s7]]   ;;  %s10896_s7 = smov 26  }
  0x21   :  { %s11047_s17 = sld [smem:[%s12217_s0 + %s10893_s15]]   ;;  %s10897_s15 = smov 27  }
  0x22   :  { %s11052_s9 = sld [smem:[%s12217_s0 + %s10894_s22]]   ;;  %s10898_s22 = smov 28  }
  0x25   :  { %12257 = sst [smem:[#allocation12_spill]] %s11037_s4 }
  0x26   :  { %12258 = sst [smem:[#allocation13_spill]] %s11042_s21 }
  0x27   :  { %12259 = sst [smem:[#allocation14_spill]] %s11047_s17 }
  0x28   :  { %12260 = sst [smem:[#allocation15_spill]] %s11052_s9 }
  0x29   :  { %s11057_s4 = sld [smem:[%s12217_s0 + %s10895_s28]]   ;;  %s10899_s28 = smov 29  }
  0x2a   :  { %s11062_s21 = sld [smem:[%s12217_s0 + %s10896_s7]]   ;;  %s10900_s7 = smov 30  }
  0x2b   :  { %s11067_s17 = sld [smem:[%s12217_s0 + %s10897_s15]]   ;;  %s10901_s15 = smov 31  }
  0x2c   :  { %s11072_s9 = sld [smem:[%s12217_s0 + %s10898_s22]]   ;;  %s10902_s22 = smov 32  }
  0x2f   :  { %12261 = sst [smem:[#allocation16_spill]] %s11057_s4 }
  0x30   :  { %12262 = sst [smem:[#allocation17_spill]] %s11062_s21 }
  0x31   :  { %12263 = sst [smem:[#allocation18_spill]] %s11067_s17 }
  0x32   :  { %12264 = sst [smem:[#allocation19_spill]] %s11072_s9 }
  0x33   :  { %s11077_s4 = sld [smem:[%s12217_s0 + %s10899_s28]]   ;;  %s10903_s28 = smov 33  }
  0x34   :  { %s11082_s21 = sld [smem:[%s12217_s0 + %s10900_s7]]   ;;  %s10904_s7 = smov 34  }
  0x35   :  { %s11087_s17 = sld [smem:[%s12217_s0 + %s10901_s15]]   ;;  %s10905_s15 = smov 35  }
  0x36   :  { %s11092_s9 = sld [smem:[%s12217_s0 + %s10902_s22]]   ;;  %s10906_s22 = smov 36  }
  0x39   :  { %12265 = sst [smem:[#allocation20_spill]] %s11077_s4 }
  0x3a   :  { %12266 = sst [smem:[#allocation21_spill]] %s11082_s21 }
  0x3b   :  { %12267 = sst [smem:[#allocation22_spill]] %s11087_s17 }
  0x3c   :  { %12268 = sst [smem:[#allocation23_spill]] %s11092_s9 }
  0x3d   :  { %s11097_s4 = sld [smem:[%s12217_s0 + %s10903_s28]]   ;;  %s10907_s28 = smov 37  }
  0x3e   :  { %s11102_s21 = sld [smem:[%s12217_s0 + %s10904_s7]]   ;;  %s10908_s7 = smov 38  }
  0x3f   :  { %s11107_s17 = sld [smem:[%s12217_s0 + %s10905_s15]]   ;;  %s10909_s15 = smov 39  }
  0x40   :  { %s11112_s9 = sld [smem:[%s12217_s0 + %s10906_s22]]  }
  0x43   :  { %12269 = sst [smem:[#allocation24_spill]] %s11097_s4 }
  0x44   :  { %12270 = sst [smem:[#allocation25_spill]] %s11102_s21 }
  0x45   :  { %12271 = sst [smem:[#allocation26_spill]] %s11107_s17 }
  0x46   :  { %s11117_s4 = sld [smem:[%s12217_s0 + %s10907_s28]]  }
  0x47   :  { %s11122_s21 = sld [smem:[%s12217_s0 + %s10908_s7]]  }
  0x48   :  { %s11127_s17 = sld [smem:[%s12217_s0 + %s10909_s15]]  }
  0x49   :  { %v174_v0 = vld [vmem:[%s10957_s25 + $0x18] sm:$0xff]  ;;  %v173_v1 = vld [vmem:[%s10957_s25 + $0x10] sm:$0xff]  ;;  %vm182_vm0 = vcmask 261120   ;;  %v11132_v2 = vld [vmem:[%s10932_s5] sm:$0xff] }
  0x4a   :  { %9883 = vmatprep.subr.mxu0 %v174_v0  ;;  %v172_v3 = vld [vmem:[%s10957_s25 + $0x8] sm:$0xff]  ;;  %9891 = vmatprep.mubr.msk.f32.mxu0 %vm182_vm0, %v11132_v2 }
  0x4b   :  { %9884 = vmatpush3.msra.mxu0 %v174_v0 }
  0x4c   :  { %84 = vsyncpa [#allocation3], 0  ;;  %9885 = vmatprep.subr.mxu0 %v173_v1  ;;  %v171_v4 = vld [vmem:[%s10957_s25] sm:$0xff]  ;;  %v11139_v5 = vld [vmem:[%s10932_s5 + $0x8] sm:$0xff]  ;;  %s10910_s0 = smov 88   ;;  %s10911_s22 = smov 96  }
  0x4d   :  { %9886 = vmatpush3.msra.mxu0 %v173_v1  ;;  %v9159_v6 = vld [vmem:[%s10962_s29] ss:$0 sm:$0xff]  ;;  %vm277_vm1 = vcmask 64512   ;;  %s10912_s5 = smov 120   ;;  %v11181_v19 = vld [vmem:[%s10942_s13 + $0x8] sm:$0xff]  ;;  %vm363_vm2 = vcmask 130048  }
  0x4e   :  { %9887 = vmatprep.subr.mxu0 %v172_v3  ;;  %v11184_v21 = vld [vmem:[%s10942_s13] sm:$0xff]  ;;  %s10913_s23 = smov 64   ;;  %s10914_s26 = smov 56   ;;  %v265_v1 = vld [vmem:[%s10967_s3 + $0x8] sm:$0xff]  ;;  %vm1565_vm3 = vcmask 523264  }
  0x4f   :  { %9888 = vmatpush3.msra.mxu0 %v172_v3  ;;  %s10915_s28 = smov 80   ;;  %s12248_s1 = smov 112  }
  0x50   :  { %9889 = vmatprep.subr.mxu0 %v171_v4  ;;  %s12246_s2 = smov 72   ;;  %s12244_s7 = smov 104  }
  0x51   :  { %9890 = vmatpush3.msra.mxu0 %v171_v4  ;;  %s12242_s10 = smov 48   ;;  %s12240_s11 = smov 40  }
  0x52   :  { %9892 = vmatmul.mubr.msk.f32.vlgmr.msra.gmra.mxu0 %vm182_vm0, %v11139_v5  ;;  %s12285_s15 = sld [smem:[#allocation16_spill]] }
  0x53   :  { %s12286_s16 = sld [smem:[#allocation17_spill]] }
  0x54   :  { %s12287_s18 = sld [smem:[#allocation18_spill]] }
 0x112   :  { %v9893_v7 = vpop.f32.mrf.mxu0 }
 0x113   :  { %v11144_v8 = vadd.f32 %v9893_v7, %v9159_v6 }
 0x114   :  { %v255_v9 = vpop.f32.mrf.mxu0 }
 0x115   :  { %v11146_v10 = vadd.f32 %v9159_v6, %v255_v9  ;;  %479 = vrot.lane.b32.xlu1 %v11144_v8, %s10910_s0  ;;  %275 = vrot.lane.b32.xlu0 %v11144_v8, %s10911_s22  ;;  %v11162_v12 = vmul.f32 0.35355338, %v11144_v8 }
 0x117   :  { %v11153_v11 = vmul.f32 0.35355338, %v11146_v10 }
 0x119   :  { %477 = vrot.lane.b32.xlu1 %v11146_v10, %s10910_s0  ;;  %273 = vrot.lane.b32.xlu0 %v11146_v10, %s10911_s22 }
 0x11a   :  { %9898 = vmatprep.mubr.msk.f32.mxu1 %vm277_vm1, %v11153_v11 }
 0x11d   :  { %475 = vrot.lane.b32.xlu1 %v11162_v12, %s10912_s5  ;;  %473 = vrot.lane.b32.xlu0 %v11153_v11, %s10912_s5 }
 0x187   :  { %v276_v13 = vpop.permute.xlu0 %275  ;;  %v480_v14 = vpop.permute.xlu1 %479 }
 0x188   :  { %9894 = vmatprep.subr.msk.mxu1 %vm277_vm1, %v276_v13 }
 0x189   :  { %9895 = vmatpush3.xpose.msk.msra.mxu1 %vm277_vm1, %v276_v13 }
 0x18b   :  { %v274_v15 = vpop.permute.xlu0 %273  ;;  %v478_v17 = vpop.permute.xlu1 %477 }
 0x18c   :  { %9896 = vmatprep.subr.msk.mxu1 %vm277_vm1, %v274_v15 }
 0x18d   :  { %9897 = vmatpush3.xpose.msk.msra.mxu1 %vm277_vm1, %v274_v15 }
 0x18e   :  { %9908 = vmatprep.subr.msk.mxu1 %vm277_vm1, %v480_v14 }
 0x18f   :  { %v474_v16 = vpop.permute.xlu0 %473  ;;  %v476_v18 = vpop.permute.xlu1 %475 }
 0x190   :  { %9899 = vmatmul.mubr.msk.f32.vlgmr.msra.gmra.mxu1 %vm277_vm1, %v11162_v12 }
 0x191   :  { %9909 = vmatpush3.xpose.msk.msra.mxu1 %vm277_vm1, %v480_v14  ;;  %9912 = vmatprep.mubr.msk.f32.mxu1 %vm277_vm1, %v474_v16 }
 0x192   :  { %9910 = vmatprep.subr.msk.mxu1 %vm277_vm1, %v478_v17 }
 0x195   :  { %9911 = vmatpush3.xpose.msk.msra.mxu1 %vm277_vm1, %v478_v17 }
 0x198   :  { %9913 = vmatmul.mubr.msk.f32.vlgmr.msra.gmra.mxu1 %vm277_vm1, %v476_v18 }
 0x250   :  { %v9900_v20 = vpop.f32.mrf.mxu1 }
 0x251   :  { %v360_v22 = vadd.f32 %v9900_v20, %v11181_v19 }
 0x252   :  { %v354_v23 = vpop.f32.mrf.mxu1 }
 0x253   :  { %v355_v24 = vadd.f32 %v354_v23, %v11184_v21  ;;  %v367_v25 = vsel %vm363_vm2, %v360_v22, -inf }
 0x254   :  { %368 = vmax.xlane.f32.xlu1 %v367_v25 }
 0x255   :  { %v364_v26 = vsel %vm363_vm2, %v355_v24, -inf }
 0x256   :  { %365 = vmax.xlane.f32.xlu0 %v364_v26 }
 0x258   :  { %v9914_v27 = vpop.f32.mrf.mxu1 }
 0x259   :  { %v561_v30 = vadd.f32 %v9914_v27, %v11181_v19 }
 0x25a   :  { %v555_v28 = vpop.f32.mrf.mxu1 }
 0x25b   :  { %v556_v29 = vadd.f32 %v555_v28, %v11184_v21  ;;  %v567_v32 = vsel %vm363_vm2, %v561_v30, -inf }
 0x25d   :  { %v564_v31 = vsel %vm363_vm2, %v556_v29, -inf }
 0x25e   :  { %565 = vmax.xlane.f32.xlu0 %v564_v31 }
 0x262   :  { %568 = vmax.xlane.f32.xlu0 %v567_v32 }
 0x265   :  { %388 = vrot.lane.b32.xlu1 %v11144_v8, %s10913_s23 }
 0x2dd   :  { %v369_v33 = vpop.xlane.xlu1 %368 }
 0x2de   :  { %v371_v34 = vsub.f32 %v360_v22, %v369_v33 }
 0x2df   :  { %v366_v35 = vpop.xlane.xlu0 %365 }
 0x2e0   :  { %v374_v36 = vmul.f32 1.442695, %v371_v34  ;;  %v370_v37 = vsub.f32 %v355_v24, %v366_v35 }
 0x2e1   :  { %v389_v38 = vpop.permute.xlu1 %388 }
 0x2e2   :  { %10611 = vpow2.f32 %v374_v36  ;;  %v372_v39 = vmul.f32 1.442695, %v370_v37  ;;  %9901 = vmatprep.subr.mxu0 %v389_v38 }
 0x2e3   :  { %9902 = vmatpush3.msra.mxu0 %v389_v38 }
 0x2e4   :  { %10613 = vpow2.f32 %v372_v39 }
 0x2e7   :  { %v566_v40 = vpop.xlane.xlu0 %565 }
 0x2e8   :  { %v570_v50 = vsub.f32 %v556_v29, %v566_v40 }
 0x2ea   :  { %v572_v51 = vmul.f32 1.442695, %v570_v50 }
 0x2eb   :  { %v569_v41 = vpop.xlane.xlu0 %568 }
 0x2ec   :  { %v571_v42 = vsub.f32 %v561_v30, %v569_v41 }
 0x2ee   :  { %v574_v43 = vmul.f32 1.442695, %v571_v42 }
 0x2ef   :  { %v10612_v44 = vpop.eup %10611 }
 0x2f0   :  { %10615 = vpow2.f32 %v574_v43  ;;  %v379_v45 = vsel %vm363_vm2, %v10612_v44, 0.0 }
 0x2f1   :  { %v10614_v46 = vpop.eup %10613  ;;  %380 = vadd.xlane.f32.xlu0 %v379_v45  ;;  %10617 = vpow2.f32 %v572_v51 }
 0x2f2   :  { %v376_v47 = vsel %vm363_vm2, %v10614_v46, 0.0 }
 0x2f3   :  { %377 = vadd.xlane.f32.xlu1 %v376_v47 }
 0x2fd   :  { %v10616_v48 = vpop.eup %10615 }
 0x2fe   :  { %v579_v49 = vsel %vm363_vm2, %v10616_v48, 0.0  ;;  %v10618_v52 = vpop.eup %10617 }
 0x2ff   :  { %580 = vadd.xlane.f32.xlu0 %v579_v49  ;;  %v576_v53 = vsel %vm363_vm2, %v10618_v52, 0.0 }
 0x304   :  { %588 = vrot.lane.b32.xlu1 %v11144_v8, %s10914_s26 }
 0x315   :  { %386 = vrot.lane.b32.xlu0 %v11146_v10, %s10913_s23 }
 0x319   :  { %841 = vrot.lane.b32.xlu0 %v11144_v8, %s10915_s28 }
 0x31d   :  { %835 = vrot.lane.b32.xlu0 %v11153_v11, %s12248_s1 }
 0x321   :  { %1124 = vrot.lane.b32.xlu0 %v11144_v8, %s12246_s2 }
 0x325   :  { %1118 = vrot.lane.b32.xlu0 %v11153_v11, %s12244_s7  ;;  %v264_v11 = vld [vmem:[%s10967_s3] sm:$0xff] }
 0x326   :  { %9927 = vmatprep.subr.mxu1 %v264_v11 }
 0x327   :  { %9928 = vmatpush3.msra.mxu1 %v264_v11 }
 0x328   :  { %577 = vadd.xlane.f32.xlu1 %v576_v53 }
 0x339   :  { %586 = vrot.lane.b32.xlu1 %v11146_v10, %s10914_s26 }
 0x33d   :  { %839 = vrot.lane.b32.xlu1 %v11146_v10, %s10915_s28 }
 0x341   :  { %837 = vrot.lane.b32.xlu1 %v11162_v12, %s12248_s1 }
 0x345   :  { %1122 = vrot.lane.b32.xlu1 %v11146_v10, %s12246_s2 }
 0x349   :  { %1120 = vrot.lane.b32.xlu1 %v11162_v12, %s12244_s7 }
 0x37a   :  { %v381_v54 = vpop.xlane.xlu0 %380 }
 0x37b   :  { %10619 = vrcp.f32 %v381_v54 }
 0x37c   :  { %v378_v55 = vpop.xlane.xlu1 %377 }
 0x37d   :  { %10621 = vrcp.f32 %v378_v55 }
 0x380   :  { %v589_v62 = vpop.permute.xlu1 %588 }
 0x388   :  { %v581_v56 = vpop.xlane.xlu0 %580  ;;  %v10620_v57 = vpop.eup %10619 }
 0x389   :  { %v385_v61 = vmul.f32 %v10620_v57, %v10612_v44  ;;  %10623 = vrcp.f32 %v581_v56 }
 0x38a   :  { %v10622_v58 = vpop.eup %10621 }
 0x38b   :  { %v383_v59 = vmul.f32 %v10622_v58, %v10614_v46 }
 0x38c   :  { %v387_v60 = vpop.permute.xlu0 %386 }
 0x38d   :  { %9903 = vmatprep.subr.mxu0 %v387_v60  ;;  %9905 = vmatprep.mubr.msk.f32.mxu0 %vm363_vm2, %v383_v59 }
 0x38e   :  { %9904 = vmatpush3.msra.mxu0 %v387_v60  ;;  %v266_v60 = vld [vmem:[%s10967_s3 + $0x10] sm:$0xff] }
 0x38f   :  { %9906 = vmatmul.mubr.msk.f32.vlgmr.msra.gmra.mxu0 %vm363_vm2, %v385_v61  ;;  %9915 = vmatprep.subr.mxu0 %v589_v62 }
 0x390   :  { %9916 = vmatpush3.msra.mxu0 %v589_v62  ;;  %v842_v9 = vpop.permute.xlu0 %841 }
 0x394   :  { %v836_v14 = vpop.permute.xlu0 %835 }
 0x396   :  { %v10624_v3 = vpop.eup %10623 }
 0x397   :  { %v585_v7 = vmul.f32 %v10624_v3, %v10616_v48 }
 0x398   :  { %v1125_v18 = vpop.permute.xlu0 %1124 }
 0x39c   :  { %v1119_v22 = vpop.permute.xlu0 %1118 }
 0x3b1   :  { %v578_v63 = vpop.xlane.xlu1 %577 }
 0x3b2   :  { %10625 = vrcp.f32 %v578_v63 }
 0x3b5   :  { %v587_v0 = vpop.permute.xlu1 %586 }
 0x3b6   :  { %9917 = vmatprep.subr.mxu0 %v587_v0 }
 0x3b7   :  { %9918 = vmatpush3.msra.mxu0 %v587_v0 }
 0x3b8   :  { %9922 = vmatprep.subr.mxu0 %v265_v1 }
 0x3b9   :  { %v840_v16 = vpop.permute.xlu1 %839 }
 0x3bd   :  { %v838_v20 = vpop.permute.xlu1 %837 }
 0x3bf   :  { %v10626_v4 = vpop.eup %10625 }
 0x3c0   :  { %v583_v6 = vmul.f32 %v10626_v4, %v10618_v52 }
 0x3c1   :  { %v1123_v23 = vpop.permute.xlu1 %1122 }
 0x3c2   :  { %9919 = vmatprep.mubr.msk.f32.mxu0 %vm363_vm2, %v583_v6 }
 0x3c3   :  { %9920 = vmatmul.mubr.msk.f32.vlgmr.msra.gmra.mxu0 %vm363_vm2, %v585_v7 }
 0x3c4   :  { %9923 = vmatpush3.msra.mxu0 %v265_v1 }
 0x3c5   :  { %9932 = vmatprep.subr.msk.mxu0 %vm277_vm1, %v842_v9  ;;  %v1121_v24 = vpop.permute.xlu1 %1120 }
 0x44f   :  { %v9907_v12 = vpop.f32.mrf.mxu0 }
 0x451   :  { %v464_v13 = vpop.f32.mrf.mxu0 }
 0x452   :  { %9929 = vmatprep.mubr.msk.f32.mxu1 %vm277_vm1, %v464_v13 }
 0x453   :  { %9930 = vmatmul.mubr.msk.f32.vlgmr.msra.gmra.mxu1 %vm277_vm1, %v9907_v12 }
 0x483   :  { %v9921_v15 = vpop.f32.mrf.mxu0 }
 0x485   :  { %v664_v17 = vpop.f32.mrf.mxu0 }
 0x486   :  { %9924 = vmatprep.mubr.msk.f32.mxu0 %vm277_vm1, %v664_v17 }
 0x487   :  { %9925 = vmatmul.mubr.msk.f32.vlgmr.msra.gmra.mxu0 %vm277_vm1, %v9921_v15 }
 0x488   :  { %9933 = vmatpush3.xpose.msk.msra.mxu0 %vm277_vm1, %v842_v9  ;;  %9936 = vmatprep.mubr.msk.f32.mxu0 %vm277_vm1, %v836_v14 }
 0x489   :  { %9934 = vmatprep.subr.msk.mxu0 %vm277_vm1, %v840_v16 }
 0x48c   :  { %9935 = vmatpush3.xpose.msk.msra.mxu0 %vm277_vm1, %v840_v16 }
 0x48d   :  { %9951 = vmatprep.subr.msk.mxu0 %vm277_vm1, %v1125_v18 }
 0x48f   :  { %9937 = vmatmul.mubr.msk.f32.vlgmr.msra.gmra.mxu0 %vm277_vm1, %v838_v20  ;;  %v267_v20 = vld [vmem:[%s10967_s3 + $0x18] sm:$0xff] }
 0x490   :  { %9952 = vmatpush3.xpose.msk.msra.mxu0 %vm277_vm1, %v1125_v18  ;;  %9955 = vmatprep.mubr.msk.f32.mxu0 %vm277_vm1, %v1119_v22 }
 0x491   :  { %9953 = vmatprep.subr.msk.mxu0 %vm277_vm1, %v1123_v23 }
 0x494   :  { %9954 = vmatpush3.xpose.msk.msra.mxu0 %vm277_vm1, %v1123_v23 }
 0x497   :  { %9956 = vmatmul.mubr.msk.f32.vlgmr.msra.gmra.mxu0 %vm277_vm1, %v1121_v24 }
 0x513   :  { %v9931_v25 = vpop.f32.mrf.mxu1 }
 0x515   :  { %v826_v11 = vpop.f32.mrf.mxu1 }
 0x547   :  { %v9926_v26 = vpop.f32.mrf.mxu0 }
 0x548   :  { %v11244_v27 = vadd.f32 %v9931_v25, %v9926_v26 }
 0x549   :  { %v11246_v28 = vpop.f32.mrf.mxu0 }
 0x54a   :  { %v827_v23 = vadd.f32 %v826_v11, %v11246_v28  ;;  %v1553_v11 = vld [vmem:[%s10997_s6 + $0x18] sm:$0xff] }
 0x54f   :  { %v9938_v29 = vpop.f32.mrf.mxu0 }
 0x550   :  { %v923_v30 = vadd.f32 %v9938_v29, %v11181_v19 }
 0x551   :  { %v917_v31 = vpop.f32.mrf.mxu0 }
 0x552   :  { %v918_v32 = vadd.f32 %v917_v31, %v11184_v21  ;;  %v929_v33 = vsel %vm363_vm2, %v923_v30, -inf  ;;  %v9194_v31 = vld [vmem:[%s10972_s8] ss:$0 sm:$0xff] }
 0x553   :  { %930 = vmax.xlane.f32.xlu1 %v929_v33 }
 0x554   :  { %v926_v34 = vsel %vm363_vm2, %v918_v32, -inf }
 0x555   :  { %927 = vmax.xlane.f32.xlu0 %v926_v34 }
 0x557   :  { %v9957_v35 = vpop.f32.mrf.mxu0 }
 0x558   :  { %v1206_v54 = vadd.f32 %v9957_v35, %v11181_v19 }
 0x559   :  { %v1200_v36 = vpop.f32.mrf.mxu0 }
 0x55a   :  { %v1201_v37 = vadd.f32 %v1200_v36, %v11184_v21  ;;  %v1212_v56 = vsel %vm363_vm2, %v1206_v54, -inf }
 0x55c   :  { %v1209_v38 = vsel %vm363_vm2, %v1201_v37, -inf }
 0x564   :  { %950 = vrot.lane.b32.xlu1 %v11144_v8, %s12242_s10 }
 0x588   :  { %1210 = vmax.xlane.f32.xlu1 %v1209_v38 }
 0x5dc   :  { %v931_v39 = vpop.xlane.xlu1 %930 }
 0x5dd   :  { %v933_v40 = vsub.f32 %v923_v30, %v931_v39 }
 0x5de   :  { %v928_v41 = vpop.xlane.xlu0 %927 }
 0x5df   :  { %v936_v42 = vmul.f32 1.442695, %v933_v40  ;;  %v932_v43 = vsub.f32 %v918_v32, %v928_v41 }
 0x5e0   :  { %v951_v44 = vpop.permute.xlu1 %950 }
 0x5e1   :  { %10627 = vpow2.f32 %v936_v42  ;;  %v934_v45 = vmul.f32 1.442695, %v932_v43  ;;  %9939 = vmatprep.subr.mxu1 %v951_v44 }
 0x5e2   :  { %9940 = vmatpush3.msra.mxu1 %v951_v44 }
 0x5e3   :  { %10629 = vpow2.f32 %v934_v45 }
 0x5ee   :  { %v10628_v46 = vpop.eup %10627 }
 0x5ef   :  { %v941_v47 = vsel %vm363_vm2, %v10628_v46, 0.0 }
 0x5f0   :  { %v10630_v48 = vpop.eup %10629  ;;  %942 = vadd.xlane.f32.xlu0 %v941_v47 }
 0x5f1   :  { %v938_v49 = vsel %vm363_vm2, %v10630_v48, 0.0 }
 0x5f4   :  { %939 = vadd.xlane.f32.xlu0 %v938_v49  ;;  %v1458_v49 = vld [vmem:[%s10987_s24 + $0x10] sm:$0xff] }
 0x60a   :  { %948 = vrot.lane.b32.xlu0 %v11146_v10, %s12242_s10 }
 0x611   :  { %v1211_v50 = vpop.xlane.xlu1 %1210 }
 0x612   :  { %v1215_v51 = vsub.f32 %v1201_v37, %v1211_v50  ;;  %v1457_v50 = vld [vmem:[%s10987_s24 + $0x8] sm:$0xff] }
 0x614   :  { %v1217_v52 = vmul.f32 1.442695, %v1215_v51  ;;  %v1456_v51 = vld [vmem:[%s10987_s24] sm:$0xff] }
 0x616   :  { %10631 = vpow2.f32 %v1217_v52  ;;  %v1557_v52 = vld [vmem:[%s10997_s6 + $0x38] sm:$0xff] }
 0x623   :  { %v10632_v53 = vpop.eup %10631 }
 0x624   :  { %v1221_v55 = vsel %vm363_vm2, %v10632_v53, 0.0 }
 0x625   :  { %1222 = vadd.xlane.f32.xlu1 %v1221_v55  ;;  %v1554_v55 = vld [vmem:[%s10997_s6 + $0x20] sm:$0xff] }
 0x629   :  { %1213 = vmax.xlane.f32.xlu0 %v1212_v56 }
 0x636   :  { %1233 = vrot.lane.b32.xlu1 %v11144_v8, %s12240_s11 }
 0x679   :  { %v943_v57 = vpop.xlane.xlu0 %942 }
 0x67a   :  { %10633 = vrcp.f32 %v943_v57 }
 0x67d   :  { %v940_v58 = vpop.xlane.xlu0 %939 }
 0x67e   :  { %10635 = vrcp.f32 %v940_v58 }
 0x681   :  { %v949_v59 = vpop.permute.xlu0 %948 }
 0x682   :  { %9941 = vmatprep.subr.mxu1 %v949_v59 }
 0x683   :  { %9942 = vmatpush3.msra.mxu1 %v949_v59 }
 0x684   :  { %9946 = vmatprep.subr.mxu1 %v266_v60 }
 0x687   :  { %v10634_v61 = vpop.eup %10633 }
 0x688   :  { %v947_v0 = vmul.f32 %v10634_v61, %v10628_v46 }
 0x68b   :  { %v10636_v62 = vpop.eup %10635 }
 0x68c   :  { %v945_v63 = vmul.f32 %v10636_v62, %v10630_v48  ;;  %v1459_v48 = vld [vmem:[%s10987_s24 + $0x18] sm:$0xff] }
 0x68d   :  { %9970 = vmatprep.subr.mxu0 %v1459_v48 }
 0x68e   :  { %9943 = vmatprep.mubr.msk.f32.mxu1 %vm363_vm2, %v945_v63  ;;  %9971 = vmatpush3.msra.mxu0 %v1459_v48  ;;  %v9195_v63 = vld [vmem:[%s10977_s14] ss:$0 sm:$0xff] }
 0x68f   :  { %9944 = vmatmul.mubr.msk.f32.vlgmr.msra.gmra.mxu1 %vm363_vm2, %v947_v0  ;;  %9972 = vmatprep.subr.mxu0 %v1458_v49 }
 0x690   :  { %9947 = vmatpush3.msra.mxu1 %v266_v60  ;;  %9973 = vmatpush3.msra.mxu0 %v1458_v49 }
 0x691   :  { %9974 = vmatprep.subr.mxu0 %v1457_v50 }
 0x692   :  { %9975 = vmatpush3.msra.mxu0 %v1457_v50 }
 0x693   :  { %9976 = vmatprep.subr.mxu0 %v1456_v51 }
 0x694   :  { %9977 = vmatpush3.msra.mxu0 %v1456_v51  ;;  %v9203_v51 = vld [vmem:[%s11007_s20] ss:$0 sm:$0xff] }
 0x6ae   :  { %v1223_v1 = vpop.xlane.xlu1 %1222 }
 0x6b2   :  { %v1214_v8 = vpop.xlane.xlu0 %1213  ;;  %v1234_v3 = vpop.permute.xlu1 %1233 }
 0x6b3   :  { %v1216_v4 = vsub.f32 %v1206_v54, %v1214_v8  ;;  %9958 = vmatprep.subr.mxu1 %v1234_v3  ;;  %v1555_v54 = vld [vmem:[%s10997_s6 + $0x28] sm:$0xff] }
 0x6b5   :  { %v1219_v6 = vmul.f32 1.442695, %v1216_v4  ;;  %v9196_v4 = vld [vmem:[%s10982_s19] ss:$0 sm:$0xff] }
 0x6b7   :  { %10637 = vpow2.f32 %v1219_v6 }
 0x6b8   :  { %10639 = vrcp.f32 %v1223_v1 }
 0x6c4   :  { %v10638_v7 = vpop.eup %10637 }
 0x6c5   :  { %v1224_v9 = vsel %vm363_vm2, %v10638_v7, 0.0  ;;  %v10640_v12 = vpop.eup %10639 }
 0x6c6   :  { %1225 = vadd.xlane.f32.xlu0 %v1224_v9  ;;  %v1228_v16 = vmul.f32 %v10640_v12, %v10632_v53  ;;  %v1556_v53 = vld [vmem:[%s10997_s6 + $0x30] sm:$0xff] }
 0x6c7   :  { %v1552_v12 = vld [vmem:[%s10997_s6 + $0x10] sm:$0xff] }
 0x6dc   :  { %1231 = vrot.lane.b32.xlu0 %v11146_v10, %s12240_s11 }
 0x74f   :  { %v1226_v13 = vpop.xlane.xlu0 %1225  ;;  %v9945_v14 = vpop.f32.mrf.mxu1 }
 0x750   :  { %10641 = vrcp.f32 %v1226_v13  ;;  %v1551_v13 = vld [vmem:[%s10997_s6 + $0x8] sm:$0xff] }
 0x751   :  { %v1026_v15 = vpop.f32.mrf.mxu1 }
 0x752   :  { %9948 = vmatprep.mubr.msk.f32.mxu1 %vm277_vm1, %v1026_v15  ;;  %v9197_v15 = vld [vmem:[%s10992_s30] ss:$0 sm:$0xff] }
 0x753   :  { %v1232_v17 = vpop.permute.xlu0 %1231  ;;  %9949 = vmatmul.mubr.msk.f32.vlgmr.msra.gmra.mxu1 %vm277_vm1, %v9945_v14  ;;  %v1550_v14 = vld [vmem:[%s10997_s6] sm:$0xff] }
 0x754   :  { %9959 = vmatpush3.msra.mxu1 %v1234_v3  ;;  %9962 = vmatprep.mubr.msk.f32.mxu1 %vm363_vm2, %v1228_v16 }
 0x755   :  { %9960 = vmatprep.subr.mxu1 %v1232_v17 }
 0x756   :  { %9961 = vmatpush3.msra.mxu1 %v1232_v17 }
 0x757   :  { %9965 = vmatprep.subr.mxu1 %v267_v20 }
 0x75d   :  { %v10642_v10 = vpop.eup %10641 }
 0x75e   :  { %v1230_v18 = vmul.f32 %v10642_v10, %v10638_v7 }
 0x760   :  { %9963 = vmatmul.mubr.msk.f32.vlgmr.msra.gmra.mxu1 %vm363_vm2, %v1230_v18 }
 0x761   :  { %9966 = vmatpush3.msra.mxu1 %v267_v20 }
 0x762   :  { %9981 = vmatprep.subr.mxu1 %v1557_v52 }
 0x813   :  { %v9950_v22 = vpop.f32.mrf.mxu1 }
 0x814   :  { %v1117_v24 = vadd.f32 %v9950_v22, %v11244_v27 }
 0x815   :  { %v1107_v25 = vpop.f32.mrf.mxu1 }
 0x816   :  { %v1116_v26 = vadd.f32 %v1107_v25, %v827_v23  ;;  %v9200_v23 = vld [vmem:[%s11002_s12] ss:$0 sm:$0xff] }
 0x820   :  { %v9964_v29 = vpop.f32.mrf.mxu1 }
 0x822   :  { %v1309_v30 = vpop.f32.mrf.mxu1 }
 0x823   :  { %9967 = vmatprep.mubr.msk.f32.mxu1 %vm277_vm1, %v1309_v30 }
 0x824   :  { %9968 = vmatmul.mubr.msk.f32.vlgmr.msra.gmra.mxu1 %vm277_vm1, %v9964_v29 }
 0x825   :  { %9982 = vmatpush3.msra.mxu1 %v1557_v52 }
 0x826   :  { %9983 = vmatprep.subr.mxu1 %v1556_v53 }
 0x827   :  { %9984 = vmatpush3.msra.mxu1 %v1556_v53 }
 0x828   :  { %9985 = vmatprep.subr.mxu1 %v1555_v54 }
 0x829   :  { %9986 = vmatpush3.msra.mxu1 %v1555_v54 }
 0x82a   :  { %9987 = vmatprep.subr.mxu1 %v1554_v55 }
 0x82b   :  { %9988 = vmatpush3.msra.mxu1 %v1554_v55 }
 0x82c   :  { %9989 = vmatprep.subr.mxu1 %v1553_v11 }
 0x82d   :  { %9990 = vmatpush3.msra.mxu1 %v1553_v11 }
 0x82e   :  { %9991 = vmatprep.subr.mxu1 %v1552_v12 }
 0x82f   :  { %9992 = vmatpush3.msra.mxu1 %v1552_v12 }
 0x830   :  { %9993 = vmatprep.subr.mxu1 %v1551_v13 }
 0x831   :  { %9994 = vmatpush3.msra.mxu1 %v1551_v13 }
 0x832   :  { %9995 = vmatprep.subr.mxu1 %v1550_v14 }
 0x833   :  { %9996 = vmatpush3.msra.mxu1 %v1550_v14 }
 0x8e4   :  { %v9969_v32 = vpop.f32.mrf.mxu1 }
 0x8e5   :  { %v1400_v33 = vadd.f32 %v9969_v32, %v1117_v24 }
 0x8e6   :  { %v1390_v34 = vpop.f32.mrf.mxu1 }
 0x8e7   :  { %v1408_v35 = vadd.f32 %v9194_v31, %v1400_v33  ;;  %v1399_v36 = vadd.f32 %v1390_v34, %v1116_v26 }
 0x8e9   :  { %v1407_v37 = vadd.f32 %v9194_v31, %v1399_v36  ;;  %v1410_v38 = vadd.f32 %v1408_v35, %v11139_v5 }
 0x8eb   :  { %v1416_v28 = vsel %vm182_vm0, %v1410_v38, 0.0  ;;  %v1409_v27 = vadd.f32 %v1407_v37, %v11132_v2 }
 0x8ec   :  { %1417 = vadd.xlane.f32.xlu0 %v1416_v28 }
 0x8ed   :  { %v1413_v39 = vsel %vm182_vm0, %v1409_v27, 0.0 }
 0x8ee   :  { %1414 = vadd.xlane.f32.xlu1 %v1413_v39 }
 0x975   :  { %v1418_v40 = vpop.xlane.xlu0 %1417 }
 0x976   :  { %v1421_v41 = vmul.f32 0.03125, %v1418_v40 }
 0x977   :  { %v1415_v42 = vpop.xlane.xlu1 %1414 }
 0x978   :  { %v1423_v43 = vsub.f32 %v1410_v38, %v1421_v41  ;;  %v1420_v44 = vmul.f32 0.03125, %v1415_v42  ;;  %v9208_v42 = vld [vmem:[%s10957_s25 + $0x38] sm:$0xff] }
 0x979   :  { %10000 = vmatprep.subr.mxu0 %v9208_v42 }
 0x97a   :  { %v1422_v45 = vsub.f32 %v1409_v27, %v1420_v44  ;;  %v1425_v46 = vmul.f32 %v1423_v43, %v1423_v43  ;;  %v9206_v44 = vld [vmem:[%s10957_s25 + $0x28] sm:$0xff] }
 0x97c   :  { %v1429_v5 = vsel %vm182_vm0, %v1425_v46, 0.0  ;;  %v1424_v47 = vmul.f32 %v1422_v45, %v1422_v45 }
 0x97d   :  { %1430 = vadd.xlane.f32.xlu0 %v1429_v5 }
 0x97e   :  { %v1426_v2 = vsel %vm182_vm0, %v1424_v47, 0.0 }
 0x97f   :  { %1427 = vadd.xlane.f32.xlu1 %v1426_v2 }
 0xa06   :  { %v1431_v56 = vpop.xlane.xlu0 %1430 }
 0xa07   :  { %v1433_v57 = vmul.f32 0.03125, %v1431_v56  ;;  %v9204_v56 = vld [vmem:[%s11012_s27] ss:$0 sm:$0xff] }
 0xa08   :  { %v1428_v58 = vpop.xlane.xlu1 %1427 }
 0xa09   :  { %v1435_v59 = vadd.f32 1e-05, %v1433_v57  ;;  %v1432_v60 = vmul.f32 0.03125, %v1428_v58 }
 0xa0b   :  { %10643 = vrsqrt.f32 %v1435_v59  ;;  %v1434_v61 = vadd.f32 1e-05, %v1432_v60  ;;  %v9210_v60 = vld [vmem:[%s10962_s29 + $0x1] ss:$0 sm:$0xff]  ;;  %s12274_s29 = sld [smem:[#allocation9_spill]] }
 0xa0d   :  { %10645 = vrsqrt.f32 %v1434_v61 }
 0xa18   :  { %v10644_v62 = vpop.eup %10643 }
 0xa19   :  { %v1439_v0 = vmul.f32 %v10644_v62, %v1423_v43  ;;  %v9207_v43 = vld [vmem:[%s10957_s25 + $0x30] sm:$0xff] }
 0xa1a   :  { %v10646_v1 = vpop.eup %10645 }
 0xa1b   :  { %v1438_v8 = vmul.f32 %v10646_v1, %v1422_v45  ;;  %v1447_v3 = vmul.f32 %v9195_v63, %v1439_v0  ;;  %v9205_v45 = vld [vmem:[%s10957_s25 + $0x20] sm:$0xff]  ;;  %s12273_s25 = sld [smem:[#allocation5_spill]] }
 0xa1d   :  { %v1446_v6 = vmul.f32 %v9195_v63, %v1438_v8  ;;  %v1455_v9 = vadd.f32 %v9196_v4, %v1447_v3 }
 0xa1f   :  { %v1454_v7 = vadd.f32 %v9196_v4, %v1446_v6 }
 0xa21   :  { %9978 = vmatprep.mubr.msk.f32.mxu0 %vm182_vm0, %v1454_v7 }
 0xa22   :  { %9979 = vmatmul.mubr.msk.f32.vlgmr.msra.gmra.mxu0 %vm182_vm0, %v1455_v9 }
 0xa23   :  { %10001 = vmatpush3.msra.mxu0 %v9208_v42 }
 0xa24   :  { %10002 = vmatprep.subr.mxu0 %v9207_v43 }
 0xa25   :  { %10003 = vmatpush3.msra.mxu0 %v9207_v43 }
 0xa26   :  { %10004 = vmatprep.subr.mxu0 %v9206_v44 }
 0xa27   :  { %10005 = vmatpush3.msra.mxu0 %v9206_v44 }
 0xa28   :  { %10006 = vmatprep.subr.mxu0 %v9205_v45 }
 0xa29   :  { %10007 = vmatpush3.msra.mxu0 %v9205_v45 }
 0xae2   :  { %v9980_v16 = vpop.f32.mrf.mxu0 }
 0xae3   :  { %v1545_v17 = vadd.f32 %v9980_v16, %v9197_v15 }
 0xae4   :  { %v1539_v10 = vpop.f32.mrf.mxu0 }
 0xae5   :  { %v1540_v18 = vadd.f32 %v9197_v15, %v1539_v10  ;;  %v1549_v22 = vmax.f32 %v1545_v17, 0.0 }
 0xae7   :  { %v1548_v20 = vmax.f32 %v1540_v18, 0.0 }
 0xae9   :  { %9997 = vmatprep.mubr.msk.f32.mxu1 %vm1565_vm3, %v1548_v20 }
 0xaea   :  { %9998 = vmatmul.mubr.msk.f32.vlgmr.msra.gmra.mxu1 %vm1565_vm3, %v1549_v22 }
 0xbaa   :  { %v9999_v24 = vpop.f32.mrf.mxu1 }
 0xbab   :  { %v1644_v25 = vadd.f32 %v9999_v24, %v9200_v23 }
 0xbac   :  { %v1638_v26 = vpop.f32.mrf.mxu1 }
 0xbad   :  { %v1639_v29 = vadd.f32 %v9200_v23, %v1638_v26  ;;  %v1648_v30 = vadd.f32 %v1644_v25, %v1455_v9 }
 0xbaf   :  { %v1654_v31 = vsel %vm182_vm0, %v1648_v30, 0.0  ;;  %v1647_v32 = vadd.f32 %v1639_v29, %v1454_v7 }
 0xbb0   :  { %1655 = vadd.xlane.f32.xlu0 %v1654_v31 }
 0xbb1   :  { %v1651_v33 = vsel %vm182_vm0, %v1647_v32, 0.0 }
 0xbb2   :  { %1652 = vadd.xlane.f32.xlu1 %v1651_v33 }
 0xc39   :  { %v1656_v34 = vpop.xlane.xlu0 %1655 }
 0xc3a   :  { %v1658_v35 = vmul.f32 0.03125, %v1656_v34 }
 0xc3b   :  { %v1653_v36 = vpop.xlane.xlu1 %1652 }
 0xc3c   :  { %v1660_v37 = vsub.f32 %v1648_v30, %v1658_v35  ;;  %v1657_v38 = vmul.f32 0.03125, %v1653_v36 }
 0xc3e   :  { %v1659_v28 = vsub.f32 %v1647_v32, %v1657_v38  ;;  %v1662_v27 = vmul.f32 %v1660_v37, %v1660_v37 }
 0xc40   :  { %v1666_v39 = vsel %vm182_vm0, %v1662_v27, 0.0  ;;  %v1661_v40 = vmul.f32 %v1659_v28, %v1659_v28 }
 0xc41   :  { %1667 = vadd.xlane.f32.xlu0 %v1666_v39 }
 0xc42   :  { %v1663_v41 = vsel %vm182_vm0, %v1661_v40, 0.0 }
 0xc43   :  { %1664 = vadd.xlane.f32.xlu1 %v1663_v41 }
 0xcca   :  { %v1668_v46 = vpop.xlane.xlu0 %1667 }
 0xccb   :  { %v1670_v5 = vmul.f32 0.03125, %v1668_v46 }
 0xccc   :  { %v1665_v47 = vpop.xlane.xlu1 %1664 }
 0xccd   :  { %v1672_v2 = vadd.f32 1e-05, %v1670_v5  ;;  %v1669_v48 = vmul.f32 0.03125, %v1665_v47 }
 0xccf   :  { %10647 = vrsqrt.f32 %v1672_v2  ;;  %v1671_v49 = vadd.f32 1e-05, %v1669_v48 }
 0xcd1   :  { %10649 = vrsqrt.f32 %v1671_v49 }
 0xcdc   :  { %v10648_v50 = vpop.eup %10647 }
 0xcdd   :  { %v1676_v52 = vmul.f32 %v10648_v50, %v1660_v37 }
 0xcde   :  { %v10650_v53 = vpop.eup %10649 }
 0xcdf   :  { %v1675_v54 = vmul.f32 %v10650_v53, %v1659_v28  ;;  %v1684_v55 = vmul.f32 %v9203_v51, %v1676_v52  ;;  %v9213_v28 = vld [vmem:[%s10967_s3 + $0x20] sm:$0xff] }
 0xce1   :  { %v1683_v57 = vmul.f32 %v9203_v51, %v1675_v54  ;;  %v11319_v59 = vadd.f32 %v9204_v56, %v1684_v55 }
 0xce3   :  { %v11317_v58 = vadd.f32 %v9204_v56, %v1683_v57  ;;  %v9214_v56 = vld [vmem:[%s10967_s3 + $0x28] sm:$0xff] }
 0xce5   :  { %10008 = vmatprep.mubr.msk.f32.mxu0 %vm182_vm0, %v11317_v58 }
 0xce6   :  { %10009 = vmatmul.mubr.msk.f32.vlgmr.msra.gmra.mxu0 %vm182_vm0, %v11319_v59 }
 0xda6   :  { %v10010_v61 = vpop.f32.mrf.mxu0 }
 0xda7   :  { %v11326_v62 = vadd.f32 %v10010_v61, %v9210_v60 }
 0xda8   :  { %v1778_v63 = vpop.f32.mrf.mxu0 }
 0xda9   :  { %v11328_v0 = vadd.f32 %v9210_v60, %v1778_v63  ;;  %1800 = vrot.lane.b32.xlu1 %v11326_v62, %s10911_s22  ;;  %v11344_v4 = vmul.f32 0.35355338, %v11326_v62 }
 0xdab   :  { %1798 = vrot.lane.b32.xlu0 %v11328_v0, %s10911_s22  ;;  %v11335_v1 = vmul.f32 0.35355338, %v11328_v0 }
 0xdad   :  { %10015 = vmatprep.mubr.msk.f32.mxu0 %vm277_vm1, %v11335_v1 }
 0xe1b   :  { %v1801_v8 = vpop.permute.xlu1 %1800 }
 0xe1c   :  { %10011 = vmatprep.subr.msk.mxu0 %vm277_vm1, %v1801_v8 }
 0xe1d   :  { %10012 = vmatpush3.xpose.msk.msra.mxu0 %vm277_vm1, %v1801_v8  ;;  %v1799_v3 = vpop.permute.xlu0 %1798 }
 0xe1e   :  { %10013 = vmatprep.subr.msk.mxu0 %vm277_vm1, %v1799_v3 }
 0xe21   :  { %10014 = vmatpush3.xpose.msk.msra.mxu0 %vm277_vm1, %v1799_v3 }
 0xe24   :  { %10016 = vmatmul.mubr.msk.f32.vlgmr.msra.gmra.mxu0 %vm277_vm1, %v11344_v4 }
 0xee4   :  { %v10017_v6 = vpop.f32.mrf.mxu0 }
 0xee5   :  { %v1884_v7 = vadd.f32 %v10017_v6, %v11181_v19 }
 0xee6   :  { %v1878_v9 = vpop.f32.mrf.mxu0 }
 0xee7   :  { %v1879_v11 = vadd.f32 %v1878_v9, %v11184_v21  ;;  %v1890_v12 = vsel %vm363_vm2, %v1884_v7, -inf }
 0xee8   :  { %1891 = vmax.xlane.f32.xlu0 %v1890_v12 }
 0xee9   :  { %v1887_v13 = vsel %vm363_vm2, %v1879_v11, -inf }
 0xeea   :  { %1888 = vmax.xlane.f32.xlu1 %v1887_v13 }
 0xefb   :  { %1911 = vrot.lane.b32.xlu1 %v11326_v62, %s10913_s23 }
 0xeff   :  { %2002 = vrot.lane.b32.xlu1 %v11326_v62, %s10910_s0 }
 0xf03   :  { %2000 = vrot.lane.b32.xlu1 %v11328_v0, %s10910_s0 }
 0xf71   :  { %v1892_v14 = vpop.xlane.xlu0 %1891 }
 0xf72   :  { %v1894_v15 = vsub.f32 %v1884_v7, %v1892_v14 }
 0xf73   :  { %v1889_v16 = vpop.xlane.xlu1 %1888 }
 0xf74   :  { %v1897_v17 = vmul.f32 1.442695, %v1894_v15  ;;  %v1893_v10 = vsub.f32 %v1879_v11, %v1889_v16 }
 0xf76   :  { %10651 = vpow2.f32 %v1897_v17  ;;  %v1895_v18 = vmul.f32 1.442695, %v1893_v10  ;;  %v10843_v17 = vld [vmem:[%s10942_s13 + $0x8] sm:$0xff] }
 0xf77   :  { %v1912_v20 = vpop.permute.xlu1 %1911 }
 0xf78   :  { %10653 = vpow2.f32 %v1895_v18  ;;  %10018 = vmatprep.subr.mxu1 %v1912_v20 }
 0xf79   :  { %10019 = vmatpush3.msra.mxu1 %v1912_v20  ;;  %v10844_v20 = vld [vmem:[%s10942_s13] sm:$0xff]  ;;  %s12272_s13 = sld [smem:[#allocation8_spill]] }
 0xf7b   :  { %v2003_v26 = vpop.permute.xlu1 %2002 }
 0xf7f   :  { %v2001_v29 = vpop.permute.xlu1 %2000 }
 0xf83   :  { %v10652_v22 = vpop.eup %10651 }
 0xf84   :  { %v1902_v23 = vsel %vm363_vm2, %v10652_v22, 0.0 }
 0xf85   :  { %v10654_v24 = vpop.eup %10653  ;;  %1903 = vadd.xlane.f32.xlu0 %v1902_v23 }
 0xf86   :  { %v1899_v25 = vsel %vm363_vm2, %v10654_v24, 0.0 }
 0xf87   :  { %1900 = vadd.xlane.f32.xlu1 %v1899_v25 }
 0xf98   :  { %1998 = vrot.lane.b32.xlu1 %v11344_v4, %s10912_s5 }
 0xf9b   :  { %1909 = vrot.lane.b32.xlu0 %v11328_v0, %s10913_s23 }
 0xf9f   :  { %1996 = vrot.lane.b32.xlu0 %v11335_v1, %s10912_s5 }
0x100e   :  { %v1904_v30 = vpop.xlane.xlu0 %1903 }
0x100f   :  { %10655 = vrcp.f32 %v1904_v30 }
0x1010   :  { %v1901_v31 = vpop.xlane.xlu1 %1900 }
0x1011   :  { %10657 = vrcp.f32 %v1901_v31 }
0x1012   :  { %v1910_v32 = vpop.permute.xlu0 %1909 }
0x1013   :  { %10020 = vmatprep.subr.mxu1 %v1910_v32 }
0x1014   :  { %10021 = vmatpush3.msra.mxu1 %v1910_v32  ;;  %v1999_v38 = vpop.permute.xlu1 %1998 }
0x1015   :  { %10025 = vmatprep.subr.msk.mxu1 %vm277_vm1, %v2003_v26 }
0x1016   :  { %v1997_v37 = vpop.permute.xlu0 %1996 }
0x101c   :  { %v10656_v33 = vpop.eup %10655 }
0x101d   :  { %v1908_v36 = vmul.f32 %v10656_v33, %v10652_v22 }
0x101e   :  { %v10658_v34 = vpop.eup %10657 }
0x101f   :  { %v1906_v35 = vmul.f32 %v10658_v34, %v10654_v24 }
0x1021   :  { %10022 = vmatprep.mubr.msk.f32.mxu1 %vm363_vm2, %v1906_v35 }
0x1022   :  { %10023 = vmatmul.mubr.msk.f32.vlgmr.msra.gmra.mxu1 %vm363_vm2, %v1908_v36 }
0x1023   :  { %10026 = vmatpush3.xpose.msk.msra.mxu1 %vm277_vm1, %v2003_v26  ;;  %10029 = vmatprep.mubr.msk.f32.mxu1 %vm277_vm1, %v1997_v37 }
0x1024   :  { %10027 = vmatprep.subr.msk.mxu1 %vm277_vm1, %v2001_v29 }
0x1027   :  { %10028 = vmatpush3.xpose.msk.msra.mxu1 %vm277_vm1, %v2001_v29 }
0x1028   :  { %10044 = vmatprep.subr.mxu1 %v9213_v28 }
0x102a   :  { %10030 = vmatmul.mubr.msk.f32.vlgmr.msra.gmra.mxu1 %vm277_vm1, %v1999_v38 }
0x102b   :  { %10045 = vmatpush3.msra.mxu1 %v9213_v28 }
0x10e2   :  { %v10024_v27 = vpop.f32.mrf.mxu1 }
0x10e4   :  { %v1987_v39 = vpop.f32.mrf.mxu1 }
0x10e5   :  { %10046 = vmatprep.mubr.msk.f32.mxu1 %vm277_vm1, %v1987_v39 }
0x10e6   :  { %10047 = vmatmul.mubr.msk.f32.vlgmr.msra.gmra.mxu1 %vm277_vm1, %v10024_v27 }
0x10ea   :  { %v10031_v40 = vpop.f32.mrf.mxu1 }
0x10eb   :  { %v2084_v41 = vadd.f32 %v10031_v40, %v11181_v19 }
0x10ec   :  { %v2078_v42 = vpop.f32.mrf.mxu1 }
0x10ed   :  { %v2079_v43 = vadd.f32 %v2078_v42, %v11184_v21  ;;  %v2090_v44 = vsel %vm363_vm2, %v2084_v41, -inf }
0x10ee   :  { %2091 = vmax.xlane.f32.xlu1 %v2090_v44 }
0x10ef   :  { %v2087_v45 = vsel %vm363_vm2, %v2079_v43, -inf }
0x10f0   :  { %2088 = vmax.xlane.f32.xlu0 %v2087_v45 }
0x10ff   :  { %2111 = vrot.lane.b32.xlu1 %v11326_v62, %s10914_s26 }
0x1103   :  { %2364 = vrot.lane.b32.xlu1 %v11326_v62, %s10915_s28 }
0x1107   :  { %2362 = vrot.lane.b32.xlu1 %v11328_v0, %s10915_s28 }
0x110b   :  { %2360 = vrot.lane.b32.xlu1 %v11344_v4, %s12248_s1 }
0x110f   :  { %2645 = vrot.lane.b32.xlu1 %v11328_v0, %s12246_s2 }
0x1113   :  { %2643 = vrot.lane.b32.xlu1 %v11344_v4, %s12244_s7 }
0x1177   :  { %v2092_v19 = vpop.xlane.xlu1 %2091 }
0x1178   :  { %v2094_v21 = vsub.f32 %v2084_v41, %v2092_v19 }
0x1179   :  { %v2089_v46 = vpop.xlane.xlu0 %2088 }
0x117a   :  { %v2097_v5 = vmul.f32 1.442695, %v2094_v21  ;;  %v2093_v47 = vsub.f32 %v2079_v43, %v2089_v46 }
0x117b   :  { %v2112_v2 = vpop.permute.xlu1 %2111 }
0x117c   :  { %10659 = vpow2.f32 %v2097_v5  ;;  %v2095_v48 = vmul.f32 1.442695, %v2093_v47  ;;  %10032 = vmatprep.subr.mxu0 %v2112_v2  ;;  %v9215_v47 = vld [vmem:[%s10967_s3 + $0x30] sm:$0xff] }
0x117d   :  { %10033 = vmatpush3.msra.mxu0 %v2112_v2 }
0x117e   :  { %10661 = vpow2.f32 %v2095_v48 }
0x117f   :  { %v2365_v8 = vpop.permute.xlu1 %2364 }
0x1183   :  { %v2363_v4 = vpop.permute.xlu1 %2362 }
0x1187   :  { %v2361_v9 = vpop.permute.xlu1 %2360 }
0x1189   :  { %v10660_v49 = vpop.eup %10659 }
0x118a   :  { %v2102_v50 = vsel %vm363_vm2, %v10660_v49, 0.0 }
0x118b   :  { %v10662_v51 = vpop.eup %10661  ;;  %2103 = vadd.xlane.f32.xlu0 %v2102_v50  ;;  %v2646_v12 = vpop.permute.xlu1 %2645 }
0x118c   :  { %v2099_v52 = vsel %vm363_vm2, %v10662_v51, 0.0 }
0x118f   :  { %2100 = vadd.xlane.f32.xlu0 %v2099_v52  ;;  %v2644_v13 = vpop.permute.xlu1 %2643 }
0x11a5   :  { %2109 = vrot.lane.b32.xlu0 %v11328_v0, %s10914_s26 }
0x11a9   :  { %2358 = vrot.lane.b32.xlu0 %v11335_v1, %s12248_s1 }
0x11ad   :  { %2647 = vrot.lane.b32.xlu0 %v11326_v62, %s12246_s2 }
0x11b1   :  { %2641 = vrot.lane.b32.xlu0 %v11335_v1, %s12244_s7 }
0x1214   :  { %v2104_v53 = vpop.xlane.xlu0 %2103 }
0x1215   :  { %10663 = vrcp.f32 %v2104_v53 }
0x1218   :  { %v2101_v54 = vpop.xlane.xlu0 %2100 }
0x1219   :  { %10665 = vrcp.f32 %v2101_v54 }
0x121c   :  { %v2110_v55 = vpop.permute.xlu0 %2109 }
0x121d   :  { %10034 = vmatprep.subr.mxu0 %v2110_v55 }
0x121e   :  { %10035 = vmatpush3.msra.mxu0 %v2110_v55 }
0x121f   :  { %10039 = vmatprep.subr.mxu0 %v9214_v56 }
0x1220   :  { %v2359_v1 = vpop.permute.xlu0 %2358 }
0x1222   :  { %v10664_v57 = vpop.eup %10663 }
0x1223   :  { %v2108_v63 = vmul.f32 %v10664_v57, %v10660_v49  ;;  %v10048_v57 = vpop.f32.mrf.mxu1 }
0x1224   :  { %v2648_v7 = vpop.permute.xlu0 %2647 }
0x1226   :  { %v10666_v60 = vpop.eup %10665 }
0x1227   :  { %v2106_v61 = vmul.f32 %v10666_v60, %v10662_v51  ;;  %v2349_v60 = vpop.f32.mrf.mxu1 }
0x1228   :  { %v2642_v11 = vpop.permute.xlu0 %2641 }
0x1229   :  { %10036 = vmatprep.mubr.msk.f32.mxu0 %vm363_vm2, %v2106_v61 }
0x122a   :  { %10037 = vmatmul.mubr.msk.f32.vlgmr.msra.gmra.mxu0 %vm363_vm2, %v2108_v63 }
0x122b   :  { %10040 = vmatpush3.msra.mxu0 %v9214_v56 }
0x122c   :  { %10049 = vmatprep.subr.msk.mxu0 %vm277_vm1, %v2365_v8 }
0x12ea   :  { %v10038_v3 = vpop.f32.mrf.mxu0 }
0x12ec   :  { %v2187_v6 = vpop.f32.mrf.mxu0 }
0x12ed   :  { %10041 = vmatprep.mubr.msk.f32.mxu0 %vm277_vm1, %v2187_v6 }
0x12ee   :  { %10042 = vmatmul.mubr.msk.f32.vlgmr.msra.gmra.mxu0 %vm277_vm1, %v10038_v3 }
0x12ef   :  { %10050 = vmatpush3.xpose.msk.msra.mxu0 %vm277_vm1, %v2365_v8  ;;  %10053 = vmatprep.mubr.msk.f32.mxu0 %vm277_vm1, %v2359_v1 }
0x12f0   :  { %10051 = vmatprep.subr.msk.mxu0 %vm277_vm1, %v2363_v4 }
0x12f3   :  { %10052 = vmatpush3.xpose.msk.msra.mxu0 %vm277_vm1, %v2363_v4 }
0x12f4   :  { %10068 = vmatprep.subr.msk.mxu0 %vm277_vm1, %v2648_v7 }
0x12f6   :  { %10054 = vmatmul.mubr.msk.f32.vlgmr.msra.gmra.mxu0 %vm277_vm1, %v2361_v9 }
0x12f7   :  { %10069 = vmatpush3.xpose.msk.msra.mxu0 %vm277_vm1, %v2648_v7  ;;  %10072 = vmatprep.mubr.msk.f32.mxu0 %vm277_vm1, %v2642_v11  ;;  %v9216_v7 = vld [vmem:[%s10967_s3 + $0x38] sm:$0xff]  ;;  %s12275_s3 = sld [smem:[#allocation6_spill]] }
0x12f8   :  { %10070 = vmatprep.subr.msk.mxu0 %vm277_vm1, %v2646_v12 }
0x12fb   :  { %10071 = vmatpush3.xpose.msk.msra.mxu0 %vm277_vm1, %v2646_v12 }
0x12fe   :  { %10073 = vmatmul.mubr.msk.f32.vlgmr.msra.gmra.mxu0 %vm277_vm1, %v2644_v13 }
0x13ae   :  { %v11420_v14 = vpop.f32.mrf.mxu0 }
0x13af   :  { %v2355_v9 = vadd.f32 %v10048_v57, %v11420_v14 }
0x13b0   :  { %v11422_v15 = vpop.f32.mrf.mxu0 }
0x13b1   :  { %v2350_v12 = vadd.f32 %v2349_v60, %v11422_v15  ;;  %v11477_v60 = vld [vmem:[%s12273_s25] sm:$0xff] }
0x13b6   :  { %v10055_v16 = vpop.f32.mrf.mxu0 }
0x13b7   :  { %v2446_v10 = vadd.f32 %v10843_v17, %v10055_v16 }
0x13b8   :  { %v2440_v18 = vpop.f32.mrf.mxu0 }
0x13b9   :  { %v2441_v22 = vadd.f32 %v10844_v20, %v2440_v18  ;;  %v2452_v23 = vsel %vm363_vm2, %v2446_v10, -inf }
0x13ba   :  { %2453 = vmax.xlane.f32.xlu1 %v2452_v23 }
0x13bb   :  { %v2449_v24 = vsel %vm363_vm2, %v2441_v22, -inf }
0x13bc   :  { %2450 = vmax.xlane.f32.xlu0 %v2449_v24 }
0x13be   :  { %v10074_v25 = vpop.f32.mrf.mxu0 }
0x13bf   :  { %v2729_v44 = vadd.f32 %v10843_v17, %v10074_v25 }
0x13c0   :  { %v2723_v26 = vpop.f32.mrf.mxu0 }
0x13c1   :  { %v2724_v29 = vadd.f32 %v10844_v20, %v2723_v26  ;;  %v2735_v19 = vsel %vm363_vm2, %v2729_v44, -inf  ;;  %v9250_v20 = vld [vmem:[%s10972_s8 + $0x1] ss:$0 sm:$0xff]  ;;  %s12276_s8 = sld [smem:[#allocation10_spill]] }
0x13c3   :  { %v2732_v30 = vsel %vm363_vm2, %v2724_v29, -inf }
0x13cb   :  { %2473 = vrot.lane.b32.xlu1 %v11326_v62, %s12242_s10 }
0x13ef   :  { %2733 = vmax.xlane.f32.xlu1 %v2732_v30 }
0x1443   :  { %v2454_v31 = vpop.xlane.xlu1 %2453 }
0x1444   :  { %v2456_v32 = vsub.f32 %v2446_v10, %v2454_v31 }
0x1445   :  { %v2451_v33 = vpop.xlane.xlu0 %2450 }
0x1446   :  { %v2459_v34 = vmul.f32 1.442695, %v2456_v32  ;;  %v2455_v35 = vsub.f32 %v2441_v22, %v2451_v33 }
0x1447   :  { %v2474_v36 = vpop.permute.xlu1 %2473 }
0x1448   :  { %10667 = vpow2.f32 %v2459_v34  ;;  %v2457_v37 = vmul.f32 1.442695, %v2455_v35  ;;  %10056 = vmatprep.subr.mxu1 %v2474_v36 }
0x1449   :  { %10057 = vmatpush3.msra.mxu1 %v2474_v36 }
0x144a   :  { %10669 = vpow2.f32 %v2457_v37 }
0x1455   :  { %v10668_v38 = vpop.eup %10667 }
0x1456   :  { %v2464_v28 = vsel %vm363_vm2, %v10668_v38, 0.0 }
0x1457   :  { %v10670_v27 = vpop.eup %10669  ;;  %2465 = vadd.xlane.f32.xlu0 %v2464_v28 }
0x1458   :  { %v2461_v39 = vsel %vm363_vm2, %v10670_v27, 0.0 }
0x145b   :  { %2462 = vadd.xlane.f32.xlu0 %v2461_v39  ;;  %v9257_v39 = vld [vmem:[%s10987_s24 + $0x30] sm:$0xff] }
0x1471   :  { %2471 = vrot.lane.b32.xlu0 %v11328_v0, %s12242_s10 }
0x1478   :  { %v2734_v40 = vpop.xlane.xlu1 %2733 }
0x1479   :  { %v2738_v41 = vsub.f32 %v2724_v29, %v2734_v40  ;;  %v9256_v40 = vld [vmem:[%s10987_s24 + $0x28] sm:$0xff] }
0x147b   :  { %v2740_v42 = vmul.f32 1.442695, %v2738_v41  ;;  %v9255_v41 = vld [vmem:[%s10987_s24 + $0x20] sm:$0xff] }
0x147d   :  { %10671 = vpow2.f32 %v2740_v42  ;;  %v3227_v42 = vld [vmem:[%s12272_s13 + $0x18] sm:$0xff] }
0x148a   :  { %v10672_v43 = vpop.eup %10671 }
0x148b   :  { %v2744_v45 = vsel %vm363_vm2, %v10672_v43, 0.0 }
0x148c   :  { %2745 = vadd.xlane.f32.xlu1 %v2744_v45  ;;  %v9268_v45 = vld [vmem:[%s10997_s6 + $0x68] sm:$0xff] }
0x1490   :  { %2736 = vmax.xlane.f32.xlu0 %v2735_v19  ;;  %v9267_v19 = vld [vmem:[%s10997_s6 + $0x60] sm:$0xff] }
0x149d   :  { %2756 = vrot.lane.b32.xlu1 %v11326_v62, %s12240_s11 }
0x14e0   :  { %v2466_v21 = vpop.xlane.xlu0 %2465 }
0x14e1   :  { %10673 = vrcp.f32 %v2466_v21 }
0x14e4   :  { %v2463_v46 = vpop.xlane.xlu0 %2462 }
0x14e5   :  { %10675 = vrcp.f32 %v2463_v46 }
0x14e8   :  { %v2472_v5 = vpop.permute.xlu0 %2471 }
0x14e9   :  { %10058 = vmatprep.subr.mxu1 %v2472_v5 }
0x14ea   :  { %10059 = vmatpush3.msra.mxu1 %v2472_v5 }
0x14eb   :  { %10063 = vmatprep.subr.mxu1 %v9215_v47 }
0x14ee   :  { %v10674_v2 = vpop.eup %10673 }
0x14ef   :  { %v2470_v50 = vmul.f32 %v10674_v2, %v10668_v38 }
0x14f2   :  { %v10676_v48 = vpop.eup %10675 }
0x14f3   :  { %v2468_v49 = vmul.f32 %v10676_v48, %v10670_v27  ;;  %v9258_v27 = vld [vmem:[%s10987_s24 + $0x38] sm:$0xff]  ;;  %s12279_s24 = sld [smem:[#allocation12_spill]] }
0x14f4   :  { %10087 = vmatprep.subr.mxu0 %v9258_v27 }
0x14f5   :  { %10060 = vmatprep.mubr.msk.f32.mxu1 %vm363_vm2, %v2468_v49  ;;  %10088 = vmatpush3.msra.mxu0 %v9258_v27 }
0x14f6   :  { %10061 = vmatmul.mubr.msk.f32.vlgmr.msra.gmra.mxu1 %vm363_vm2, %v2470_v50  ;;  %10089 = vmatprep.subr.mxu0 %v9257_v39  ;;  %v9253_v50 = vld [vmem:[%s10977_s14 + $0x1] ss:$0 sm:$0xff]  ;;  %s12277_s14 = sld [smem:[#allocation11_spill]] }
0x14f7   :  { %10064 = vmatpush3.msra.mxu1 %v9215_v47  ;;  %10090 = vmatpush3.msra.mxu0 %v9257_v39 }
0x14f8   :  { %10091 = vmatprep.subr.mxu0 %v9256_v40 }
0x14f9   :  { %10092 = vmatpush3.msra.mxu0 %v9256_v40 }
0x14fa   :  { %10093 = vmatprep.subr.mxu0 %v9255_v41 }
0x14fb   :  { %10094 = vmatpush3.msra.mxu0 %v9255_v41 }
0x14fc   :  { %10117 = vmatprep.subr.mxu0 %v3227_v42 }
0x1515   :  { %v2746_v51 = vpop.xlane.xlu1 %2745 }
0x1519   :  { %v2757_v62 = vpop.permute.xlu1 %2756  ;;  %v2737_v52 = vpop.xlane.xlu0 %2736 }
0x151a   :  { %v2739_v53 = vsub.f32 %v2729_v44, %v2737_v52  ;;  %10075 = vmatprep.subr.mxu1 %v2757_v62  ;;  %v9269_v44 = vld [vmem:[%s10997_s6 + $0x70] sm:$0xff] }
0x151c   :  { %v2742_v54 = vmul.f32 1.442695, %v2739_v53 }
0x151e   :  { %10677 = vpow2.f32 %v2742_v54  ;;  %v9254_v54 = vld [vmem:[%s10982_s19 + $0x1] ss:$0 sm:$0xff]  ;;  %s12278_s19 = sld [smem:[#allocation14_spill]] }
0x151f   :  { %10679 = vrcp.f32 %v2746_v51 }
0x152b   :  { %v10678_v55 = vpop.eup %10677 }
0x152c   :  { %v2747_v56 = vsel %vm363_vm2, %v10678_v55, 0.0  ;;  %v10680_v61 = vpop.eup %10679 }
0x152d   :  { %2748 = vadd.xlane.f32.xlu0 %v2747_v56  ;;  %v2751_v3 = vmul.f32 %v10680_v61, %v10672_v43  ;;  %v9270_v43 = vld [vmem:[%s10997_s6 + $0x78] sm:$0xff]  ;;  %v3226_v61 = vld [vmem:[%s12272_s13 + $0x10] sm:$0xff] }
0x1543   :  { %2754 = vrot.lane.b32.xlu0 %v11328_v0, %s12240_s11 }
0x15b6   :  { %v10062_v63 = vpop.f32.mrf.mxu1  ;;  %v2749_v8 = vpop.xlane.xlu0 %2748 }
0x15b7   :  { %10681 = vrcp.f32 %v2749_v8  ;;  %v3224_v8 = vld [vmem:[%s12272_s13] sm:$0xff] }
0x15b8   :  { %v2549_v1 = vpop.f32.mrf.mxu1 }
0x15b9   :  { %10065 = vmatprep.mubr.msk.f32.mxu1 %vm277_vm1, %v2549_v1  ;;  %v11489_v1 = vld [vmem:[%s12273_s25 + $0x8] sm:$0xff]  ;;  %s12288_s25 = sld [smem:[#allocation20_spill]] }
0x15ba   :  { %10066 = vmatmul.mubr.msk.f32.vlgmr.msra.gmra.mxu1 %vm277_vm1, %v10062_v63  ;;  %v2755_v4 = vpop.permute.xlu0 %2754  ;;  %v3225_v63 = vld [vmem:[%s12272_s13 + $0x8] sm:$0xff] }
0x15bb   :  { %10076 = vmatpush3.msra.mxu1 %v2757_v62  ;;  %10079 = vmatprep.mubr.msk.f32.mxu1 %vm363_vm2, %v2751_v3  ;;  %v9266_v3 = vld [vmem:[%s10997_s6 + $0x58] sm:$0xff] }
0x15bc   :  { %10077 = vmatprep.subr.mxu1 %v2755_v4 }
0x15bd   :  { %10078 = vmatpush3.msra.mxu1 %v2755_v4  ;;  %v9265_v4 = vld [vmem:[%s10997_s6 + $0x50] sm:$0xff] }
0x15be   :  { %10082 = vmatprep.subr.mxu1 %v9216_v7 }
0x15c4   :  { %v10682_v0 = vpop.eup %10681 }
0x15c5   :  { %v2753_v6 = vmul.f32 %v10682_v0, %v10678_v55  ;;  %v9264_v0 = vld [vmem:[%s10997_s6 + $0x48] sm:$0xff] }
0x15c7   :  { %10080 = vmatmul.mubr.msk.f32.vlgmr.msra.gmra.mxu1 %vm363_vm2, %v2753_v6  ;;  %v9263_v6 = vld [vmem:[%s10997_s6 + $0x40] sm:$0xff]  ;;  %s12281_s6 = sld [smem:[#allocation23_spill]] }
0x15c8   :  { %10083 = vmatpush3.msra.mxu1 %v9216_v7  ;;  %v9260_v7 = vld [vmem:[%s10992_s30 + $0x1] ss:$0 sm:$0xff]  ;;  %s12280_s30 = sld [smem:[#allocation22_spill]] }
0x15c9   :  { %10098 = vmatprep.subr.mxu1 %v9270_v43 }
0x167a   :  { %v10067_v11 = vpop.f32.mrf.mxu1 }
0x167b   :  { %v2640_v13 = vadd.f32 %v10067_v11, %v2355_v9 }
0x167c   :  { %v2630_v16 = vpop.f32.mrf.mxu1 }
0x167d   :  { %v2639_v17 = vadd.f32 %v2630_v16, %v2350_v12 }
0x1687   :  { %v10081_v10 = vpop.f32.mrf.mxu1 }
0x1689   :  { %v2832_v18 = vpop.f32.mrf.mxu1 }
0x168a   :  { %10084 = vmatprep.mubr.msk.f32.mxu1 %vm277_vm1, %v2832_v18 }
0x168b   :  { %10085 = vmatmul.mubr.msk.f32.vlgmr.msra.gmra.mxu1 %vm277_vm1, %v10081_v10  ;;  %v9279_v10 = vld [vmem:[%s12274_s29] ss:$0 sm:$0xff] }
0x168c   :  { %10099 = vmatpush3.msra.mxu1 %v9270_v43 }
0x168d   :  { %10100 = vmatprep.subr.mxu1 %v9269_v44 }
0x168e   :  { %10101 = vmatpush3.msra.mxu1 %v9269_v44 }
0x168f   :  { %10102 = vmatprep.subr.mxu1 %v9268_v45 }
0x1690   :  { %10103 = vmatpush3.msra.mxu1 %v9268_v45 }
0x1691   :  { %10104 = vmatprep.subr.mxu1 %v9267_v19 }
0x1692   :  { %10105 = vmatpush3.msra.mxu1 %v9267_v19 }
0x1693   :  { %10106 = vmatprep.subr.mxu1 %v9266_v3 }
0x1694   :  { %10107 = vmatpush3.msra.mxu1 %v9266_v3 }
0x1695   :  { %10108 = vmatprep.subr.mxu1 %v9265_v4 }
0x1696   :  { %10109 = vmatpush3.msra.mxu1 %v9265_v4 }
0x1697   :  { %10110 = vmatprep.subr.mxu1 %v9264_v0 }
0x1698   :  { %10111 = vmatpush3.msra.mxu1 %v9264_v0 }
0x1699   :  { %10112 = vmatprep.subr.mxu1 %v9263_v6 }
0x169a   :  { %10113 = vmatpush3.msra.mxu1 %v9263_v6 }
0x174b   :  { %v10086_v22 = vpop.f32.mrf.mxu1 }
0x174c   :  { %v2923_v23 = vadd.f32 %v10086_v22, %v2640_v13 }
0x174d   :  { %v2913_v24 = vpop.f32.mrf.mxu1 }
0x174e   :  { %v2931_v25 = vadd.f32 %v9250_v20, %v2923_v23  ;;  %v2922_v26 = vadd.f32 %v2913_v24, %v2639_v17 }
0x1750   :  { %v2930_v29 = vadd.f32 %v9250_v20, %v2922_v26  ;;  %v2933_v14 = vadd.f32 %v2931_v25, %v11319_v59 }
0x1752   :  { %v2941_v15 = vsel %vm182_vm0, %v2933_v14, 0.0  ;;  %v2932_v30 = vadd.f32 %v2930_v29, %v11317_v58 }
0x1753   :  { %2942 = vadd.xlane.f32.xlu0 %v2941_v15 }
0x1754   :  { %v2938_v31 = vsel %vm182_vm0, %v2932_v30, 0.0 }
0x1755   :  { %2939 = vadd.xlane.f32.xlu1 %v2938_v31  ;;  %v11530_v31 = vld [vmem:[%s12275_s3 + $0x8] sm:$0xff] }
0x17dc   :  { %v2943_v32 = vpop.xlane.xlu0 %2942 }
0x17dd   :  { %v2945_v33 = vmul.f32 0.03125, %v2943_v32 }
0x17de   :  { %v2940_v34 = vpop.xlane.xlu1 %2939 }
0x17df   :  { %v2947_v35 = vsub.f32 %v2933_v14, %v2945_v33  ;;  %v2944_v36 = vmul.f32 0.03125, %v2940_v34  ;;  %v11524_v14 = vld [vmem:[%s11002_s12 + $0x1] ss:$0 sm:$0xff]  ;;  %s12282_s12 = sld [smem:[#allocation15_spill]] }
0x17e0   :  { %v11533_v33 = vld [vmem:[%s12275_s3] sm:$0xff] }
0x17e1   :  { %v2946_v37 = vsub.f32 %v2932_v30, %v2944_v36  ;;  %v2949_v38 = vmul.f32 %v2947_v35, %v2947_v35 }
0x17e3   :  { %v2953_v59 = vsel %vm182_vm0, %v2949_v38, 0.0  ;;  %v2948_v28 = vmul.f32 %v2946_v37, %v2946_v37 }
0x17e4   :  { %2954 = vadd.xlane.f32.xlu0 %v2953_v59 }
0x17e5   :  { %v2950_v58 = vsel %vm182_vm0, %v2948_v28, 0.0 }
0x17e6   :  { %2951 = vadd.xlane.f32.xlu1 %v2950_v58 }
0x186d   :  { %v2955_v21 = vpop.xlane.xlu0 %2954 }
0x186e   :  { %v2957_v46 = vmul.f32 0.03125, %v2955_v21 }
0x186f   :  { %v2952_v5 = vpop.xlane.xlu1 %2951 }
0x1870   :  { %v2959_v47 = vadd.f32 1e-05, %v2957_v46  ;;  %v2956_v2 = vmul.f32 0.03125, %v2952_v5 }
0x1872   :  { %10683 = vrsqrt.f32 %v2959_v47  ;;  %v2958_v48 = vadd.f32 1e-05, %v2956_v2 }
0x1874   :  { %10685 = vrsqrt.f32 %v2958_v48 }
0x187f   :  { %v10684_v49 = vpop.eup %10683 }
0x1880   :  { %v2963_v51 = vmul.f32 %v10684_v49, %v2947_v35 }
0x1881   :  { %v10686_v62 = vpop.eup %10685 }
0x1882   :  { %v2962_v52 = vmul.f32 %v10686_v62, %v2946_v37  ;;  %v2971_v53 = vmul.f32 %v9253_v50, %v2963_v51 }
0x1884   :  { %v2970_v55 = vmul.f32 %v9253_v50, %v2962_v52  ;;  %v11474_v57 = vadd.f32 %v9254_v54, %v2971_v53  ;;  %v3316_v52 = vld [vmem:[%s12276_s8] sm:$0xff] }
0x1886   :  { %v11472_v56 = vadd.f32 %v9254_v54, %v2970_v55 }
0x1888   :  { %10095 = vmatprep.mubr.msk.f32.mxu0 %vm182_vm0, %v11472_v56 }
0x1889   :  { %10096 = vmatmul.mubr.msk.f32.vlgmr.msra.gmra.mxu0 %vm182_vm0, %v11474_v57 }
0x188a   :  { %10118 = vmatpush3.msra.mxu0 %v3227_v42  ;;  %10125 = vmatprep.mubr.msk.f32.mxu0 %vm182_vm0, %v11477_v60 }
0x188b   :  { %10119 = vmatprep.subr.mxu0 %v3226_v61 }
0x188c   :  { %10120 = vmatpush3.msra.mxu0 %v3226_v61 }
0x188d   :  { %10121 = vmatprep.subr.mxu0 %v3225_v63 }
0x188e   :  { %10122 = vmatpush3.msra.mxu0 %v3225_v63 }
0x188f   :  { %10123 = vmatprep.subr.mxu0 %v3224_v8 }
0x1890   :  { %10124 = vmatpush3.msra.mxu0 %v3224_v8 }
0x1891   :  { %10126 = vmatmul.mubr.msk.f32.vlgmr.msra.gmra.mxu0 %vm182_vm0, %v11489_v1 }
0x1949   :  { %v10097_v9 = vpop.f32.mrf.mxu0 }
0x194a   :  { %v3071_v11 = vadd.f32 %v10097_v9, %v9260_v7 }
0x194b   :  { %v3065_v12 = vpop.f32.mrf.mxu0 }
0x194c   :  { %v3066_v13 = vadd.f32 %v9260_v7, %v3065_v12  ;;  %v3075_v17 = vmax.f32 %v3071_v11, 0.0 }
0x194e   :  { %v3074_v16 = vmax.f32 %v3066_v13, 0.0 }
0x1950   :  { %10114 = vmatprep.mubr.msk.f32.mxu1 %vm1565_vm3, %v3074_v16 }
0x1951   :  { %v10127_v18 = vpop.f32.mrf.mxu0  ;;  %10115 = vmatmul.mubr.msk.f32.vlgmr.msra.gmra.mxu1 %vm1565_vm3, %v3075_v17 }
0x1952   :  { %v11501_v20 = vadd.f32 %v10127_v18, %v9279_v10 }
0x1953   :  { %v3307_v22 = vpop.f32.mrf.mxu0 }
0x1954   :  { %v11503_v23 = vadd.f32 %v9279_v10, %v3307_v22  ;;  %3327 = vrot.lane.b32.xlu1 %v11501_v20, %s10911_s22  ;;  %v11519_v29 = vmul.f32 0.35355338, %v11501_v20 }
0x1956   :  { %3325 = vrot.lane.b32.xlu0 %v11503_v23, %s10911_s22  ;;  %v11510_v24 = vmul.f32 0.35355338, %v11503_v23 }
0x1958   :  { %10132 = vmatprep.mubr.msk.f32.mxu0 %vm277_vm1, %v11510_v24 }
0x19c6   :  { %v3328_v25 = vpop.permute.xlu1 %3327 }
0x19c7   :  { %10128 = vmatprep.subr.msk.mxu0 %vm277_vm1, %v3328_v25 }
0x19c8   :  { %10129 = vmatpush3.xpose.msk.msra.mxu0 %vm277_vm1, %v3328_v25  ;;  %v3326_v26 = vpop.permute.xlu0 %3325 }
0x19c9   :  { %10130 = vmatprep.subr.msk.mxu0 %vm277_vm1, %v3326_v26 }
0x19cc   :  { %10131 = vmatpush3.xpose.msk.msra.mxu0 %vm277_vm1, %v3326_v26 }
0x19cf   :  { %10133 = vmatmul.mubr.msk.f32.vlgmr.msra.gmra.mxu0 %vm277_vm1, %v11519_v29 }
0x1a11   :  { %v10116_v15 = vpop.f32.mrf.mxu1 }
0x1a12   :  { %v11527_v30 = vadd.f32 %v10116_v15, %v11524_v14  ;;  %v3317_v15 = vld [vmem:[%s12276_s8 + $0x8] sm:$0xff] }
0x1a13   :  { %v11562_v53 = vpop.f32.mrf.mxu1 }
0x1a8f   :  { %v10134_v32 = vpop.f32.mrf.mxu0 }
0x1a90   :  { %v3411_v34 = vadd.f32 %v10134_v32, %v11530_v31 }
0x1a91   :  { %v3405_v35 = vpop.f32.mrf.mxu0 }
0x1a92   :  { %v3406_v36 = vadd.f32 %v3405_v35, %v11533_v33  ;;  %v3417_v37 = vsel %vm363_vm2, %v3411_v34, -inf }
0x1a93   :  { %3418 = vmax.xlane.f32.xlu0 %v3417_v37 }
0x1a94   :  { %v3414_v38 = vsel %vm363_vm2, %v3406_v36, -inf }
0x1a95   :  { %3415 = vmax.xlane.f32.xlu1 %v3414_v38 }
0x1aa6   :  { %3438 = vrot.lane.b32.xlu1 %v11501_v20, %s10913_s23 }
0x1aaa   :  { %3529 = vrot.lane.b32.xlu1 %v11501_v20, %s10910_s0 }
0x1aae   :  { %3527 = vrot.lane.b32.xlu1 %v11503_v23, %s10910_s0 }
0x1b1c   :  { %v3419_v59 = vpop.xlane.xlu0 %3418 }
0x1b1d   :  { %v3421_v28 = vsub.f32 %v3411_v34, %v3419_v59 }
0x1b1e   :  { %v3416_v58 = vpop.xlane.xlu1 %3415 }
0x1b1f   :  { %v3424_v27 = vmul.f32 1.442695, %v3421_v28  ;;  %v3420_v39 = vsub.f32 %v3406_v36, %v3416_v58 }
0x1b21   :  { %10687 = vpow2.f32 %v3424_v27  ;;  %v3422_v40 = vmul.f32 1.442695, %v3420_v39 }
0x1b22   :  { %v3439_v41 = vpop.permute.xlu1 %3438 }
0x1b23   :  { %10689 = vpow2.f32 %v3422_v40  ;;  %10135 = vmatprep.subr.mxu1 %v3439_v41 }
0x1b24   :  { %10136 = vmatpush3.msra.mxu1 %v3439_v41 }
0x1b26   :  { %v3530_v19 = vpop.permute.xlu1 %3529 }
0x1b2a   :  { %v3528_v21 = vpop.permute.xlu1 %3527 }
0x1b2e   :  { %v10688_v42 = vpop.eup %10687 }
0x1b2f   :  { %v3429_v43 = vsel %vm363_vm2, %v10688_v42, 0.0 }
0x1b30   :  { %v10690_v44 = vpop.eup %10689  ;;  %3430 = vadd.xlane.f32.xlu0 %v3429_v43 }
0x1b31   :  { %v3426_v45 = vsel %vm363_vm2, %v10690_v44, 0.0 }
0x1b32   :  { %3427 = vadd.xlane.f32.xlu1 %v3426_v45 }
0x1b43   :  { %3525 = vrot.lane.b32.xlu1 %v11519_v29, %s10912_s5 }
0x1b46   :  { %3436 = vrot.lane.b32.xlu0 %v11503_v23, %s10913_s23 }
0x1b4a   :  { %3523 = vrot.lane.b32.xlu0 %v11510_v24, %s10912_s5 }
0x1bb9   :  { %v3431_v46 = vpop.xlane.xlu0 %3430 }
0x1bba   :  { %10691 = vrcp.f32 %v3431_v46 }
0x1bbb   :  { %v3428_v5 = vpop.xlane.xlu1 %3427 }
0x1bbc   :  { %10693 = vrcp.f32 %v3428_v5 }
0x1bbd   :  { %v3437_v47 = vpop.permute.xlu0 %3436 }
0x1bbe   :  { %10137 = vmatprep.subr.mxu1 %v3437_v47 }
0x1bbf   :  { %10138 = vmatpush3.msra.mxu1 %v3437_v47  ;;  %v3526_v62 = vpop.permute.xlu1 %3525 }
0x1bc0   :  { %10142 = vmatprep.subr.msk.mxu1 %vm277_vm1, %v3530_v19 }
0x1bc1   :  { %v3524_v51 = vpop.permute.xlu0 %3523 }
0x1bc7   :  { %v10692_v2 = vpop.eup %10691 }
0x1bc8   :  { %v3435_v50 = vmul.f32 %v10692_v2, %v10688_v42 }
0x1bc9   :  { %v10694_v48 = vpop.eup %10693 }
0x1bca   :  { %v3433_v49 = vmul.f32 %v10694_v48, %v10690_v44 }
0x1bcc   :  { %10139 = vmatprep.mubr.msk.f32.mxu1 %vm363_vm2, %v3433_v49 }
0x1bcd   :  { %10140 = vmatmul.mubr.msk.f32.vlgmr.msra.gmra.mxu1 %vm363_vm2, %v3435_v50 }
0x1bce   :  { %10143 = vmatpush3.xpose.msk.msra.mxu1 %vm277_vm1, %v3530_v19  ;;  %10146 = vmatprep.mubr.msk.f32.mxu1 %vm277_vm1, %v3524_v51 }
0x1bcf   :  { %10144 = vmatprep.subr.msk.mxu1 %vm277_vm1, %v3528_v21 }
0x1bd2   :  { %10145 = vmatpush3.xpose.msk.msra.mxu1 %vm277_vm1, %v3528_v21 }
0x1bd3   :  { %10161 = vmatprep.subr.mxu1 %v3316_v52 }
0x1bd5   :  { %10147 = vmatmul.mubr.msk.f32.vlgmr.msra.gmra.mxu1 %vm277_vm1, %v3526_v62 }
0x1bd6   :  { %10162 = vmatpush3.msra.mxu1 %v3316_v52 }
0x1c8d   :  { %v10141_v54 = vpop.f32.mrf.mxu1 }
0x1c8f   :  { %v3514_v55 = vpop.f32.mrf.mxu1 }
0x1c90   :  { %10163 = vmatprep.mubr.msk.f32.mxu1 %vm277_vm1, %v3514_v55 }
0x1c91   :  { %10164 = vmatmul.mubr.msk.f32.vlgmr.msra.gmra.mxu1 %vm277_vm1, %v10141_v54 }
0x1c95   :  { %v10148_v61 = vpop.f32.mrf.mxu1 }
0x1c96   :  { %v3611_v63 = vadd.f32 %v10148_v61, %v11530_v31 }
0x1c97   :  { %v3605_v8 = vpop.f32.mrf.mxu1 }
0x1c98   :  { %v3606_v3 = vadd.f32 %v3605_v8, %v11533_v33  ;;  %v3617_v4 = vsel %vm363_vm2, %v3611_v63, -inf }
0x1c99   :  { %3618 = vmax.xlane.f32.xlu1 %v3617_v4 }
0x1c9a   :  { %v3614_v0 = vsel %vm363_vm2, %v3606_v3, -inf }
0x1c9b   :  { %3615 = vmax.xlane.f32.xlu0 %v3614_v0 }
0x1caa   :  { %3638 = vrot.lane.b32.xlu1 %v11501_v20, %s10914_s26 }
0x1cae   :  { %3891 = vrot.lane.b32.xlu1 %v11501_v20, %s10915_s28 }
0x1cb2   :  { %3889 = vrot.lane.b32.xlu1 %v11503_v23, %s10915_s28 }
0x1cb6   :  { %3887 = vrot.lane.b32.xlu1 %v11519_v29, %s12248_s1 }
0x1cba   :  { %4172 = vrot.lane.b32.xlu1 %v11503_v23, %s12246_s2 }
0x1cbe   :  { %4170 = vrot.lane.b32.xlu1 %v11519_v29, %s12244_s7 }
0x1d22   :  { %v3619_v6 = vpop.xlane.xlu1 %3618 }
0x1d23   :  { %v3621_v7 = vsub.f32 %v3611_v63, %v3619_v6 }
0x1d24   :  { %v3616_v9 = vpop.xlane.xlu0 %3615 }
0x1d25   :  { %v3624_v11 = vmul.f32 1.442695, %v3621_v7  ;;  %v3620_v12 = vsub.f32 %v3606_v3, %v3616_v9 }
0x1d26   :  { %v3639_v13 = vpop.permute.xlu1 %3638 }
0x1d27   :  { %10695 = vpow2.f32 %v3624_v11  ;;  %v3622_v16 = vmul.f32 1.442695, %v3620_v12  ;;  %10149 = vmatprep.subr.mxu0 %v3639_v13 }
0x1d28   :  { %10150 = vmatpush3.msra.mxu0 %v3639_v13  ;;  %v3166_v13 = vadd.f32 %v11524_v14, %v11562_v53 }
0x1d29   :  { %10697 = vpow2.f32 %v3622_v16 }
0x1d2a   :  { %v3892_v37 = vpop.permute.xlu1 %3891  ;;  %v11633_v16 = vadd.f32 %v3166_v13, %v11472_v56 }
0x1d2e   :  { %v3890_v59 = vpop.permute.xlu1 %3889 }
0x1d32   :  { %v3888_v27 = vpop.permute.xlu1 %3887 }
0x1d34   :  { %v10696_v17 = vpop.eup %10695 }
0x1d35   :  { %v3629_v10 = vsel %vm363_vm2, %v10696_v17, 0.0 }
0x1d36   :  { %v10698_v18 = vpop.eup %10697  ;;  %3630 = vadd.xlane.f32.xlu0 %v3629_v10  ;;  %v4173_v40 = vpop.permute.xlu1 %4172 }
0x1d37   :  { %v3626_v22 = vsel %vm363_vm2, %v10698_v18, 0.0 }
0x1d3a   :  { %3627 = vadd.xlane.f32.xlu0 %v3626_v22  ;;  %v4171_v41 = vpop.permute.xlu1 %4170  ;;  %v3318_v22 = vld [vmem:[%s12276_s8 + $0x10] sm:$0xff] }
0x1d50   :  { %3636 = vrot.lane.b32.xlu0 %v11503_v23, %s10914_s26 }
0x1d54   :  { %3885 = vrot.lane.b32.xlu0 %v11510_v24, %s12248_s1 }
0x1d58   :  { %4174 = vrot.lane.b32.xlu0 %v11501_v20, %s12246_s2 }
0x1d5c   :  { %4168 = vrot.lane.b32.xlu0 %v11510_v24, %s12244_s7 }
0x1dbf   :  { %v3631_v25 = vpop.xlane.xlu0 %3630 }
0x1dc0   :  { %10699 = vrcp.f32 %v3631_v25 }
0x1dc3   :  { %v3628_v26 = vpop.xlane.xlu0 %3627 }
0x1dc4   :  { %10701 = vrcp.f32 %v3628_v26 }
0x1dc7   :  { %v3637_v29 = vpop.permute.xlu0 %3636 }
0x1dc8   :  { %10151 = vmatprep.subr.mxu0 %v3637_v29 }
0x1dc9   :  { %10152 = vmatpush3.msra.mxu0 %v3637_v29 }
0x1dca   :  { %10156 = vmatprep.subr.mxu0 %v3317_v15 }
0x1dcb   :  { %v3886_v24 = vpop.permute.xlu0 %3885 }
0x1dcd   :  { %v10700_v32 = vpop.eup %10699 }
0x1dce   :  { %v3635_v36 = vmul.f32 %v10700_v32, %v10696_v17  ;;  %v3180_v17 = vsel %vm182_vm0, %v11633_v16, 0.0 }
0x1dcf   :  { %v4175_v58 = vpop.permute.xlu0 %4174 }
0x1dd1   :  { %v10702_v34 = vpop.eup %10701 }
0x1dd2   :  { %v3633_v35 = vmul.f32 %v10702_v34, %v10698_v18 }
0x1dd3   :  { %v4169_v39 = vpop.permute.xlu0 %4168 }
0x1dd4   :  { %10153 = vmatprep.mubr.msk.f32.mxu0 %vm363_vm2, %v3633_v35 }
0x1dd5   :  { %10154 = vmatmul.mubr.msk.f32.vlgmr.msra.gmra.mxu0 %vm363_vm2, %v3635_v36  ;;  %v3175_v36 = vadd.f32 %v11527_v30, %v11474_v57 }
0x1dd6   :  { %10157 = vmatpush3.msra.mxu0 %v3317_v15 }
0x1dd7   :  { %10166 = vmatprep.subr.msk.mxu0 %vm277_vm1, %v3892_v37 }
0x1e95   :  { %v10155_v38 = vpop.f32.mrf.mxu0 }
0x1e97   :  { %v3714_v28 = vpop.f32.mrf.mxu0 }
0x1e98   :  { %10158 = vmatprep.mubr.msk.f32.mxu0 %vm277_vm1, %v3714_v28 }
0x1e99   :  { %10159 = vmatmul.mubr.msk.f32.vlgmr.msra.gmra.mxu0 %vm277_vm1, %v10155_v38 }
0x1e9a   :  { %10167 = vmatpush3.xpose.msk.msra.mxu0 %vm277_vm1, %v3892_v37  ;;  %10170 = vmatprep.mubr.msk.f32.mxu0 %vm277_vm1, %v3886_v24  ;;  %v3183_v37 = vsel %vm182_vm0, %v3175_v36, 0.0  ;;  %v10165_v24 = vpop.f32.mrf.mxu1 }
0x1e9b   :  { %10168 = vmatprep.subr.msk.mxu0 %vm277_vm1, %v3890_v59 }
0x1e9c   :  { %v3876_v38 = vpop.f32.mrf.mxu1 }
0x1e9e   :  { %10169 = vmatpush3.xpose.msk.msra.mxu0 %vm277_vm1, %v3890_v59 }
0x1e9f   :  { %10185 = vmatprep.subr.msk.mxu0 %vm277_vm1, %v4175_v58 }
0x1ea1   :  { %10171 = vmatmul.mubr.msk.f32.vlgmr.msra.gmra.mxu0 %vm277_vm1, %v3888_v27 }
0x1ea2   :  { %10186 = vmatpush3.xpose.msk.msra.mxu0 %vm277_vm1, %v4175_v58  ;;  %10189 = vmatprep.mubr.msk.f32.mxu0 %vm277_vm1, %v4169_v39 }
0x1ea3   :  { %10187 = vmatprep.subr.msk.mxu0 %vm277_vm1, %v4173_v40 }
0x1ea6   :  { %10188 = vmatpush3.xpose.msk.msra.mxu0 %vm277_vm1, %v4173_v40  ;;  %v3319_v40 = vld [vmem:[%s12276_s8 + $0x18] sm:$0xff] }
0x1ea9   :  { %10190 = vmatmul.mubr.msk.f32.vlgmr.msra.gmra.mxu0 %vm277_vm1, %v4171_v41 }
0x1f59   :  { %v11609_v42 = vpop.f32.mrf.mxu0 }
0x1f5a   :  { %v3882_v41 = vadd.f32 %v10165_v24, %v11609_v42  ;;  %v4508_v24 = vld [vmem:[%s12279_s24 + $0x18] sm:$0xff] }
0x1f5b   :  { %v11611_v43 = vpop.f32.mrf.mxu0  ;;  %10204 = vmatprep.subr.mxu0 %v4508_v24 }
0x1f5c   :  { %10205 = vmatpush3.msra.mxu0 %v4508_v24 }
0x1f61   :  { %v10172_v44 = vpop.f32.mrf.mxu0 }
0x1f62   :  { %v3973_v45 = vadd.f32 %v10172_v44, %v11530_v31 }
0x1f63   :  { %v3967_v19 = vpop.f32.mrf.mxu0 }
0x1f64   :  { %v3968_v21 = vadd.f32 %v3967_v19, %v11533_v33  ;;  %v3979_v46 = vsel %vm363_vm2, %v3973_v45, -inf }
0x1f65   :  { %3980 = vmax.xlane.f32.xlu1 %v3979_v46 }
0x1f66   :  { %v3976_v5 = vsel %vm363_vm2, %v3968_v21, -inf }
0x1f67   :  { %3977 = vmax.xlane.f32.xlu0 %v3976_v5 }
0x1f69   :  { %v10191_v47 = vpop.f32.mrf.mxu0 }
0x1f6a   :  { %v4256_v9 = vadd.f32 %v10191_v47, %v11530_v31 }
0x1f6b   :  { %v4250_v2 = vpop.f32.mrf.mxu0 }
0x1f6c   :  { %v4251_v48 = vadd.f32 %v4250_v2, %v11533_v33  ;;  %v4262_v12 = vsel %vm363_vm2, %v4256_v9, -inf }
0x1f6e   :  { %v4259_v49 = vsel %vm363_vm2, %v4251_v48, -inf }
0x1f76   :  { %4000 = vrot.lane.b32.xlu1 %v11501_v20, %s12242_s10 }
0x1f9a   :  { %4260 = vmax.xlane.f32.xlu1 %v4259_v49 }
0x1fee   :  { %v3981_v50 = vpop.xlane.xlu1 %3980 }
0x1fef   :  { %v3983_v51 = vsub.f32 %v3973_v45, %v3981_v50  ;;  %v3877_v45 = vadd.f32 %v3876_v38, %v11611_v43  ;;  %v9314_v50 = vld [vmem:[%s12277_s14] ss:$0 sm:$0xff]  ;;  %v4507_v38 = vld [vmem:[%s12279_s24 + $0x10] sm:$0xff] }
0x1ff0   :  { %v3978_v62 = vpop.xlane.xlu0 %3977  ;;  %10206 = vmatprep.subr.mxu0 %v4507_v38 }
0x1ff1   :  { %v3986_v52 = vmul.f32 1.442695, %v3983_v51  ;;  %v3982_v54 = vsub.f32 %v3968_v21, %v3978_v62  ;;  %10207 = vmatpush3.msra.mxu0 %v4507_v38 }
0x1ff2   :  { %v4001_v55 = vpop.permute.xlu1 %4000 }
0x1ff3   :  { %10703 = vpow2.f32 %v3986_v52  ;;  %v3984_v61 = vmul.f32 1.442695, %v3982_v54  ;;  %10173 = vmatprep.subr.mxu1 %v4001_v55 }
0x1ff4   :  { %10174 = vmatpush3.msra.mxu1 %v4001_v55 }
0x1ff5   :  { %10705 = vpow2.f32 %v3984_v61 }
0x2000   :  { %v10704_v63 = vpop.eup %10703 }
0x2001   :  { %v3991_v8 = vsel %vm363_vm2, %v10704_v63, 0.0 }
0x2002   :  { %v10706_v3 = vpop.eup %10705  ;;  %3992 = vadd.xlane.f32.xlu0 %v3991_v8 }
0x2003   :  { %v3988_v33 = vsel %vm363_vm2, %v10706_v3, 0.0 }
0x2006   :  { %3989 = vadd.xlane.f32.xlu0 %v3988_v33 }
0x201c   :  { %3998 = vrot.lane.b32.xlu0 %v11503_v23, %s12242_s10  ;;  %s12290_s10 = sld [smem:[#allocation25_spill]] }
0x2023   :  { %v4261_v4 = vpop.xlane.xlu1 %4260 }
0x2024   :  { %v4265_v0 = vsub.f32 %v4251_v48, %v4261_v4 }
0x2026   :  { %v4267_v6 = vmul.f32 1.442695, %v4265_v0 }
0x2028   :  { %10707 = vpow2.f32 %v4267_v6 }
0x2035   :  { %v10708_v7 = vpop.eup %10707 }
0x2036   :  { %v4271_v11 = vsel %vm363_vm2, %v10708_v7, 0.0 }
0x2037   :  { %4272 = vadd.xlane.f32.xlu1 %v4271_v11  ;;  %v4600_v11 = vld [vmem:[%s12278_s19 + $0x18] sm:$0xff] }
0x203b   :  { %4263 = vmax.xlane.f32.xlu0 %v4262_v12  ;;  %v4598_v12 = vld [vmem:[%s12278_s19 + $0x8] sm:$0xff] }
0x2048   :  { %4283 = vrot.lane.b32.xlu1 %v11501_v20, %s12240_s11 }
0x206c   :  { %3181 = vadd.xlane.f32.xlu1 %v3180_v17 }
0x208b   :  { %v3993_v31 = vpop.xlane.xlu0 %3992 }
0x208c   :  { %10709 = vrcp.f32 %v3993_v31 }
0x208f   :  { %v3990_v10 = vpop.xlane.xlu0 %3989 }
0x2090   :  { %10711 = vrcp.f32 %v3990_v10 }
0x2093   :  { %v3999_v18 = vpop.permute.xlu0 %3998 }
0x2094   :  { %10175 = vmatprep.subr.mxu1 %v3999_v18 }
0x2095   :  { %10176 = vmatpush3.msra.mxu1 %v3999_v18 }
0x2096   :  { %10180 = vmatprep.subr.mxu1 %v3318_v22 }
0x2099   :  { %v10710_v20 = vpop.eup %10709 }
0x209a   :  { %v3997_v14 = vmul.f32 %v10710_v20, %v10704_v63 }
0x209d   :  { %v10712_v25 = vpop.eup %10711 }
0x209e   :  { %v3995_v26 = vmul.f32 %v10712_v25, %v10706_v3 }
0x20a0   :  { %10177 = vmatprep.mubr.msk.f32.mxu1 %vm363_vm2, %v3995_v26 }
0x20a1   :  { %10178 = vmatmul.mubr.msk.f32.vlgmr.msra.gmra.mxu1 %vm363_vm2, %v3997_v14 }
0x20a2   :  { %10181 = vmatpush3.msra.mxu1 %v3318_v22 }
0x20c0   :  { %v4273_v56 = vpop.xlane.xlu1 %4272 }
0x20c4   :  { %v4284_v53 = vpop.permute.xlu1 %4283  ;;  %v4264_v29 = vpop.xlane.xlu0 %4263 }
0x20c5   :  { %v4266_v15 = vsub.f32 %v4256_v9, %v4264_v29  ;;  %10192 = vmatprep.subr.mxu1 %v4284_v53 }
0x20c7   :  { %v4269_v32 = vmul.f32 1.442695, %v4266_v15 }
0x20c9   :  { %10713 = vpow2.f32 %v4269_v32 }
0x20ca   :  { %10715 = vrcp.f32 %v4273_v56 }
0x20d6   :  { %v10714_v34 = vpop.eup %10713 }
0x20d7   :  { %v4274_v35 = vsel %vm363_vm2, %v10714_v34, 0.0  ;;  %v10716_v59 = vpop.eup %10715 }
0x20d8   :  { %4275 = vadd.xlane.f32.xlu0 %v4274_v35  ;;  %v4278_v39 = vmul.f32 %v10716_v59, %v10708_v7  ;;  %v9277_v35 = vld [vmem:[%s11007_s20 + $0x1] ss:$0 sm:$0xff]  ;;  %s12283_s20 = sld [smem:[#allocation13_spill]] }
0x20ee   :  { %4281 = vrot.lane.b32.xlu0 %v11503_v23, %s12240_s11  ;;  %s12289_s11 = sld [smem:[#allocation24_spill]] }
0x20f5   :  { %v3182_v48 = vpop.xlane.xlu1 %3181 }
0x20f6   :  { %v3186_v62 = vmul.f32 0.03125, %v3182_v48 }
0x20f8   :  { %v3188_v61 = vsub.f32 %v11633_v16, %v3186_v62 }
0x20fa   :  { %v3190_v6 = vmul.f32 %v3188_v61, %v3188_v61 }
0x20fc   :  { %v3192_v9 = vsel %vm182_vm0, %v3190_v6, 0.0 }
0x210d   :  { %3184 = vadd.xlane.f32.xlu0 %v3183_v37 }
0x2161   :  { %v10179_v28 = vpop.f32.mrf.mxu1  ;;  %v4276_v58 = vpop.xlane.xlu0 %4275 }
0x2162   :  { %10717 = vrcp.f32 %v4276_v58  ;;  %v4506_v58 = vld [vmem:[%s12279_s24 + $0x8] sm:$0xff] }
0x2163   :  { %v4076_v27 = vpop.f32.mrf.mxu1  ;;  %10208 = vmatprep.subr.mxu0 %v4506_v58 }
0x2164   :  { %10182 = vmatprep.mubr.msk.f32.mxu1 %vm277_vm1, %v4076_v27  ;;  %v9278_v27 = vld [vmem:[%s11012_s27 + $0x1] ss:$0 sm:$0xff]  ;;  %10209 = vmatpush3.msra.mxu0 %v4506_v58  ;;  %s12284_s27 = sld [smem:[#allocation7_spill]] }
0x2165   :  { %10183 = vmatmul.mubr.msk.f32.vlgmr.msra.gmra.mxu1 %vm277_vm1, %v10179_v28  ;;  %v4282_v23 = vpop.permute.xlu0 %4281  ;;  %v4689_v58 = vld [vmem:[%s12285_s15] sm:$0xff] }
0x2166   :  { %10193 = vmatpush3.msra.mxu1 %v4284_v53  ;;  %10196 = vmatprep.mubr.msk.f32.mxu1 %vm363_vm2, %v4278_v39 }
0x2167   :  { %10194 = vmatprep.subr.mxu1 %v4282_v23 }
0x2168   :  { %10195 = vmatpush3.msra.mxu1 %v4282_v23  ;;  %v4505_v23 = vld [vmem:[%s12279_s24] sm:$0xff] }
0x2169   :  { %10199 = vmatprep.subr.mxu1 %v3319_v40  ;;  %10210 = vmatprep.subr.mxu0 %v4505_v23 }
0x216a   :  { %10211 = vmatpush3.msra.mxu0 %v4505_v23 }
0x216f   :  { %v10718_v57 = vpop.eup %10717 }
0x2170   :  { %v4280_v30 = vmul.f32 %v10718_v57, %v10714_v34 }
0x2172   :  { %10197 = vmatmul.mubr.msk.f32.vlgmr.msra.gmra.mxu1 %vm363_vm2, %v4280_v30 }
0x2173   :  { %10200 = vmatpush3.msra.mxu1 %v3319_v40 }
0x2174   :  { %10215 = vmatprep.subr.mxu1 %v4600_v11 }
0x2196   :  { %v3185_v2 = vpop.xlane.xlu0 %3184 }
0x2197   :  { %v3187_v49 = vmul.f32 0.03125, %v3185_v2 }
0x2199   :  { %v3189_v54 = vsub.f32 %v3175_v36, %v3187_v49 }
0x219b   :  { %v3191_v4 = vmul.f32 %v3189_v54, %v3189_v54 }
0x219d   :  { %v3195_v7 = vsel %vm182_vm0, %v3191_v4, 0.0 }
0x2225   :  { %v10184_v44 = vpop.f32.mrf.mxu1 }
0x2226   :  { %v4167_v19 = vadd.f32 %v10184_v44, %v3882_v41 }
0x2227   :  { %v4157_v21 = vpop.f32.mrf.mxu1 }
0x2228   :  { %v4166_v46 = vadd.f32 %v4157_v21, %v3877_v45 }
0x2232   :  { %v10198_v5 = vpop.f32.mrf.mxu1 }
0x2234   :  { %v4359_v47 = vpop.f32.mrf.mxu1 }
0x2235   :  { %10201 = vmatprep.mubr.msk.f32.mxu1 %vm277_vm1, %v4359_v47 }
0x2236   :  { %10202 = vmatmul.mubr.msk.f32.vlgmr.msra.gmra.mxu1 %vm277_vm1, %v10198_v5  ;;  %v9315_v5 = vld [vmem:[%s12280_s30] ss:$0 sm:$0xff] }
0x2237   :  { %10216 = vmatpush3.msra.mxu1 %v4600_v11  ;;  %v11719_v11 = vld [vmem:[%s12284_s27] sm:$0xff] }
0x22f6   :  { %v10203_v51 = vpop.f32.mrf.mxu1 }
0x22f7   :  { %v4450_v52 = vadd.f32 %v10203_v51, %v4167_v19 }
0x22f8   :  { %v4440_v42 = vpop.f32.mrf.mxu1 }
0x22f9   :  { %v4458_v55 = vadd.f32 %v9314_v50, %v4450_v52  ;;  %v4449_v43 = vadd.f32 %v4440_v42, %v4166_v46  ;;  %v9320_v42 = vld [vmem:[%s12282_s12] ss:$0 sm:$0xff] }
0x22fb   :  { %v4457_v63 = vadd.f32 %v9314_v50, %v4449_v43  ;;  %v4460_v8 = vadd.f32 %v4458_v55, %v11489_v1  ;;  %v4599_v1 = vld [vmem:[%s12278_s19 + $0x10] sm:$0xff]  ;;  %v9316_v50 = vld [vmem:[%s12281_s6] ss:$0 sm:$0xff] }
0x22fc   :  { %10217 = vmatprep.subr.mxu1 %v4599_v1 }
0x22fd   :  { %v4466_v3 = vsel %vm182_vm0, %v4460_v8, 0.0  ;;  %v4459_v33 = vadd.f32 %v4457_v63, %v11477_v60  ;;  %10218 = vmatpush3.msra.mxu1 %v4599_v1  ;;  %v4597_v60 = vld [vmem:[%s12278_s19] sm:$0xff] }
0x22fe   :  { %4467 = vadd.xlane.f32.xlu0 %v4466_v3  ;;  %10219 = vmatprep.subr.mxu1 %v4598_v12  ;;  %v9317_v63 = vld [vmem:[%s12283_s20] ss:$0 sm:$0xff] }
0x22ff   :  { %v4463_v0 = vsel %vm182_vm0, %v4459_v33, 0.0  ;;  %10220 = vmatpush3.msra.mxu1 %v4598_v12 }
0x2300   :  { %4464 = vadd.xlane.f32.xlu1 %v4463_v0  ;;  %10221 = vmatprep.subr.mxu1 %v4597_v60 }
0x2301   :  { %10222 = vmatpush3.msra.mxu1 %v4597_v60 }
0x2302   :  { %3196 = vadd.xlane.f32.xlu0 %v3195_v7  ;;  %v11716_v7 = vld [vmem:[%s12284_s27 + $0x8] sm:$0xff] }
0x2304   :  { %3193 = vadd.xlane.f32.xlu1 %v3192_v9 }
0x2387   :  { %v4468_v13 = vpop.xlane.xlu0 %4467 }
0x2388   :  { %v4470_v16 = vmul.f32 0.03125, %v4468_v13 }
0x2389   :  { %v4465_v17 = vpop.xlane.xlu1 %4464 }
0x238a   :  { %v4472_v31 = vsub.f32 %v4460_v8, %v4470_v16  ;;  %v4469_v10 = vmul.f32 0.03125, %v4465_v17 }
0x238b   :  { %v3197_v18 = vpop.xlane.xlu0 %3196 }
0x238c   :  { %v4471_v22 = vsub.f32 %v4459_v33, %v4469_v10  ;;  %v3199_v20 = vmul.f32 0.03125, %v3197_v18  ;;  %v4474_v25 = vmul.f32 %v4472_v31, %v4472_v31 }
0x238d   :  { %v3194_v26 = vpop.xlane.xlu1 %3193 }
0x238e   :  { %v3201_v14 = vadd.f32 1e-05, %v3199_v20  ;;  %v3198_v56 = vmul.f32 0.03125, %v3194_v26  ;;  %v4478_v53 = vsel %vm182_vm0, %v4474_v25, 0.0  ;;  %v4473_v29 = vmul.f32 %v4471_v22, %v4471_v22 }
0x238f   :  { %4479 = vadd.xlane.f32.xlu0 %v4478_v53 }
0x2390   :  { %10719 = vrsqrt.f32 %v3201_v14  ;;  %v3200_v15 = vadd.f32 1e-05, %v3198_v56  ;;  %v4475_v32 = vsel %vm182_vm0, %v4473_v29, 0.0 }
0x2391   :  { %4476 = vadd.xlane.f32.xlu1 %v4475_v32 }
0x2392   :  { %10721 = vrsqrt.f32 %v3200_v15 }
0x239d   :  { %v10720_v34 = vpop.eup %10719 }
0x239e   :  { %v3205_v36 = vmul.f32 %v10720_v34, %v3189_v54 }
0x239f   :  { %v10722_v37 = vpop.eup %10721 }
0x23a0   :  { %v3204_v59 = vmul.f32 %v10722_v37, %v3188_v61  ;;  %v3213_v28 = vmul.f32 %v9277_v35, %v3205_v36 }
0x23a2   :  { %v3212_v39 = vmul.f32 %v9277_v35, %v3204_v59  ;;  %v11677_v30 = vadd.f32 %v9278_v27, %v3213_v28 }
0x23a4   :  { %v11675_v57 = vadd.f32 %v9278_v27, %v3212_v39 }
0x23a6   :  { %10223 = vmatprep.mubr.msk.f32.mxu1 %vm182_vm0, %v11675_v57 }
0x23a7   :  { %10224 = vmatmul.mubr.msk.f32.vlgmr.msra.gmra.mxu1 %vm182_vm0, %v11677_v30 }
0x2418   :  { %v4480_v40 = vpop.xlane.xlu0 %4479 }
0x2419   :  { %v4482_v41 = vmul.f32 0.03125, %v4480_v40 }
0x241a   :  { %v4477_v44 = vpop.xlane.xlu1 %4476 }
0x241b   :  { %v4484_v45 = vadd.f32 1e-05, %v4482_v41  ;;  %v4481_v19 = vmul.f32 0.03125, %v4477_v44 }
0x241d   :  { %10723 = vrsqrt.f32 %v4484_v45  ;;  %v4483_v21 = vadd.f32 1e-05, %v4481_v19 }
0x241f   :  { %10725 = vrsqrt.f32 %v4483_v21 }
0x242a   :  { %v10724_v46 = vpop.eup %10723 }
0x242b   :  { %v4488_v47 = vmul.f32 %v10724_v46, %v4472_v31 }
0x242c   :  { %v10726_v2 = vpop.eup %10725 }
0x242d   :  { %v4487_v48 = vmul.f32 %v10726_v2, %v4471_v22  ;;  %v4496_v49 = vmul.f32 %v9315_v5, %v4488_v47 }
0x242f   :  { %v4495_v51 = vmul.f32 %v9315_v5, %v4487_v48  ;;  %v11687_v52 = vadd.f32 %v9316_v50, %v4496_v49 }
0x2431   :  { %v11685_v62 = vadd.f32 %v9316_v50, %v4495_v51 }
0x2433   :  { %10212 = vmatprep.mubr.msk.f32.mxu0 %vm182_vm0, %v11685_v62 }
0x2434   :  { %10213 = vmatmul.mubr.msk.f32.vlgmr.msra.gmra.mxu0 %vm182_vm0, %v11687_v52 }
0x2467   :  { %v10225_v54 = vpop.f32.mrf.mxu1 }
0x2468   :  { %v11694_v55 = vadd.f32 %v10225_v54, %v9320_v42 }
0x2469   :  { %v4680_v43 = vpop.f32.mrf.mxu1 }
0x246a   :  { %v11696_v61 = vadd.f32 %v9320_v42, %v4680_v43  ;;  %10226 = vmatprep.subr.msk.mxu0 %vm277_vm1, %v11694_v55 }
0x246b   :  { %10227 = vmatpush3.xpose.msk.msra.mxu0 %vm277_vm1, %v11694_v55 }
0x246c   :  { %10228 = vmatprep.subr.msk.mxu0 %vm277_vm1, %v11696_v61 }
0x246f   :  { %10229 = vmatpush3.xpose.msk.msra.mxu0 %vm277_vm1, %v11696_v61 }
0x24f4   :  { %v10214_v8 = vpop.f32.mrf.mxu0 }
0x24f5   :  { %v4594_v3 = vadd.f32 %v10214_v8, %v9317_v63 }
0x24f6   :  { %v4588_v33 = vpop.f32.mrf.mxu0 }
0x24f7   :  { %v4589_v4 = vadd.f32 %v9317_v63, %v4588_v33  ;;  %v11709_v6 = vmul.f32 0.35355338, %v4594_v3  ;;  %v4690_v3 = vld [vmem:[%s12285_s15 + $0x8] sm:$0xff] }
0x24f9   :  { %v11707_v0 = vmul.f32 0.35355338, %v4589_v4 }
0x24fb   :  { %10230 = vmatprep.mubr.msk.f32.mxu0 %vm277_vm1, %v11707_v0 }
0x24fc   :  { %10231 = vmatmul.mubr.msk.f32.vlgmr.msra.gmra.mxu0 %vm277_vm1, %v11709_v6 }
0x25bc   :  { %v10232_v9 = vpop.f32.mrf.mxu0 }
0x25bd   :  { %v4780_v1 = vadd.f32 %v10232_v9, %v11716_v7 }
0x25be   :  { %v4774_v12 = vpop.f32.mrf.mxu0 }
0x25bf   :  { %v4775_v60 = vadd.f32 %v4774_v12, %v11719_v11  ;;  %v4786_v13 = vsel %vm363_vm2, %v4780_v1, -inf }
0x25c0   :  { %4787 = vmax.xlane.f32.xlu0 %v4786_v13 }
0x25c1   :  { %v4783_v16 = vsel %vm363_vm2, %v4775_v60, -inf }
0x25c2   :  { %4784 = vmax.xlane.f32.xlu1 %v4783_v16 }
0x25d3   :  { %4807 = vrot.lane.b32.xlu1 %v11694_v55, %s10911_s22 }
0x25d7   :  { %4898 = vrot.lane.b32.xlu1 %v11694_v55, %s10912_s5 }
0x25db   :  { %4896 = vrot.lane.b32.xlu1 %v11696_v61, %s10912_s5 }
0x2649   :  { %v4788_v17 = vpop.xlane.xlu0 %4787 }
0x264a   :  { %v4790_v31 = vsub.f32 %v4780_v1, %v4788_v17 }
0x264b   :  { %v4785_v10 = vpop.xlane.xlu1 %4784 }
0x264c   :  { %v4793_v18 = vmul.f32 1.442695, %v4790_v31  ;;  %v4789_v22 = vsub.f32 %v4775_v60, %v4785_v10 }
0x264e   :  { %10727 = vpow2.f32 %v4793_v18  ;;  %v4791_v20 = vmul.f32 1.442695, %v4789_v22 }
0x264f   :  { %v4808_v25 = vpop.permute.xlu1 %4807 }
0x2650   :  { %10729 = vpow2.f32 %v4791_v20  ;;  %10233 = vmatprep.subr.mxu1 %v4808_v25 }
0x2651   :  { %10234 = vmatpush3.msra.mxu1 %v4808_v25 }
0x2653   :  { %v4899_v29 = vpop.permute.xlu1 %4898 }
0x2657   :  { %v4897_v15 = vpop.permute.xlu1 %4896 }
0x265b   :  { %v10728_v26 = vpop.eup %10727 }
0x265c   :  { %v4798_v14 = vsel %vm363_vm2, %v10728_v26, 0.0 }
0x265d   :  { %v10730_v56 = vpop.eup %10729  ;;  %4799 = vadd.xlane.f32.xlu0 %v4798_v14 }
0x265e   :  { %v4795_v53 = vsel %vm363_vm2, %v10730_v56, 0.0 }
0x265f   :  { %4796 = vadd.xlane.f32.xlu1 %v4795_v53 }
0x2670   :  { %4894 = vrot.lane.b32.xlu1 %v11709_v6, %s10912_s5 }
0x2673   :  { %4805 = vrot.lane.b32.xlu0 %v11696_v61, %s10911_s22 }
0x2677   :  { %4892 = vrot.lane.b32.xlu0 %v11707_v0, %s10912_s5 }
0x26e6   :  { %v4800_v32 = vpop.xlane.xlu0 %4799 }
0x26e7   :  { %10731 = vrcp.f32 %v4800_v32 }
0x26e8   :  { %v4797_v34 = vpop.xlane.xlu1 %4796 }
0x26e9   :  { %10733 = vrcp.f32 %v4797_v34 }
0x26ea   :  { %v4806_v35 = vpop.permute.xlu0 %4805 }
0x26eb   :  { %10235 = vmatprep.subr.mxu1 %v4806_v35 }
0x26ec   :  { %10236 = vmatpush3.msra.mxu1 %v4806_v35  ;;  %v4895_v28 = vpop.permute.xlu1 %4894 }
0x26ed   :  { %10240 = vmatprep.subr.msk.mxu1 %vm277_vm1, %v4899_v29 }
0x26ee   :  { %v4893_v59 = vpop.permute.xlu0 %4892 }
0x26f4   :  { %v10732_v36 = vpop.eup %10731 }
0x26f5   :  { %v4804_v38 = vmul.f32 %v10732_v36, %v10728_v26 }
0x26f6   :  { %v10734_v37 = vpop.eup %10733 }
0x26f7   :  { %v4802_v24 = vmul.f32 %v10734_v37, %v10730_v56 }
0x26f9   :  { %10237 = vmatprep.mubr.msk.f32.mxu1 %vm363_vm2, %v4802_v24 }
0x26fa   :  { %10238 = vmatmul.mubr.msk.f32.vlgmr.msra.gmra.mxu1 %vm363_vm2, %v4804_v38 }
0x26fb   :  { %10241 = vmatpush3.xpose.msk.msra.mxu1 %vm277_vm1, %v4899_v29  ;;  %10244 = vmatprep.mubr.msk.f32.mxu1 %vm277_vm1, %v4893_v59 }
0x26fc   :  { %10242 = vmatprep.subr.msk.mxu1 %vm277_vm1, %v4897_v15 }
0x26ff   :  { %10243 = vmatpush3.xpose.msk.msra.mxu1 %vm277_vm1, %v4897_v15 }
0x2700   :  { %10259 = vmatprep.subr.mxu1 %v4689_v58 }
0x2702   :  { %10245 = vmatmul.mubr.msk.f32.vlgmr.msra.gmra.mxu1 %vm277_vm1, %v4895_v28 }
0x2703   :  { %10260 = vmatpush3.msra.mxu1 %v4689_v58 }
0x27ba   :  { %v10239_v27 = vpop.f32.mrf.mxu1 }
0x27bc   :  { %v4883_v39 = vpop.f32.mrf.mxu1 }
0x27bd   :  { %10261 = vmatprep.mubr.msk.f32.mxu1 %vm277_vm1, %v4883_v39 }
0x27be   :  { %10262 = vmatmul.mubr.msk.f32.vlgmr.msra.gmra.mxu1 %vm277_vm1, %v10239_v27 }
0x27c2   :  { %v10246_v23 = vpop.f32.mrf.mxu1 }
0x27c3   :  { %v4980_v40 = vadd.f32 %v10246_v23, %v11716_v7 }
0x27c4   :  { %v4974_v41 = vpop.f32.mrf.mxu1 }
0x27c5   :  { %v4975_v44 = vadd.f32 %v4974_v41, %v11719_v11  ;;  %v4986_v45 = vsel %vm363_vm2, %v4980_v40, -inf }
0x27c6   :  { %4987 = vmax.xlane.f32.xlu1 %v4986_v45 }
0x27c7   :  { %v4983_v19 = vsel %vm363_vm2, %v4975_v44, -inf }
0x27c8   :  { %4984 = vmax.xlane.f32.xlu0 %v4983_v19 }
0x27d7   :  { %5007 = vrot.lane.b32.xlu1 %v11694_v55, %s10910_s0 }
0x27db   :  { %5260 = vrot.lane.b32.xlu1 %v11694_v55, %s12248_s1 }
0x27df   :  { %5258 = vrot.lane.b32.xlu1 %v11696_v61, %s12248_s1 }
0x27e3   :  { %5256 = vrot.lane.b32.xlu1 %v11709_v6, %s12248_s1 }
0x27e7   :  { %5541 = vrot.lane.b32.xlu1 %v11696_v61, %s12244_s7 }
0x27eb   :  { %5539 = vrot.lane.b32.xlu1 %v11709_v6, %s12244_s7 }
0x284f   :  { %v4988_v21 = vpop.xlane.xlu1 %4987 }
0x2850   :  { %v4990_v46 = vsub.f32 %v4980_v40, %v4988_v21 }
0x2851   :  { %v4985_v5 = vpop.xlane.xlu0 %4984 }
0x2852   :  { %v4993_v47 = vmul.f32 1.442695, %v4990_v46  ;;  %v4989_v2 = vsub.f32 %v4975_v44, %v4985_v5 }
0x2853   :  { %v5008_v48 = vpop.permute.xlu1 %5007 }
0x2854   :  { %10735 = vpow2.f32 %v4993_v47  ;;  %v4991_v49 = vmul.f32 1.442695, %v4989_v2  ;;  %10247 = vmatprep.subr.mxu0 %v5008_v48 }
0x2855   :  { %10248 = vmatpush3.msra.mxu0 %v5008_v48  ;;  %v4691_v48 = vld [vmem:[%s12285_s15 + $0x10] sm:$0xff] }
0x2856   :  { %10737 = vpow2.f32 %v4991_v49 }
0x2857   :  { %v5261_v1 = vpop.permute.xlu1 %5260 }
0x285b   :  { %v5259_v60 = vpop.permute.xlu1 %5258 }
0x285f   :  { %v5257_v17 = vpop.permute.xlu1 %5256 }
0x2861   :  { %v10736_v50 = vpop.eup %10735 }
0x2862   :  { %v4998_v51 = vsel %vm363_vm2, %v10736_v50, 0.0 }
0x2863   :  { %v10738_v42 = vpop.eup %10737  ;;  %4999 = vadd.xlane.f32.xlu0 %v4998_v51  ;;  %v5542_v10 = vpop.permute.xlu1 %5541 }
0x2864   :  { %v4995_v54 = vsel %vm363_vm2, %v10738_v42, 0.0 }
0x2867   :  { %4996 = vadd.xlane.f32.xlu0 %v4995_v54  ;;  %v5540_v18 = vpop.permute.xlu1 %5539 }
0x287d   :  { %5005 = vrot.lane.b32.xlu0 %v11696_v61, %s10910_s0 }
0x2881   :  { %5254 = vrot.lane.b32.xlu0 %v11707_v0, %s12248_s1  ;;  %s12293_s1 = sld [smem:[#allocation26_spill]] }
0x2885   :  { %5543 = vrot.lane.b32.xlu0 %v11694_v55, %s12244_s7 }
0x2889   :  { %5537 = vrot.lane.b32.xlu0 %v11707_v0, %s12244_s7  ;;  %s12291_s7 = sld [smem:[#allocation19_spill]] }
0x28ec   :  { %v5000_v43 = vpop.xlane.xlu0 %4999 }
0x28ed   :  { %10739 = vrcp.f32 %v5000_v43 }
0x28f0   :  { %v4997_v63 = vpop.xlane.xlu0 %4996 }
0x28f1   :  { %10741 = vrcp.f32 %v4997_v63 }
0x28f4   :  { %v5006_v8 = vpop.permute.xlu0 %5005 }
0x28f5   :  { %10249 = vmatprep.subr.mxu0 %v5006_v8 }
0x28f6   :  { %10250 = vmatpush3.msra.mxu0 %v5006_v8 }
0x28f7   :  { %10254 = vmatprep.subr.mxu0 %v4690_v3 }
0x28f8   :  { %v5255_v0 = vpop.permute.xlu0 %5254 }
0x28fa   :  { %v10740_v33 = vpop.eup %10739 }
0x28fb   :  { %v5004_v9 = vmul.f32 %v10740_v33, %v10736_v50  ;;  %v10263_v33 = vpop.f32.mrf.mxu1 }
0x28fc   :  { %v5544_v16 = vpop.permute.xlu0 %5543 }
0x28fe   :  { %v10742_v4 = vpop.eup %10741 }
0x28ff   :  { %v5002_v6 = vmul.f32 %v10742_v4, %v10738_v42  ;;  %v5245_v4 = vpop.f32.mrf.mxu1 }
0x2900   :  { %v5538_v31 = vpop.permute.xlu0 %5537 }
0x2901   :  { %10251 = vmatprep.mubr.msk.f32.mxu0 %vm363_vm2, %v5002_v6 }
0x2902   :  { %10252 = vmatmul.mubr.msk.f32.vlgmr.msra.gmra.mxu0 %vm363_vm2, %v5004_v9 }
0x2903   :  { %10255 = vmatpush3.msra.mxu0 %v4690_v3 }
0x2904   :  { %10264 = vmatprep.subr.msk.mxu0 %vm277_vm1, %v5261_v1 }
0x29c2   :  { %v10253_v12 = vpop.f32.mrf.mxu0 }
0x29c4   :  { %v5083_v13 = vpop.f32.mrf.mxu0 }
0x29c5   :  { %10256 = vmatprep.mubr.msk.f32.mxu0 %vm277_vm1, %v5083_v13 }
0x29c6   :  { %10257 = vmatmul.mubr.msk.f32.vlgmr.msra.gmra.mxu0 %vm277_vm1, %v10253_v12 }
0x29c7   :  { %10265 = vmatpush3.xpose.msk.msra.mxu0 %vm277_vm1, %v5261_v1  ;;  %10268 = vmatprep.mubr.msk.f32.mxu0 %vm277_vm1, %v5255_v0 }
0x29c8   :  { %10266 = vmatprep.subr.msk.mxu0 %vm277_vm1, %v5259_v60 }
0x29cb   :  { %10267 = vmatpush3.xpose.msk.msra.mxu0 %vm277_vm1, %v5259_v60 }
0x29cc   :  { %10283 = vmatprep.subr.msk.mxu0 %vm277_vm1, %v5544_v16 }
0x29ce   :  { %10269 = vmatmul.mubr.msk.f32.vlgmr.msra.gmra.mxu0 %vm277_vm1, %v5257_v17 }
0x29cf   :  { %10284 = vmatpush3.xpose.msk.msra.mxu0 %vm277_vm1, %v5544_v16  ;;  %10287 = vmatprep.mubr.msk.f32.mxu0 %vm277_vm1, %v5538_v31  ;;  %v4692_v16 = vld [vmem:[%s12285_s15 + $0x18] sm:$0xff] }
0x29d0   :  { %10285 = vmatprep.subr.msk.mxu0 %vm277_vm1, %v5542_v10 }
0x29d3   :  { %10286 = vmatpush3.xpose.msk.msra.mxu0 %vm277_vm1, %v5542_v10 }
0x29d6   :  { %10288 = vmatmul.mubr.msk.f32.vlgmr.msra.gmra.mxu0 %vm277_vm1, %v5540_v18 }
0x2a86   :  { %v11793_v22 = vpop.f32.mrf.mxu0 }
0x2a87   :  { %v5251_v17 = vadd.f32 %v10263_v33, %v11793_v22 }
0x2a88   :  { %v11795_v20 = vpop.f32.mrf.mxu0 }
0x2a89   :  { %v5246_v10 = vadd.f32 %v5245_v4, %v11795_v20 }
0x2a8e   :  { %v10270_v25 = vpop.f32.mrf.mxu0 }
0x2a8f   :  { %v5342_v26 = vadd.f32 %v10270_v25, %v11716_v7 }
0x2a90   :  { %v5336_v14 = vpop.f32.mrf.mxu0 }
0x2a91   :  { %v5337_v56 = vadd.f32 %v5336_v14, %v11719_v11  ;;  %v5348_v53 = vsel %vm363_vm2, %v5342_v26, -inf }
0x2a92   :  { %5349 = vmax.xlane.f32.xlu1 %v5348_v53  ;;  %v9355_v53 = vld [vmem:[%s12286_s16] ss:$0 sm:$0xff] }
0x2a93   :  { %v5345_v29 = vsel %vm363_vm2, %v5337_v56, -inf }
0x2a94   :  { %5346 = vmax.xlane.f32.xlu0 %v5345_v29 }
0x2a96   :  { %v10289_v15 = vpop.f32.mrf.mxu0 }
0x2a97   :  { %v5625_v19 = vadd.f32 %v10289_v15, %v11716_v7 }
0x2a98   :  { %v5619_v32 = vpop.f32.mrf.mxu0 }
0x2a99   :  { %v5620_v34 = vadd.f32 %v5619_v32, %v11719_v11  ;;  %v5631_v46 = vsel %vm363_vm2, %v5625_v19, -inf }
0x2a9b   :  { %v5628_v35 = vsel %vm363_vm2, %v5620_v34, -inf }
0x2aa3   :  { %5369 = vrot.lane.b32.xlu1 %v11694_v55, %s10915_s28 }
0x2ac7   :  { %5629 = vmax.xlane.f32.xlu1 %v5628_v35 }
0x2b1b   :  { %v5350_v36 = vpop.xlane.xlu1 %5349 }
0x2b1c   :  { %v5352_v37 = vsub.f32 %v5342_v26, %v5350_v36 }
0x2b1d   :  { %v5347_v24 = vpop.xlane.xlu0 %5346 }
0x2b1e   :  { %v5355_v38 = vmul.f32 1.442695, %v5352_v37  ;;  %v5351_v59 = vsub.f32 %v5337_v56, %v5347_v24 }
0x2b1f   :  { %v5370_v28 = vpop.permute.xlu1 %5369 }
0x2b20   :  { %10743 = vpow2.f32 %v5355_v38  ;;  %v5353_v58 = vmul.f32 1.442695, %v5351_v59  ;;  %10271 = vmatprep.subr.mxu1 %v5370_v28 }
0x2b21   :  { %10272 = vmatpush3.msra.mxu1 %v5370_v28 }
0x2b22   :  { %10745 = vpow2.f32 %v5353_v58 }
0x2b2d   :  { %v10744_v27 = vpop.eup %10743 }
0x2b2e   :  { %v5360_v39 = vsel %vm363_vm2, %v10744_v27, 0.0 }
0x2b2f   :  { %v10746_v23 = vpop.eup %10745  ;;  %5361 = vadd.xlane.f32.xlu0 %v5360_v39 }
0x2b30   :  { %v5357_v11 = vsel %vm363_vm2, %v10746_v23, 0.0 }
0x2b33   :  { %5358 = vadd.xlane.f32.xlu0 %v5357_v11 }
0x2b49   :  { %5367 = vrot.lane.b32.xlu0 %v11696_v61, %s10915_s28 }
0x2b50   :  { %v5630_v40 = vpop.xlane.xlu1 %5629 }
0x2b51   :  { %v5634_v41 = vsub.f32 %v5620_v34, %v5630_v40  ;;  %v5877_v40 = vld [vmem:[%s12287_s18 + $0x18] sm:$0xff] }
0x2b52   :  { %10302 = vmatprep.subr.mxu0 %v5877_v40 }
0x2b53   :  { %v5636_v44 = vmul.f32 1.442695, %v5634_v41  ;;  %v5876_v41 = vld [vmem:[%s12287_s18 + $0x10] sm:$0xff]  ;;  %10303 = vmatpush3.msra.mxu0 %v5877_v40 }
0x2b54   :  { %10304 = vmatprep.subr.mxu0 %v5876_v41 }
0x2b55   :  { %10747 = vpow2.f32 %v5636_v44  ;;  %v5875_v44 = vld [vmem:[%s12287_s18 + $0x8] sm:$0xff]  ;;  %10305 = vmatpush3.msra.mxu0 %v5876_v41 }
0x2b56   :  { %10306 = vmatprep.subr.mxu0 %v5875_v44 }
0x2b57   :  { %10307 = vmatpush3.msra.mxu0 %v5875_v44 }
0x2b62   :  { %v10748_v45 = vpop.eup %10747 }
0x2b63   :  { %v5640_v21 = vsel %vm363_vm2, %v10748_v45, 0.0 }
0x2b64   :  { %5641 = vadd.xlane.f32.xlu1 %v5640_v21  ;;  %v5974_v21 = vld [vmem:[%s12288_s25 + $0x30] sm:$0xff] }
0x2b68   :  { %5632 = vmax.xlane.f32.xlu0 %v5631_v46  ;;  %v5973_v46 = vld [vmem:[%s12288_s25 + $0x28] sm:$0xff] }
0x2b75   :  { %5652 = vrot.lane.b32.xlu1 %v11694_v55, %s12246_s2 }
0x2bb8   :  { %v5362_v5 = vpop.xlane.xlu0 %5361 }
0x2bb9   :  { %10749 = vrcp.f32 %v5362_v5  ;;  %v5972_v5 = vld [vmem:[%s12288_s25 + $0x20] sm:$0xff] }
0x2bbc   :  { %v5359_v47 = vpop.xlane.xlu0 %5358 }
0x2bbd   :  { %10751 = vrcp.f32 %v5359_v47 }
0x2bc0   :  { %v5368_v2 = vpop.permute.xlu0 %5367 }
0x2bc1   :  { %10273 = vmatprep.subr.mxu1 %v5368_v2 }
0x2bc2   :  { %10274 = vmatpush3.msra.mxu1 %v5368_v2 }
0x2bc3   :  { %10278 = vmatprep.subr.mxu1 %v4691_v48 }
0x2bc6   :  { %v10750_v49 = vpop.eup %10749 }
0x2bc7   :  { %v5366_v51 = vmul.f32 %v10750_v49, %v10744_v27 }
0x2bca   :  { %v10752_v7 = vpop.eup %10751 }
0x2bcb   :  { %v5364_v50 = vmul.f32 %v10752_v7, %v10746_v23 }
0x2bcd   :  { %10275 = vmatprep.mubr.msk.f32.mxu1 %vm363_vm2, %v5364_v50 }
0x2bce   :  { %10276 = vmatmul.mubr.msk.f32.vlgmr.msra.gmra.mxu1 %vm363_vm2, %v5366_v51 }
0x2bcf   :  { %10279 = vmatpush3.msra.mxu1 %v4691_v48 }
0x2bed   :  { %v5642_v42 = vpop.xlane.xlu1 %5641 }
0x2bf1   :  { %v5653_v55 = vpop.permute.xlu1 %5652  ;;  %v5633_v54 = vpop.xlane.xlu0 %5632 }
0x2bf2   :  { %v5635_v43 = vsub.f32 %v5625_v19, %v5633_v54  ;;  %10290 = vmatprep.subr.mxu1 %v5653_v55  ;;  %v5975_v19 = vld [vmem:[%s12288_s25 + $0x38] sm:$0xff] }
0x2bf4   :  { %v5638_v63 = vmul.f32 1.442695, %v5635_v43 }
0x2bf6   :  { %10753 = vpow2.f32 %v5638_v63 }
0x2bf7   :  { %10755 = vrcp.f32 %v5642_v42  ;;  %v9356_v42 = vld [vmem:[%s12289_s11] ss:$0 sm:$0xff] }
0x2c03   :  { %v10754_v8 = vpop.eup %10753 }
0x2c04   :  { %v5643_v3 = vsel %vm363_vm2, %v10754_v8, 0.0  ;;  %v10756_v6 = vpop.eup %10755 }
0x2c05   :  { %5644 = vadd.xlane.f32.xlu0 %v5643_v3  ;;  %v5647_v12 = vmul.f32 %v10756_v6, %v10748_v45  ;;  %v5874_v45 = vld [vmem:[%s12287_s18] sm:$0xff]  ;;  %v5971_v6 = vld [vmem:[%s12288_s25 + $0x18] sm:$0xff] }
0x2c06   :  { %10308 = vmatprep.subr.mxu0 %v5874_v45 }
0x2c07   :  { %10309 = vmatpush3.msra.mxu0 %v5874_v45  ;;  %v9364_v45 = vld [vmem:[%s12293_s1] ss:$0 sm:$0xff] }
0x2c1b   :  { %5650 = vrot.lane.b32.xlu0 %v11696_v61, %s12246_s2  ;;  %s12292_s2 = sld [smem:[#allocation21_spill]] }
0x2c8e   :  { %v10277_v9 = vpop.f32.mrf.mxu1  ;;  %v5645_v1 = vpop.xlane.xlu0 %5644 }
0x2c8f   :  { %10757 = vrcp.f32 %v5645_v1  ;;  %v5969_v1 = vld [vmem:[%s12288_s25 + $0x8] sm:$0xff] }
0x2c90   :  { %v5445_v0 = vpop.f32.mrf.mxu1 }
0x2c91   :  { %10280 = vmatprep.mubr.msk.f32.mxu1 %vm277_vm1, %v5445_v0  ;;  %v5968_v0 = vld [vmem:[%s12288_s25] sm:$0xff] }
0x2c92   :  { %10281 = vmatmul.mubr.msk.f32.vlgmr.msra.gmra.mxu1 %vm277_vm1, %v10277_v9  ;;  %v5651_v60 = vpop.permute.xlu0 %5650  ;;  %v5970_v9 = vld [vmem:[%s12288_s25 + $0x10] sm:$0xff] }
0x2c93   :  { %10291 = vmatpush3.msra.mxu1 %v5653_v55  ;;  %10294 = vmatprep.mubr.msk.f32.mxu1 %vm363_vm2, %v5647_v12  ;;  %v9358_v12 = vld [vmem:[%s12291_s7] ss:$0 sm:$0xff] }
0x2c94   :  { %10292 = vmatprep.subr.mxu1 %v5651_v60 }
0x2c95   :  { %10293 = vmatpush3.msra.mxu1 %v5651_v60 }
0x2c96   :  { %10297 = vmatprep.subr.mxu1 %v4692_v16 }
0x2c9c   :  { %v10758_v61 = vpop.eup %10757 }
0x2c9d   :  { %v5649_v13 = vmul.f32 %v10758_v61, %v10754_v8  ;;  %v9357_v8 = vld [vmem:[%s12290_s10] ss:$0 sm:$0xff] }
0x2c9f   :  { %10295 = vmatmul.mubr.msk.f32.vlgmr.msra.gmra.mxu1 %vm363_vm2, %v5649_v13 }
0x2ca0   :  { %10298 = vmatpush3.msra.mxu1 %v4692_v16 }
0x2ca1   :  { %10313 = vmatprep.subr.mxu1 %v5975_v19 }
0x2d52   :  { %v10282_v31 = vpop.f32.mrf.mxu1 }
0x2d53   :  { %v5536_v18 = vadd.f32 %v10282_v31, %v5251_v17 }
0x2d54   :  { %v5526_v25 = vpop.f32.mrf.mxu1 }
0x2d55   :  { %v5535_v26 = vadd.f32 %v5526_v25, %v5246_v10  ;;  %v9361_v10 = vld [vmem:[%s12292_s2] ss:$0 sm:$0xff] }
0x2d5f   :  { %v10296_v14 = vpop.f32.mrf.mxu1 }
0x2d61   :  { %v5728_v56 = vpop.f32.mrf.mxu1 }
0x2d62   :  { %10299 = vmatprep.mubr.msk.f32.mxu1 %vm277_vm1, %v5728_v56 }
0x2d63   :  { %10300 = vmatmul.mubr.msk.f32.vlgmr.msra.gmra.mxu1 %vm277_vm1, %v10296_v14 }
0x2d64   :  { %10314 = vmatpush3.msra.mxu1 %v5975_v19 }
0x2d65   :  { %10315 = vmatprep.subr.mxu1 %v5974_v21 }
0x2d66   :  { %10316 = vmatpush3.msra.mxu1 %v5974_v21 }
0x2d67   :  { %10317 = vmatprep.subr.mxu1 %v5973_v46 }
0x2d68   :  { %10318 = vmatpush3.msra.mxu1 %v5973_v46 }
0x2d69   :  { %10319 = vmatprep.subr.mxu1 %v5972_v5 }
0x2d6a   :  { %10320 = vmatpush3.msra.mxu1 %v5972_v5 }
0x2d6b   :  { %10321 = vmatprep.subr.mxu1 %v5971_v6 }
0x2d6c   :  { %10322 = vmatpush3.msra.mxu1 %v5971_v6 }
0x2d6d   :  { %10323 = vmatprep.subr.mxu1 %v5970_v9 }
0x2d6e   :  { %10324 = vmatpush3.msra.mxu1 %v5970_v9  ;;  %v11902_v9 = vld [vmem:[%s12275_s3] sm:$0xff] }
0x2d6f   :  { %10325 = vmatprep.subr.mxu1 %v5969_v1 }
0x2d70   :  { %10326 = vmatpush3.msra.mxu1 %v5969_v1 }
0x2d71   :  { %10327 = vmatprep.subr.mxu1 %v5968_v0 }
0x2d72   :  { %10328 = vmatpush3.msra.mxu1 %v5968_v0 }
0x2e23   :  { %v10301_v29 = vpop.f32.mrf.mxu1 }
0x2e24   :  { %v5819_v15 = vadd.f32 %v10301_v29, %v5536_v18 }
0x2e25   :  { %v5809_v32 = vpop.f32.mrf.mxu1 }
0x2e26   :  { %v5827_v34 = vadd.f32 %v9355_v53, %v5819_v15  ;;  %v5818_v35 = vadd.f32 %v5809_v32, %v5535_v26 }
0x2e28   :  { %v5826_v36 = vadd.f32 %v9355_v53, %v5818_v35  ;;  %v5829_v22 = vadd.f32 %v5827_v34, %v11687_v52 }
0x2e2a   :  { %v5835_v20 = vsel %vm182_vm0, %v5829_v22, 0.0  ;;  %v5828_v37 = vadd.f32 %v5826_v36, %v11685_v62 }
0x2e2b   :  { %5836 = vadd.xlane.f32.xlu0 %v5835_v20 }
0x2e2c   :  { %v5832_v24 = vsel %vm182_vm0, %v5828_v37, 0.0 }
0x2e2d   :  { %5833 = vadd.xlane.f32.xlu1 %v5832_v24 }
0x2eb4   :  { %v5837_v38 = vpop.xlane.xlu0 %5836 }
0x2eb5   :  { %v5839_v59 = vmul.f32 0.03125, %v5837_v38 }
0x2eb6   :  { %v5834_v28 = vpop.xlane.xlu1 %5833 }
0x2eb7   :  { %v5841_v58 = vsub.f32 %v5829_v22, %v5839_v59  ;;  %v5838_v27 = vmul.f32 0.03125, %v5834_v28  ;;  %v9369_v28 = vld [vmem:[%s12272_s13 + $0x38] sm:$0xff] }
0x2eb8   :  { %10332 = vmatprep.subr.mxu0 %v9369_v28 }
0x2eb9   :  { %v5840_v39 = vsub.f32 %v5828_v37, %v5838_v27  ;;  %v5843_v23 = vmul.f32 %v5841_v58, %v5841_v58  ;;  %v9367_v27 = vld [vmem:[%s12272_s13 + $0x28] sm:$0xff] }
0x2ebb   :  { %v5847_v52 = vsel %vm182_vm0, %v5843_v23, 0.0  ;;  %v5842_v11 = vmul.f32 %v5840_v39, %v5840_v39 }
0x2ebc   :  { %5848 = vadd.xlane.f32.xlu0 %v5847_v52 }
0x2ebd   :  { %v5844_v62 = vsel %vm182_vm0, %v5842_v11, 0.0 }
0x2ebe   :  { %5845 = vadd.xlane.f32.xlu1 %v5844_v62 }
0x2f45   :  { %v5849_v47 = vpop.xlane.xlu0 %5848 }
0x2f46   :  { %v5851_v2 = vmul.f32 0.03125, %v5849_v47  ;;  %v9365_v47 = vld [vmem:[%s11112_s9] ss:$0 sm:$0xff] }
0x2f47   :  { %v5846_v48 = vpop.xlane.xlu1 %5845 }
0x2f48   :  { %v5853_v49 = vadd.f32 1e-05, %v5851_v2  ;;  %v5850_v7 = vmul.f32 0.03125, %v5846_v48 }
0x2f4a   :  { %10759 = vrsqrt.f32 %v5853_v49  ;;  %v5852_v50 = vadd.f32 1e-05, %v5850_v7  ;;  %v9371_v7 = vld [vmem:[%s12274_s29 + $0x1] ss:$0 sm:$0xff]  ;;  %s12296_s29 = smov 104  }
0x2f4c   :  { %10761 = vrsqrt.f32 %v5852_v50 }
0x2f57   :  { %v10760_v51 = vpop.eup %10759 }
0x2f58   :  { %v5857_v55 = vmul.f32 %v10760_v51, %v5841_v58  ;;  %v9368_v58 = vld [vmem:[%s12272_s13 + $0x30] sm:$0xff] }
0x2f59   :  { %v10762_v54 = vpop.eup %10761 }
0x2f5a   :  { %v5856_v43 = vmul.f32 %v10762_v54, %v5840_v39  ;;  %v5865_v63 = vmul.f32 %v9356_v42, %v5857_v55  ;;  %v9366_v39 = vld [vmem:[%s12272_s13 + $0x20] sm:$0xff]  ;;  %s12295_s13 = smov 72  }
0x2f5c   :  { %v5864_v3 = vmul.f32 %v9356_v42, %v5856_v43  ;;  %v5873_v4 = vadd.f32 %v9357_v8, %v5865_v63 }
0x2f5e   :  { %v5872_v33 = vadd.f32 %v9357_v8, %v5864_v3 }
0x2f60   :  { %10310 = vmatprep.mubr.msk.f32.mxu0 %vm182_vm0, %v5872_v33 }
0x2f61   :  { %10311 = vmatmul.mubr.msk.f32.vlgmr.msra.gmra.mxu0 %vm182_vm0, %v5873_v4 }
0x2f62   :  { %10333 = vmatpush3.msra.mxu0 %v9369_v28 }
0x2f63   :  { %10334 = vmatprep.subr.mxu0 %v9368_v58 }
0x2f64   :  { %10335 = vmatpush3.msra.mxu0 %v9368_v58 }
0x2f65   :  { %10336 = vmatprep.subr.mxu0 %v9367_v27 }
0x2f66   :  { %10337 = vmatpush3.msra.mxu0 %v9367_v27 }
0x2f67   :  { %10338 = vmatprep.subr.mxu0 %v9366_v39 }
0x2f68   :  { %10339 = vmatpush3.msra.mxu0 %v9366_v39 }
0x3021   :  { %v10312_v60 = vpop.f32.mrf.mxu0 }
0x3022   :  { %v5963_v61 = vadd.f32 %v10312_v60, %v9358_v12 }
0x3023   :  { %v5957_v13 = vpop.f32.mrf.mxu0 }
0x3024   :  { %v5958_v16 = vadd.f32 %v9358_v12, %v5957_v13  ;;  %v5967_v31 = vmax.f32 %v5963_v61, 0.0 }
0x3026   :  { %v5966_v17 = vmax.f32 %v5958_v16, 0.0 }
0x3028   :  { %10329 = vmatprep.mubr.msk.f32.mxu1 %vm1565_vm3, %v5966_v17 }
0x3029   :  { %10330 = vmatmul.mubr.msk.f32.vlgmr.msra.gmra.mxu1 %vm1565_vm3, %v5967_v31 }
0x30e9   :  { %v10331_v18 = vpop.f32.mrf.mxu1 }
0x30ea   :  { %v6061_v25 = vadd.f32 %v10331_v18, %v9361_v10 }
0x30eb   :  { %v6055_v26 = vpop.f32.mrf.mxu1 }
0x30ec   :  { %v6065_v14 = vadd.f32 %v6061_v25, %v5873_v4  ;;  %v6056_v56 = vadd.f32 %v9361_v10, %v6055_v26 }
0x30ee   :  { %v6064_v53 = vadd.f32 %v6056_v56, %v5872_v33  ;;  %v6071_v29 = vsel %vm182_vm0, %v6065_v14, 0.0  ;;  %v11898_v33 = vld [vmem:[%s12275_s3 + $0x8] sm:$0xff]  ;;  %s12298_s3 = smov 40  }
0x30ef   :  { %6072 = vadd.xlane.f32.xlu0 %v6071_v29 }
0x30f0   :  { %v6068_v15 = vsel %vm182_vm0, %v6064_v53, 0.0 }
0x30f1   :  { %6069 = vadd.xlane.f32.xlu1 %v6068_v15 }
0x3178   :  { %v6073_v32 = vpop.xlane.xlu0 %6072 }
0x3179   :  { %v6075_v34 = vmul.f32 0.03125, %v6073_v32 }
0x317a   :  { %v6070_v35 = vpop.xlane.xlu1 %6069 }
0x317b   :  { %v6077_v36 = vsub.f32 %v6065_v14, %v6075_v34  ;;  %v6074_v22 = vmul.f32 0.03125, %v6070_v35 }
0x317d   :  { %v6076_v20 = vsub.f32 %v6064_v53, %v6074_v22  ;;  %v6079_v37 = vmul.f32 %v6077_v36, %v6077_v36 }
0x317f   :  { %v6083_v24 = vsel %vm182_vm0, %v6079_v37, 0.0  ;;  %v6078_v38 = vmul.f32 %v6076_v20, %v6076_v20 }
0x3180   :  { %6084 = vadd.xlane.f32.xlu0 %v6083_v24  ;;  %v9374_v24 = vld [vmem:[%s12276_s8 + $0x20] sm:$0xff] }
0x3181   :  { %v6080_v59 = vsel %vm182_vm0, %v6078_v38, 0.0 }
0x3182   :  { %6081 = vadd.xlane.f32.xlu1 %v6080_v59 }
0x3209   :  { %v6085_v23 = vpop.xlane.xlu0 %6084 }
0x320a   :  { %v6087_v52 = vmul.f32 0.03125, %v6085_v23 }
0x320b   :  { %v6082_v11 = vpop.xlane.xlu1 %6081 }
0x320c   :  { %v6089_v62 = vadd.f32 1e-05, %v6087_v52  ;;  %v6086_v40 = vmul.f32 0.03125, %v6082_v11 }
0x320e   :  { %10763 = vrsqrt.f32 %v6089_v62  ;;  %v6088_v41 = vadd.f32 1e-05, %v6086_v40 }
0x3210   :  { %10765 = vrsqrt.f32 %v6088_v41 }
0x321b   :  { %v10764_v44 = vpop.eup %10763 }
0x321c   :  { %v6093_v19 = vmul.f32 %v10764_v44, %v6077_v36 }
0x321d   :  { %v10766_v21 = vpop.eup %10765 }
0x321e   :  { %v6092_v46 = vmul.f32 %v10766_v21, %v6076_v20  ;;  %v6101_v5 = vmul.f32 %v9364_v45, %v6093_v19 }
0x3220   :  { %v6100_v2 = vmul.f32 %v9364_v45, %v6092_v46  ;;  %v11868_v49 = vadd.f32 %v9365_v47, %v6101_v5 }
0x3222   :  { %v11866_v48 = vadd.f32 %v9365_v47, %v6100_v2 }
0x3224   :  { %10340 = vmatprep.mubr.msk.f32.mxu0 %vm182_vm0, %v11866_v48 }
0x3225   :  { %10341 = vmatmul.mubr.msk.f32.vlgmr.msra.gmra.mxu0 %vm182_vm0, %v11868_v49 }
0x32e5   :  { %v10342_v50 = vpop.f32.mrf.mxu0 }
0x32e6   :  { %v11875_v51 = vadd.f32 %v10342_v50, %v9371_v7 }
0x32e7   :  { %v6195_v42 = vpop.f32.mrf.mxu0 }
0x32e8   :  { %v11877_v55 = vadd.f32 %v9371_v7, %v6195_v42  ;;  %6217 = vrot.lane.b32.xlu1 %v11875_v51, %s10911_s22  ;;  %v11893_v8 = vmul.f32 0.35355338, %v11875_v51  ;;  %v9375_v42 = vld [vmem:[%s12276_s8 + $0x28] sm:$0xff] }
0x32ea   :  { %6215 = vrot.lane.b32.xlu0 %v11877_v55, %s10911_s22  ;;  %v11884_v54 = vmul.f32 0.35355338, %v11877_v55 }
0x32ec   :  { %10347 = vmatprep.mubr.msk.f32.mxu0 %vm277_vm1, %v11884_v54 }
0x335a   :  { %v6218_v43 = vpop.permute.xlu1 %6217 }
0x335b   :  { %10343 = vmatprep.subr.msk.mxu0 %vm277_vm1, %v6218_v43 }
0x335c   :  { %10344 = vmatpush3.xpose.msk.msra.mxu0 %vm277_vm1, %v6218_v43  ;;  %v6216_v63 = vpop.permute.xlu0 %6215 }
0x335d   :  { %10345 = vmatprep.subr.msk.mxu0 %vm277_vm1, %v6216_v63 }
0x3360   :  { %10346 = vmatpush3.xpose.msk.msra.mxu0 %vm277_vm1, %v6216_v63 }
0x3363   :  { %10348 = vmatmul.mubr.msk.f32.vlgmr.msra.gmra.mxu0 %vm277_vm1, %v11893_v8 }
0x3423   :  { %v10349_v3 = vpop.f32.mrf.mxu0 }
0x3424   :  { %v6301_v4 = vadd.f32 %v11898_v33, %v10349_v3 }
0x3425   :  { %v6295_v6 = vpop.f32.mrf.mxu0 }
0x3426   :  { %v6296_v1 = vadd.f32 %v11902_v9, %v6295_v6  ;;  %v6307_v0 = vsel %vm363_vm2, %v6301_v4, -inf }
0x3427   :  { %6308 = vmax.xlane.f32.xlu0 %v6307_v0 }
0x3428   :  { %v6304_v12 = vsel %vm363_vm2, %v6296_v1, -inf }
0x3429   :  { %6305 = vmax.xlane.f32.xlu1 %v6304_v12 }
0x343a   :  { %6328 = vrot.lane.b32.xlu1 %v11875_v51, %s10913_s23 }
0x343e   :  { %6419 = vrot.lane.b32.xlu1 %v11875_v51, %s10910_s0 }
0x3442   :  { %6417 = vrot.lane.b32.xlu1 %v11877_v55, %s10910_s0 }
0x34b0   :  { %v6309_v60 = vpop.xlane.xlu0 %6308 }
0x34b1   :  { %v6311_v61 = vsub.f32 %v6301_v4, %v6309_v60 }
0x34b2   :  { %v6306_v13 = vpop.xlane.xlu1 %6305 }
0x34b3   :  { %v6314_v16 = vmul.f32 1.442695, %v6311_v61  ;;  %v6310_v17 = vsub.f32 %v6296_v1, %v6306_v13 }
0x34b5   :  { %10767 = vpow2.f32 %v6314_v16  ;;  %v6312_v31 = vmul.f32 1.442695, %v6310_v17 }
0x34b6   :  { %v6329_v10 = vpop.permute.xlu1 %6328 }
0x34b7   :  { %10769 = vpow2.f32 %v6312_v31  ;;  %10350 = vmatprep.subr.mxu1 %v6329_v10 }
0x34b8   :  { %10351 = vmatpush3.msra.mxu1 %v6329_v10 }
0x34ba   :  { %v6420_v56 = vpop.permute.xlu1 %6419 }
0x34be   :  { %v6418_v53 = vpop.permute.xlu1 %6417 }
0x34c2   :  { %v10768_v18 = vpop.eup %10767 }
0x34c3   :  { %v6319_v25 = vsel %vm363_vm2, %v10768_v18, 0.0 }
0x34c4   :  { %v10770_v26 = vpop.eup %10769  ;;  %6320 = vadd.xlane.f32.xlu0 %v6319_v25 }
0x34c5   :  { %v6316_v14 = vsel %vm363_vm2, %v10770_v26, 0.0 }
0x34c6   :  { %6317 = vadd.xlane.f32.xlu1 %v6316_v14 }
0x34d7   :  { %6415 = vrot.lane.b32.xlu1 %v11893_v8, %s10912_s5 }
0x34da   :  { %6326 = vrot.lane.b32.xlu0 %v11877_v55, %s10913_s23  ;;  %s12294_s23 = smov 112  }
0x34de   :  { %6413 = vrot.lane.b32.xlu0 %v11884_v54, %s10912_s5 }
0x354d   :  { %v6321_v29 = vpop.xlane.xlu0 %6320 }
0x354e   :  { %10771 = vrcp.f32 %v6321_v29 }
0x354f   :  { %v6318_v15 = vpop.xlane.xlu1 %6317 }
0x3550   :  { %10773 = vrcp.f32 %v6318_v15 }
0x3551   :  { %v6327_v32 = vpop.permute.xlu0 %6326 }
0x3552   :  { %10352 = vmatprep.subr.mxu1 %v6327_v32 }
0x3553   :  { %10353 = vmatpush3.msra.mxu1 %v6327_v32  ;;  %v6416_v37 = vpop.permute.xlu1 %6415 }
0x3554   :  { %10357 = vmatprep.subr.msk.mxu1 %vm277_vm1, %v6420_v56 }
0x3555   :  { %v6414_v20 = vpop.permute.xlu0 %6413 }
0x355b   :  { %v10772_v34 = vpop.eup %10771 }
0x355c   :  { %v6325_v22 = vmul.f32 %v10772_v34, %v10768_v18 }
0x355d   :  { %v10774_v35 = vpop.eup %10773 }
0x355e   :  { %v6323_v36 = vmul.f32 %v10774_v35, %v10770_v26 }
0x3560   :  { %10354 = vmatprep.mubr.msk.f32.mxu1 %vm363_vm2, %v6323_v36 }
0x3561   :  { %10355 = vmatmul.mubr.msk.f32.vlgmr.msra.gmra.mxu1 %vm363_vm2, %v6325_v22 }
0x3562   :  { %10358 = vmatpush3.xpose.msk.msra.mxu1 %vm277_vm1, %v6420_v56  ;;  %10361 = vmatprep.mubr.msk.f32.mxu1 %vm277_vm1, %v6414_v20 }
0x3563   :  { %10359 = vmatprep.subr.msk.mxu1 %vm277_vm1, %v6418_v53 }
0x3566   :  { %10360 = vmatpush3.xpose.msk.msra.mxu1 %vm277_vm1, %v6418_v53 }
0x3567   :  { %10376 = vmatprep.subr.mxu1 %v9374_v24 }
0x3569   :  { %10362 = vmatmul.mubr.msk.f32.vlgmr.msra.gmra.mxu1 %vm277_vm1, %v6416_v37 }
0x356a   :  { %10377 = vmatpush3.msra.mxu1 %v9374_v24 }
0x3621   :  { %v10356_v38 = vpop.f32.mrf.mxu1 }
0x3623   :  { %v6404_v59 = vpop.f32.mrf.mxu1 }
0x3624   :  { %10378 = vmatprep.mubr.msk.f32.mxu1 %vm277_vm1, %v6404_v59 }
0x3625   :  { %10379 = vmatmul.mubr.msk.f32.vlgmr.msra.gmra.mxu1 %vm277_vm1, %v10356_v38 }
0x3629   :  { %v10363_v28 = vpop.f32.mrf.mxu1 }
0x362a   :  { %v6501_v58 = vadd.f32 %v11898_v33, %v10363_v28 }
0x362b   :  { %v6495_v27 = vpop.f32.mrf.mxu1 }
0x362c   :  { %v6496_v39 = vadd.f32 %v11902_v9, %v6495_v27  ;;  %v6507_v23 = vsel %vm363_vm2, %v6501_v58, -inf }
0x362d   :  { %6508 = vmax.xlane.f32.xlu1 %v6507_v23 }
0x362e   :  { %v6504_v52 = vsel %vm363_vm2, %v6496_v39, -inf }
0x362f   :  { %6505 = vmax.xlane.f32.xlu0 %v6504_v52 }
0x363e   :  { %6528 = vrot.lane.b32.xlu1 %v11875_v51, %s10914_s26 }
0x3642   :  { %6781 = vrot.lane.b32.xlu1 %v11875_v51, %s10915_s28 }
0x3646   :  { %6779 = vrot.lane.b32.xlu1 %v11877_v55, %s10915_s28 }
0x364a   :  { %6777 = vrot.lane.b32.xlu1 %v11893_v8, %s12294_s23 }
0x364e   :  { %7062 = vrot.lane.b32.xlu1 %v11877_v55, %s12295_s13 }
0x3652   :  { %7060 = vrot.lane.b32.xlu1 %v11893_v8, %s12296_s29 }
0x36b6   :  { %v6509_v11 = vpop.xlane.xlu1 %6508 }
0x36b7   :  { %v6511_v62 = vsub.f32 %v6501_v58, %v6509_v11 }
0x36b8   :  { %v6506_v40 = vpop.xlane.xlu0 %6505 }
0x36b9   :  { %v6514_v41 = vmul.f32 1.442695, %v6511_v62  ;;  %v6510_v44 = vsub.f32 %v6496_v39, %v6506_v40 }
0x36ba   :  { %v6529_v45 = vpop.permute.xlu1 %6528 }
0x36bb   :  { %10775 = vpow2.f32 %v6514_v41  ;;  %v6512_v19 = vmul.f32 1.442695, %v6510_v44  ;;  %10364 = vmatprep.subr.mxu0 %v6529_v45 }
0x36bc   :  { %10365 = vmatpush3.msra.mxu0 %v6529_v45  ;;  %v9376_v45 = vld [vmem:[%s12276_s8 + $0x30] sm:$0xff] }
0x36bd   :  { %10777 = vpow2.f32 %v6512_v19 }
0x36be   :  { %v6782_v4 = vpop.permute.xlu1 %6781 }
0x36c2   :  { %v6780_v1 = vpop.permute.xlu1 %6779 }
0x36c6   :  { %v6778_v60 = vpop.permute.xlu1 %6777 }
0x36c8   :  { %v10776_v21 = vpop.eup %10775 }
0x36c9   :  { %v6519_v46 = vsel %vm363_vm2, %v10776_v21, 0.0 }
0x36ca   :  { %v10778_v5 = vpop.eup %10777  ;;  %6520 = vadd.xlane.f32.xlu0 %v6519_v46  ;;  %v7063_v13 = vpop.permute.xlu1 %7062 }
0x36cb   :  { %v6516_v47 = vsel %vm363_vm2, %v10778_v5, 0.0 }
0x36ce   :  { %6517 = vadd.xlane.f32.xlu0 %v6516_v47  ;;  %v7061_v16 = vpop.permute.xlu1 %7060 }
0x36e4   :  { %6526 = vrot.lane.b32.xlu0 %v11877_v55, %s10914_s26  ;;  %s12297_s26 = smov 48  }
0x36e8   :  { %6775 = vrot.lane.b32.xlu0 %v11884_v54, %s12294_s23 }
0x36ec   :  { %7064 = vrot.lane.b32.xlu0 %v11875_v51, %s12295_s13 }
0x36f0   :  { %7058 = vrot.lane.b32.xlu0 %v11884_v54, %s12296_s29 }
0x3753   :  { %v6521_v2 = vpop.xlane.xlu0 %6520 }
0x3754   :  { %10779 = vrcp.f32 %v6521_v2 }
0x3757   :  { %v6518_v7 = vpop.xlane.xlu0 %6517 }
0x3758   :  { %10781 = vrcp.f32 %v6518_v7 }
0x375b   :  { %v6527_v50 = vpop.permute.xlu0 %6526 }
0x375c   :  { %10366 = vmatprep.subr.mxu0 %v6527_v50 }
0x375d   :  { %10367 = vmatpush3.msra.mxu0 %v6527_v50 }
0x375e   :  { %10371 = vmatprep.subr.mxu0 %v9375_v42 }
0x375f   :  { %v6776_v54 = vpop.permute.xlu0 %6775 }
0x3761   :  { %v10780_v43 = vpop.eup %10779 }
0x3762   :  { %v6525_v3 = vmul.f32 %v10780_v43, %v10776_v21  ;;  %v10380_v43 = vpop.f32.mrf.mxu1 }
0x3763   :  { %v7065_v12 = vpop.permute.xlu0 %7064 }
0x3765   :  { %v10782_v63 = vpop.eup %10781 }
0x3766   :  { %v6523_v8 = vmul.f32 %v10782_v63, %v10778_v5  ;;  %v6766_v63 = vpop.f32.mrf.mxu1 }
0x3767   :  { %v7059_v61 = vpop.permute.xlu0 %7058 }
0x3768   :  { %10368 = vmatprep.mubr.msk.f32.mxu0 %vm363_vm2, %v6523_v8 }
0x3769   :  { %10369 = vmatmul.mubr.msk.f32.vlgmr.msra.gmra.mxu0 %vm363_vm2, %v6525_v3 }
0x376a   :  { %10372 = vmatpush3.msra.mxu0 %v9375_v42 }
0x376b   :  { %10381 = vmatprep.subr.msk.mxu0 %vm277_vm1, %v6782_v4 }
0x3829   :  { %v10370_v6 = vpop.f32.mrf.mxu0 }
0x382b   :  { %v6604_v0 = vpop.f32.mrf.mxu0 }
0x382c   :  { %10373 = vmatprep.mubr.msk.f32.mxu0 %vm277_vm1, %v6604_v0 }
0x382d   :  { %10374 = vmatmul.mubr.msk.f32.vlgmr.msra.gmra.mxu0 %vm277_vm1, %v10370_v6 }
0x382e   :  { %10382 = vmatpush3.xpose.msk.msra.mxu0 %vm277_vm1, %v6782_v4  ;;  %10385 = vmatprep.mubr.msk.f32.mxu0 %vm277_vm1, %v6776_v54 }
0x382f   :  { %10383 = vmatprep.subr.msk.mxu0 %vm277_vm1, %v6780_v1 }
0x3832   :  { %10384 = vmatpush3.xpose.msk.msra.mxu0 %vm277_vm1, %v6780_v1 }
0x3833   :  { %10400 = vmatprep.subr.msk.mxu0 %vm277_vm1, %v7065_v12 }
0x3835   :  { %10386 = vmatmul.mubr.msk.f32.vlgmr.msra.gmra.mxu0 %vm277_vm1, %v6778_v60  ;;  %v9427_v60 = vld [vmem:[%s12278_s19 + $0x38] sm:$0xff] }
0x3836   :  { %10401 = vmatpush3.xpose.msk.msra.mxu0 %vm277_vm1, %v7065_v12  ;;  %10404 = vmatprep.mubr.msk.f32.mxu0 %vm277_vm1, %v7059_v61  ;;  %v9377_v12 = vld [vmem:[%s12276_s8 + $0x38] sm:$0xff] }
0x3837   :  { %10402 = vmatprep.subr.msk.mxu0 %vm277_vm1, %v7063_v13 }
0x383a   :  { %10403 = vmatpush3.xpose.msk.msra.mxu0 %vm277_vm1, %v7063_v13 }
0x383d   :  { %10405 = vmatmul.mubr.msk.f32.vlgmr.msra.gmra.mxu0 %vm277_vm1, %v7061_v16 }
0x38ed   :  { %v11975_v17 = vpop.f32.mrf.mxu0 }
0x38ee   :  { %v6772_v61 = vadd.f32 %v10380_v43, %v11975_v17  ;;  %v9425_v17 = vld [vmem:[%s12278_s19 + $0x28] sm:$0xff] }
0x38ef   :  { %v11977_v31 = vpop.f32.mrf.mxu0 }
0x38f0   :  { %v6767_v16 = vadd.f32 %v6766_v63, %v11977_v31  ;;  %v9424_v31 = vld [vmem:[%s12278_s19 + $0x20] sm:$0xff] }
0x38f5   :  { %v10387_v10 = vpop.f32.mrf.mxu0 }
0x38f6   :  { %v6863_v18 = vadd.f32 %v11898_v33, %v10387_v10 }
0x38f7   :  { %v6857_v25 = vpop.f32.mrf.mxu0 }
0x38f8   :  { %v6858_v26 = vadd.f32 %v11902_v9, %v6857_v25  ;;  %v6869_v14 = vsel %vm363_vm2, %v6863_v18, -inf }
0x38f9   :  { %6870 = vmax.xlane.f32.xlu1 %v6869_v14 }
0x38fa   :  { %v6866_v56 = vsel %vm363_vm2, %v6858_v26, -inf }
0x38fb   :  { %6867 = vmax.xlane.f32.xlu0 %v6866_v56  ;;  %v9426_v56 = vld [vmem:[%s12278_s19 + $0x30] sm:$0xff] }
0x38fd   :  { %v10406_v53 = vpop.f32.mrf.mxu0 }
0x38fe   :  { %v7146_v52 = vadd.f32 %v11898_v33, %v10406_v53  ;;  %v9419_v53 = vld [vmem:[%s12279_s24 + $0x38] sm:$0xff] }
0x38ff   :  { %v7140_v29 = vpop.f32.mrf.mxu0  ;;  %10419 = vmatprep.subr.mxu0 %v9419_v53 }
0x3900   :  { %v7141_v15 = vadd.f32 %v11902_v9, %v7140_v29  ;;  %v7152_v62 = vsel %vm363_vm2, %v7146_v52, -inf  ;;  %10420 = vmatpush3.msra.mxu0 %v9419_v53  ;;  %v9418_v29 = vld [vmem:[%s12279_s24 + $0x30] sm:$0xff] }
0x3901   :  { %10421 = vmatprep.subr.mxu0 %v9418_v29 }
0x3902   :  { %v7149_v32 = vsel %vm363_vm2, %v7141_v15, -inf  ;;  %10422 = vmatpush3.msra.mxu0 %v9418_v29 }
0x390a   :  { %6890 = vrot.lane.b32.xlu1 %v11875_v51, %s12297_s26 }
0x392e   :  { %7150 = vmax.xlane.f32.xlu1 %v7149_v32  ;;  %v9411_v32 = vld [vmem:[%s12277_s14 + $0x1] ss:$0 sm:$0xff] }
0x3982   :  { %v6871_v34 = vpop.xlane.xlu1 %6870 }
0x3983   :  { %v6873_v35 = vsub.f32 %v6863_v18, %v6871_v34 }
0x3984   :  { %v6868_v36 = vpop.xlane.xlu0 %6867 }
0x3985   :  { %v6876_v22 = vmul.f32 1.442695, %v6873_v35  ;;  %v6872_v20 = vsub.f32 %v6858_v26, %v6868_v36 }
0x3986   :  { %v6891_v37 = vpop.permute.xlu1 %6890 }
0x3987   :  { %10783 = vpow2.f32 %v6876_v22  ;;  %v6874_v24 = vmul.f32 1.442695, %v6872_v20  ;;  %10388 = vmatprep.subr.mxu1 %v6891_v37 }
0x3988   :  { %10389 = vmatpush3.msra.mxu1 %v6891_v37 }
0x3989   :  { %10785 = vpow2.f32 %v6874_v24  ;;  %v9429_v24 = vld [vmem:[%s12282_s12 + $0x1] ss:$0 sm:$0xff] }
0x3994   :  { %v10784_v38 = vpop.eup %10783 }
0x3995   :  { %v6881_v59 = vsel %vm363_vm2, %v10784_v38, 0.0 }
0x3996   :  { %v10786_v28 = vpop.eup %10785  ;;  %6882 = vadd.xlane.f32.xlu0 %v6881_v59 }
0x3997   :  { %v6878_v9 = vsel %vm363_vm2, %v10786_v28, 0.0 }
0x399a   :  { %6879 = vadd.xlane.f32.xlu0 %v6878_v9 }
0x39b0   :  { %6888 = vrot.lane.b32.xlu0 %v11877_v55, %s12297_s26 }
0x39b7   :  { %v7151_v58 = vpop.xlane.xlu1 %7150 }
0x39b8   :  { %v7155_v27 = vsub.f32 %v7141_v15, %v7151_v58  ;;  %v9416_v15 = vld [vmem:[%s12279_s24 + $0x20] sm:$0xff] }
0x39ba   :  { %v7157_v39 = vmul.f32 1.442695, %v7155_v27 }
0x39bc   :  { %10787 = vpow2.f32 %v7157_v39 }
0x39c9   :  { %v10788_v23 = vpop.eup %10787 }
0x39ca   :  { %v7161_v11 = vsel %vm363_vm2, %v10788_v23, 0.0 }
0x39cb   :  { %7162 = vadd.xlane.f32.xlu1 %v7161_v11 }
0x39cf   :  { %7153 = vmax.xlane.f32.xlu0 %v7152_v62 }
0x39dc   :  { %7173 = vrot.lane.b32.xlu1 %v11875_v51, %s12298_s3 }
0x3a1f   :  { %v6883_v40 = vpop.xlane.xlu0 %6882 }
0x3a20   :  { %10789 = vrcp.f32 %v6883_v40 }
0x3a23   :  { %v6880_v41 = vpop.xlane.xlu0 %6879 }
0x3a24   :  { %10791 = vrcp.f32 %v6880_v41 }
0x3a27   :  { %v6889_v44 = vpop.permute.xlu0 %6888 }
0x3a28   :  { %10390 = vmatprep.subr.mxu1 %v6889_v44 }
0x3a29   :  { %10391 = vmatpush3.msra.mxu1 %v6889_v44 }
0x3a2a   :  { %10395 = vmatprep.subr.mxu1 %v9376_v45 }
0x3a2d   :  { %v10790_v19 = vpop.eup %10789 }
0x3a2e   :  { %v6887_v46 = vmul.f32 %v10790_v19, %v10784_v38 }
0x3a31   :  { %v10792_v33 = vpop.eup %10791 }
0x3a32   :  { %v6885_v21 = vmul.f32 %v10792_v33, %v10786_v28 }
0x3a34   :  { %10392 = vmatprep.mubr.msk.f32.mxu1 %vm363_vm2, %v6885_v21 }
0x3a35   :  { %10393 = vmatmul.mubr.msk.f32.vlgmr.msra.gmra.mxu1 %vm363_vm2, %v6887_v46 }
0x3a36   :  { %10396 = vmatpush3.msra.mxu1 %v9376_v45 }
0x3a54   :  { %v7163_v5 = vpop.xlane.xlu1 %7162 }
0x3a58   :  { %v7174_v51 = vpop.permute.xlu1 %7173  ;;  %v7154_v47 = vpop.xlane.xlu0 %7153 }
0x3a59   :  { %v7156_v2 = vsub.f32 %v7146_v52, %v7154_v47  ;;  %10407 = vmatprep.subr.mxu1 %v7174_v51 }
0x3a5b   :  { %v7159_v7 = vmul.f32 1.442695, %v7156_v2 }
0x3a5d   :  { %10793 = vpow2.f32 %v7159_v7 }
0x3a5e   :  { %10795 = vrcp.f32 %v7163_v5 }
0x3a6a   :  { %v10794_v50 = vpop.eup %10793 }
0x3a6b   :  { %v7164_v42 = vsel %vm363_vm2, %v10794_v50, 0.0  ;;  %v10796_v8 = vpop.eup %10795 }
0x3a6c   :  { %7165 = vadd.xlane.f32.xlu0 %v7164_v42  ;;  %v7168_v6 = vmul.f32 %v10796_v8, %v10788_v23  ;;  %v9415_v42 = vld [vmem:[%s12281_s6 + $0x1] ss:$0 sm:$0xff] }
0x3a82   :  { %7171 = vrot.lane.b32.xlu0 %v11877_v55, %s12298_s3 }
0x3af5   :  { %v10394_v3 = vpop.f32.mrf.mxu1  ;;  %v7166_v4 = vpop.xlane.xlu0 %7165 }
0x3af6   :  { %10797 = vrcp.f32 %v7166_v4 }
0x3af7   :  { %v6966_v54 = vpop.f32.mrf.mxu1 }
0x3af8   :  { %10397 = vmatprep.mubr.msk.f32.mxu1 %vm277_vm1, %v6966_v54  ;;  %v9421_v54 = vld [vmem:[%s12283_s20 + $0x1] ss:$0 sm:$0xff] }
0x3af9   :  { %10398 = vmatmul.mubr.msk.f32.vlgmr.msra.gmra.mxu1 %vm277_vm1, %v10394_v3  ;;  %v7172_v1 = vpop.permute.xlu0 %7171 }
0x3afa   :  { %10408 = vmatpush3.msra.mxu1 %v7174_v51  ;;  %10411 = vmatprep.mubr.msk.f32.mxu1 %vm363_vm2, %v7168_v6  ;;  %v9414_v51 = vld [vmem:[%s12280_s30 + $0x1] ss:$0 sm:$0xff] }
0x3afb   :  { %10409 = vmatprep.subr.mxu1 %v7172_v1 }
0x3afc   :  { %10410 = vmatpush3.msra.mxu1 %v7172_v1 }
0x3afd   :  { %10414 = vmatprep.subr.mxu1 %v9377_v12 }
0x3b03   :  { %v10798_v55 = vpop.eup %10797 }
0x3b04   :  { %v7170_v0 = vmul.f32 %v10798_v55, %v10794_v50 }
0x3b06   :  { %10412 = vmatmul.mubr.msk.f32.vlgmr.msra.gmra.mxu1 %vm363_vm2, %v7170_v0 }
0x3b07   :  { %10415 = vmatpush3.msra.mxu1 %v9377_v12 }
0x3b08   :  { %10430 = vmatprep.subr.mxu1 %v9427_v60 }
0x3bb9   :  { %v10399_v13 = vpop.f32.mrf.mxu1 }
0x3bba   :  { %v7057_v10 = vadd.f32 %v10399_v13, %v6772_v61  ;;  %v12063_v13 = vld [vmem:[%s12284_s27 + $0x8] sm:$0xff] }
0x3bbb   :  { %v7047_v18 = vpop.f32.mrf.mxu1 }
0x3bbc   :  { %v7056_v25 = vadd.f32 %v7047_v18, %v6767_v16  ;;  %v12067_v18 = vld [vmem:[%s12284_s27] sm:$0xff] }
0x3bc6   :  { %v10413_v26 = vpop.f32.mrf.mxu1 }
0x3bc8   :  { %v7249_v14 = vpop.f32.mrf.mxu1 }
0x3bc9   :  { %10416 = vmatprep.mubr.msk.f32.mxu1 %vm277_vm1, %v7249_v14 }
0x3bca   :  { %10417 = vmatmul.mubr.msk.f32.vlgmr.msra.gmra.mxu1 %vm277_vm1, %v10413_v26 }
0x3bcb   :  { %10431 = vmatpush3.msra.mxu1 %v9427_v60  ;;  %10438 = vmatprep.mubr.msk.f32.mxu1 %vm182_vm0, %v11675_v57  ;;  %v9417_v57 = vld [vmem:[%s12279_s24 + $0x28] sm:$0xff] }
0x3bcc   :  { %10432 = vmatprep.subr.mxu1 %v9426_v56  ;;  %10423 = vmatprep.subr.mxu0 %v9417_v57 }
0x3bcd   :  { %10433 = vmatpush3.msra.mxu1 %v9426_v56  ;;  %10424 = vmatpush3.msra.mxu0 %v9417_v57 }
0x3bce   :  { %10434 = vmatprep.subr.mxu1 %v9425_v17  ;;  %10425 = vmatprep.subr.mxu0 %v9416_v15 }
0x3bcf   :  { %10435 = vmatpush3.msra.mxu1 %v9425_v17  ;;  %10426 = vmatpush3.msra.mxu0 %v9416_v15 }
0x3bd0   :  { %10436 = vmatprep.subr.mxu1 %v9424_v31 }
0x3bd1   :  { %10437 = vmatpush3.msra.mxu1 %v9424_v31 }
0x3bd2   :  { %10439 = vmatmul.mubr.msk.f32.vlgmr.msra.gmra.mxu1 %vm182_vm0, %v11677_v30 }
0x3c8a   :  { %v10418_v34 = vpop.f32.mrf.mxu1 }
0x3c8b   :  { %v7340_v35 = vadd.f32 %v10418_v34, %v7057_v10 }
0x3c8c   :  { %v7330_v36 = vpop.f32.mrf.mxu1 }
0x3c8d   :  { %v7348_v22 = vadd.f32 %v9411_v32, %v7340_v35  ;;  %v7339_v20 = vadd.f32 %v7330_v36, %v7056_v25 }
0x3c8f   :  { %v7347_v30 = vadd.f32 %v9411_v32, %v7339_v20  ;;  %v7350_v37 = vadd.f32 %v7348_v22, %v11868_v49 }
0x3c91   :  { %v7358_v38 = vsel %vm182_vm0, %v7350_v37, 0.0  ;;  %v7349_v59 = vadd.f32 %v7347_v30, %v11866_v48 }
0x3c92   :  { %v10440_v28 = vpop.f32.mrf.mxu1  ;;  %7359 = vadd.xlane.f32.xlu0 %v7358_v38 }
0x3c93   :  { %v12028_v9 = vadd.f32 %v10440_v28, %v9429_v24  ;;  %v7355_v58 = vsel %vm182_vm0, %v7349_v59, 0.0 }
0x3c94   :  { %7356 = vadd.xlane.f32.xlu1 %v7355_v58  ;;  %v7570_v63 = vpop.f32.mrf.mxu1 }
0x3c95   :  { %10441 = vmatprep.subr.msk.mxu0 %vm277_vm1, %v12028_v9  ;;  %v12043_v4 = vadd.f32 %v9429_v24, %v7570_v63 }
0x3d1b   :  { %v7360_v27 = vpop.xlane.xlu0 %7359 }
0x3d1c   :  { %v7362_v39 = vmul.f32 0.03125, %v7360_v27 }
0x3d1d   :  { %v7357_v23 = vpop.xlane.xlu1 %7356 }
0x3d1e   :  { %v7364_v52 = vsub.f32 %v7350_v37, %v7362_v39  ;;  %v7361_v49 = vmul.f32 0.03125, %v7357_v23  ;;  %v9432_v23 = vld [vmem:[%s12285_s15 + $0x20] sm:$0xff] }
0x3d20   :  { %v7363_v11 = vsub.f32 %v7349_v59, %v7361_v49  ;;  %v7366_v62 = vmul.f32 %v7364_v52, %v7364_v52 }
0x3d22   :  { %v7370_v48 = vsel %vm182_vm0, %v7366_v62, 0.0  ;;  %v7365_v40 = vmul.f32 %v7363_v11, %v7363_v11 }
0x3d23   :  { %7371 = vadd.xlane.f32.xlu0 %v7370_v48 }
0x3d24   :  { %v7367_v41 = vsel %vm182_vm0, %v7365_v40, 0.0 }
0x3d25   :  { %7368 = vadd.xlane.f32.xlu1 %v7367_v41 }
0x3dac   :  { %v7372_v44 = vpop.xlane.xlu0 %7371 }
0x3dad   :  { %v7374_v45 = vmul.f32 0.03125, %v7372_v44 }
0x3dae   :  { %v7369_v19 = vpop.xlane.xlu1 %7368 }
0x3daf   :  { %v7376_v33 = vadd.f32 1e-05, %v7374_v45  ;;  %v7373_v21 = vmul.f32 0.03125, %v7369_v19 }
0x3db1   :  { %10799 = vrsqrt.f32 %v7376_v33  ;;  %v7375_v46 = vadd.f32 1e-05, %v7373_v21 }
0x3db3   :  { %10801 = vrsqrt.f32 %v7375_v46 }
0x3dbe   :  { %v10800_v5 = vpop.eup %10799 }
0x3dbf   :  { %v7380_v47 = vmul.f32 %v10800_v5, %v7364_v52 }
0x3dc0   :  { %v10802_v2 = vpop.eup %10801 }
0x3dc1   :  { %v7379_v7 = vmul.f32 %v10802_v2, %v7363_v11  ;;  %v7388_v50 = vmul.f32 %v9414_v51, %v7380_v47 }
0x3dc3   :  { %v7387_v43 = vmul.f32 %v9414_v51, %v7379_v7  ;;  %v12039_v3 = vadd.f32 %v9415_v42, %v7388_v50 }
0x3dc5   :  { %v12037_v8 = vadd.f32 %v9415_v42, %v7387_v43 }
0x3dc7   :  { %10427 = vmatprep.mubr.msk.f32.mxu0 %vm182_vm0, %v12037_v8 }
0x3dc8   :  { %10428 = vmatmul.mubr.msk.f32.vlgmr.msra.gmra.mxu0 %vm182_vm0, %v12039_v3 }
0x3dc9   :  { %10442 = vmatpush3.xpose.msk.msra.mxu0 %vm277_vm1, %v12028_v9 }
0x3dca   :  { %10443 = vmatprep.subr.msk.mxu0 %vm277_vm1, %v12043_v4 }
0x3dcd   :  { %10444 = vmatpush3.xpose.msk.msra.mxu0 %vm277_vm1, %v12043_v4 }
0x3e88   :  { %v10429_v6 = vpop.f32.mrf.mxu0 }
0x3e89   :  { %v7488_v1 = vadd.f32 %v10429_v6, %v9421_v54 }
0x3e8a   :  { %v7482_v55 = vpop.f32.mrf.mxu0 }
0x3e8b   :  { %v7483_v0 = vadd.f32 %v9421_v54, %v7482_v55  ;;  %v12056_v60 = vmul.f32 0.35355338, %v7488_v1  ;;  %v9433_v54 = vld [vmem:[%s12285_s15 + $0x28] sm:$0xff] }
0x3e8d   :  { %v12054_v12 = vmul.f32 0.35355338, %v7483_v0 }
0x3e8f   :  { %10445 = vmatprep.mubr.msk.f32.mxu0 %vm277_vm1, %v12054_v12 }
0x3e90   :  { %10446 = vmatmul.mubr.msk.f32.vlgmr.msra.gmra.mxu0 %vm277_vm1, %v12056_v60 }
0x3f50   :  { %v10447_v61 = vpop.f32.mrf.mxu0 }
0x3f51   :  { %v7672_v16 = vadd.f32 %v12063_v13, %v10447_v61 }
0x3f52   :  { %v7666_v10 = vpop.f32.mrf.mxu0 }
0x3f53   :  { %v7667_v25 = vadd.f32 %v12067_v18, %v7666_v10  ;;  %v7678_v26 = vsel %vm363_vm2, %v7672_v16, -inf }
0x3f54   :  { %7679 = vmax.xlane.f32.xlu0 %v7678_v26 }
0x3f55   :  { %v7675_v14 = vsel %vm363_vm2, %v7667_v25, -inf }
0x3f56   :  { %7676 = vmax.xlane.f32.xlu1 %v7675_v14 }
0x3f67   :  { %7699 = vrot.lane.b32.xlu1 %v12028_v9, %s10911_s22 }
0x3f6b   :  { %7790 = vrot.lane.b32.xlu1 %v12028_v9, %s10912_s5 }
0x3f6f   :  { %7788 = vrot.lane.b32.xlu1 %v12043_v4, %s10912_s5 }
0x3fdd   :  { %v7680_v56 = vpop.xlane.xlu0 %7679 }
0x3fde   :  { %v7682_v17 = vsub.f32 %v7672_v16, %v7680_v56 }
0x3fdf   :  { %v7677_v31 = vpop.xlane.xlu1 %7676 }
0x3fe0   :  { %v7685_v53 = vmul.f32 1.442695, %v7682_v17  ;;  %v7681_v29 = vsub.f32 %v7667_v25, %v7677_v31 }
0x3fe2   :  { %10803 = vpow2.f32 %v7685_v53  ;;  %v7683_v57 = vmul.f32 1.442695, %v7681_v29 }
0x3fe3   :  { %v7700_v15 = vpop.permute.xlu1 %7699 }
0x3fe4   :  { %10805 = vpow2.f32 %v7683_v57  ;;  %10448 = vmatprep.subr.mxu1 %v7700_v15 }
0x3fe5   :  { %10449 = vmatpush3.msra.mxu1 %v7700_v15 }
0x3fe7   :  { %v7791_v22 = vpop.permute.xlu1 %7790 }
0x3feb   :  { %v7789_v20 = vpop.permute.xlu1 %7788 }
0x3fef   :  { %v10804_v32 = vpop.eup %10803 }
0x3ff0   :  { %v7690_v34 = vsel %vm363_vm2, %v10804_v32, 0.0 }
0x3ff1   :  { %v10806_v35 = vpop.eup %10805  ;;  %7691 = vadd.xlane.f32.xlu0 %v7690_v34 }
0x3ff2   :  { %v7687_v36 = vsel %vm363_vm2, %v10806_v35, 0.0 }
0x3ff3   :  { %7688 = vadd.xlane.f32.xlu1 %v7687_v36 }
0x4004   :  { %7786 = vrot.lane.b32.xlu1 %v12056_v60, %s10912_s5 }
0x4007   :  { %7697 = vrot.lane.b32.xlu0 %v12043_v4, %s10911_s22 }
0x400b   :  { %7784 = vrot.lane.b32.xlu0 %v12054_v12, %s10912_s5 }
0x407a   :  { %v7692_v30 = vpop.xlane.xlu0 %7691 }
0x407b   :  { %10807 = vrcp.f32 %v7692_v30 }
0x407c   :  { %v7689_v37 = vpop.xlane.xlu1 %7688 }
0x407d   :  { %10809 = vrcp.f32 %v7689_v37 }
0x407e   :  { %v7698_v24 = vpop.permute.xlu0 %7697 }
0x407f   :  { %10450 = vmatprep.subr.mxu1 %v7698_v24 }
0x4080   :  { %10451 = vmatpush3.msra.mxu1 %v7698_v24  ;;  %v7787_v39 = vpop.permute.xlu1 %7786 }
0x4081   :  { %10455 = vmatprep.subr.msk.mxu1 %vm277_vm1, %v7791_v22 }
0x4082   :  { %v7785_v27 = vpop.permute.xlu0 %7784 }
0x4088   :  { %v10808_v38 = vpop.eup %10807 }
0x4089   :  { %v7696_v58 = vmul.f32 %v10808_v38, %v10804_v32 }
0x408a   :  { %v10810_v59 = vpop.eup %10809 }
0x408b   :  { %v7694_v28 = vmul.f32 %v10810_v59, %v10806_v35 }
0x408d   :  { %10452 = vmatprep.mubr.msk.f32.mxu1 %vm363_vm2, %v7694_v28 }
0x408e   :  { %10453 = vmatmul.mubr.msk.f32.vlgmr.msra.gmra.mxu1 %vm363_vm2, %v7696_v58 }
0x408f   :  { %10456 = vmatpush3.xpose.msk.msra.mxu1 %vm277_vm1, %v7791_v22  ;;  %10459 = vmatprep.mubr.msk.f32.mxu1 %vm277_vm1, %v7785_v27 }
0x4090   :  { %10457 = vmatprep.subr.msk.mxu1 %vm277_vm1, %v7789_v20 }
0x4093   :  { %10458 = vmatpush3.xpose.msk.msra.mxu1 %vm277_vm1, %v7789_v20 }
0x4094   :  { %10474 = vmatprep.subr.mxu1 %v9432_v23 }
0x4096   :  { %10460 = vmatmul.mubr.msk.f32.vlgmr.msra.gmra.mxu1 %vm277_vm1, %v7787_v39 }
0x4097   :  { %10475 = vmatpush3.msra.mxu1 %v9432_v23 }
0x414e   :  { %v10454_v52 = vpop.f32.mrf.mxu1 }
0x4150   :  { %v7775_v49 = vpop.f32.mrf.mxu1 }
0x4151   :  { %10476 = vmatprep.mubr.msk.f32.mxu1 %vm277_vm1, %v7775_v49 }
0x4152   :  { %10477 = vmatmul.mubr.msk.f32.vlgmr.msra.gmra.mxu1 %vm277_vm1, %v10454_v52 }
0x4156   :  { %v10461_v11 = vpop.f32.mrf.mxu1 }
0x4157   :  { %v7872_v62 = vadd.f32 %v12063_v13, %v10461_v11 }
0x4158   :  { %v7866_v48 = vpop.f32.mrf.mxu1 }
0x4159   :  { %v7867_v40 = vadd.f32 %v12067_v18, %v7866_v48  ;;  %v7878_v41 = vsel %vm363_vm2, %v7872_v62, -inf }
0x415a   :  { %7879 = vmax.xlane.f32.xlu1 %v7878_v41 }
0x415b   :  { %v7875_v44 = vsel %vm363_vm2, %v7867_v40, -inf }
0x415c   :  { %7876 = vmax.xlane.f32.xlu0 %v7875_v44 }
0x416b   :  { %7899 = vrot.lane.b32.xlu1 %v12028_v9, %s10910_s0 }
0x416f   :  { %8152 = vrot.lane.b32.xlu1 %v12028_v9, %s12294_s23 }
0x4173   :  { %8150 = vrot.lane.b32.xlu1 %v12043_v4, %s12294_s23 }
0x4177   :  { %8148 = vrot.lane.b32.xlu1 %v12056_v60, %s12294_s23 }
0x417b   :  { %8433 = vrot.lane.b32.xlu1 %v12043_v4, %s12296_s29 }
0x417f   :  { %8431 = vrot.lane.b32.xlu1 %v12056_v60, %s12296_s29 }
0x41e3   :  { %v7880_v45 = vpop.xlane.xlu1 %7879 }
0x41e4   :  { %v7882_v19 = vsub.f32 %v7872_v62, %v7880_v45 }
0x41e5   :  { %v7877_v33 = vpop.xlane.xlu0 %7876 }
0x41e6   :  { %v7885_v21 = vmul.f32 1.442695, %v7882_v19  ;;  %v7881_v46 = vsub.f32 %v7867_v40, %v7877_v33 }
0x41e7   :  { %v7900_v5 = vpop.permute.xlu1 %7899 }
0x41e8   :  { %10811 = vpow2.f32 %v7885_v21  ;;  %v7883_v51 = vmul.f32 1.442695, %v7881_v46  ;;  %10462 = vmatprep.subr.mxu0 %v7900_v5  ;;  %v9434_v21 = vld [vmem:[%s12285_s15 + $0x30] sm:$0xff] }
0x41e9   :  { %10463 = vmatpush3.msra.mxu0 %v7900_v5 }
0x41ea   :  { %10813 = vpow2.f32 %v7883_v51 }
0x41eb   :  { %v8153_v60 = vpop.permute.xlu1 %8152 }
0x41ef   :  { %v8151_v16 = vpop.permute.xlu1 %8150 }
0x41f3   :  { %v8149_v26 = vpop.permute.xlu1 %8148 }
0x41f5   :  { %v10812_v47 = vpop.eup %10811 }
0x41f6   :  { %v7890_v2 = vsel %vm363_vm2, %v10812_v47, 0.0 }
0x41f7   :  { %v10814_v7 = vpop.eup %10813  ;;  %7891 = vadd.xlane.f32.xlu0 %v7890_v2  ;;  %v8434_v56 = vpop.permute.xlu1 %8433 }
0x41f8   :  { %v7887_v50 = vsel %vm363_vm2, %v10814_v7, 0.0 }
0x41fb   :  { %7888 = vadd.xlane.f32.xlu0 %v7887_v50  ;;  %v8432_v17 = vpop.permute.xlu1 %8431 }
0x4211   :  { %7897 = vrot.lane.b32.xlu0 %v12043_v4, %s10910_s0 }
0x4215   :  { %8146 = vrot.lane.b32.xlu0 %v12054_v12, %s12294_s23 }
0x4219   :  { %8435 = vrot.lane.b32.xlu0 %v12028_v9, %s12296_s29 }
0x421d   :  { %8429 = vrot.lane.b32.xlu0 %v12054_v12, %s12296_s29 }
0x4280   :  { %v7892_v42 = vpop.xlane.xlu0 %7891 }
0x4281   :  { %10815 = vrcp.f32 %v7892_v42 }
0x4284   :  { %v7889_v43 = vpop.xlane.xlu0 %7888 }
0x4285   :  { %10817 = vrcp.f32 %v7889_v43 }
0x4288   :  { %v7898_v63 = vpop.permute.xlu0 %7897 }
0x4289   :  { %10464 = vmatprep.subr.mxu0 %v7898_v63 }
0x428a   :  { %10465 = vmatpush3.msra.mxu0 %v7898_v63  ;;  %v10478_v63 = vpop.f32.mrf.mxu1 }
0x428b   :  { %10469 = vmatprep.subr.mxu0 %v9433_v54 }
0x428c   :  { %v8147_v12 = vpop.permute.xlu0 %8146 }
0x428e   :  { %v10816_v6 = vpop.eup %10815 }
0x428f   :  { %v7896_v0 = vmul.f32 %v10816_v6, %v10812_v47 }
0x4290   :  { %v8436_v25 = vpop.permute.xlu0 %8435 }
0x4292   :  { %v10818_v1 = vpop.eup %10817 }
0x4293   :  { %v7894_v55 = vmul.f32 %v10818_v1, %v10814_v7 }
0x4294   :  { %v8430_v14 = vpop.permute.xlu0 %8429 }
0x4295   :  { %10466 = vmatprep.mubr.msk.f32.mxu0 %vm363_vm2, %v7894_v55 }
0x4296   :  { %10467 = vmatmul.mubr.msk.f32.vlgmr.msra.gmra.mxu0 %vm363_vm2, %v7896_v0 }
0x4297   :  { %10470 = vmatpush3.msra.mxu0 %v9433_v54  ;;  %v8137_v54 = vpop.f32.mrf.mxu1 }
0x4298   :  { %10479 = vmatprep.subr.msk.mxu0 %vm277_vm1, %v8153_v60 }
0x4356   :  { %v10468_v61 = vpop.f32.mrf.mxu0 }
0x4358   :  { %v7975_v10 = vpop.f32.mrf.mxu0 }
0x4359   :  { %10471 = vmatprep.mubr.msk.f32.mxu0 %vm277_vm1, %v7975_v10 }
0x435a   :  { %10472 = vmatmul.mubr.msk.f32.vlgmr.msra.gmra.mxu0 %vm277_vm1, %v10468_v61 }
0x435b   :  { %10480 = vmatpush3.xpose.msk.msra.mxu0 %vm277_vm1, %v8153_v60  ;;  %10483 = vmatprep.mubr.msk.f32.mxu0 %vm277_vm1, %v8147_v12 }
0x435c   :  { %10481 = vmatprep.subr.msk.mxu0 %vm277_vm1, %v8151_v16 }
0x435f   :  { %10482 = vmatpush3.xpose.msk.msra.mxu0 %vm277_vm1, %v8151_v16  ;;  %v9435_v16 = vld [vmem:[%s12285_s15 + $0x38] sm:$0xff] }
0x4360   :  { %10498 = vmatprep.subr.msk.mxu0 %vm277_vm1, %v8436_v25 }
0x4362   :  { %10484 = vmatmul.mubr.msk.f32.vlgmr.msra.gmra.mxu0 %vm277_vm1, %v8149_v26 }
0x4363   :  { %10499 = vmatpush3.xpose.msk.msra.mxu0 %vm277_vm1, %v8436_v25  ;;  %10502 = vmatprep.mubr.msk.f32.mxu0 %vm277_vm1, %v8430_v14 }
0x4364   :  { %10500 = vmatprep.subr.msk.mxu0 %vm277_vm1, %v8434_v56 }
0x4367   :  { %10501 = vmatpush3.xpose.msk.msra.mxu0 %vm277_vm1, %v8434_v56 }
0x436a   :  { %10503 = vmatmul.mubr.msk.f32.vlgmr.msra.gmra.mxu0 %vm277_vm1, %v8432_v17 }
0x441a   :  { %v12140_v31 = vpop.f32.mrf.mxu0 }
0x441b   :  { %v8143_v10 = vadd.f32 %v10478_v63, %v12140_v31  ;;  %v9485_v63 = vld [vmem:[%s12288_s25 + $0x58] sm:$0xff] }
0x441c   :  { %v12142_v53 = vpop.f32.mrf.mxu0 }
0x441d   :  { %v8138_v26 = vadd.f32 %v8137_v54, %v12142_v53  ;;  %v9484_v54 = vld [vmem:[%s12288_s25 + $0x50] sm:$0xff] }
0x4422   :  { %v10485_v29 = vpop.f32.mrf.mxu0 }
0x4423   :  { %v8234_v57 = vadd.f32 %v12063_v13, %v10485_v29 }
0x4424   :  { %v8228_v15 = vpop.f32.mrf.mxu0 }
0x4425   :  { %v8229_v32 = vadd.f32 %v12067_v18, %v8228_v15  ;;  %v8240_v34 = vsel %vm363_vm2, %v8234_v57, -inf  ;;  %v9469_v15 = vld [vmem:[%s12286_s16 + $0x1] ss:$0 sm:$0xff] }
0x4426   :  { %8241 = vmax.xlane.f32.xlu1 %v8240_v34 }
0x4427   :  { %v8237_v35 = vsel %vm363_vm2, %v8229_v32, -inf }
0x4428   :  { %8238 = vmax.xlane.f32.xlu0 %v8237_v35 }
0x442a   :  { %v10504_v36 = vpop.f32.mrf.mxu0 }
0x442b   :  { %v8517_v40 = vadd.f32 %v12063_v13, %v10504_v36 }
0x442c   :  { %v8511_v22 = vpop.f32.mrf.mxu0 }
0x442d   :  { %v8512_v20 = vadd.f32 %v12067_v18, %v8511_v22  ;;  %v8523_v44 = vsel %vm363_vm2, %v8517_v40, -inf }
0x442f   :  { %v8520_v30 = vsel %vm363_vm2, %v8512_v20, -inf }
0x4437   :  { %8261 = vrot.lane.b32.xlu1 %v12028_v9, %s10915_s28 }
0x445b   :  { %8521 = vmax.xlane.f32.xlu1 %v8520_v30 }
0x44af   :  { %v8242_v37 = vpop.xlane.xlu1 %8241 }
0x44b0   :  { %v8244_v24 = vsub.f32 %v8234_v57, %v8242_v37 }
0x44b1   :  { %v8239_v38 = vpop.xlane.xlu0 %8238 }
0x44b2   :  { %v8247_v59 = vmul.f32 1.442695, %v8244_v24  ;;  %v8243_v28 = vsub.f32 %v8229_v32, %v8239_v38 }
0x44b3   :  { %v8262_v58 = vpop.permute.xlu1 %8261 }
0x44b4   :  { %10819 = vpow2.f32 %v8247_v59  ;;  %v8245_v27 = vmul.f32 1.442695, %v8243_v28  ;;  %10486 = vmatprep.subr.mxu1 %v8262_v58 }
0x44b5   :  { %10487 = vmatpush3.msra.mxu1 %v8262_v58 }
0x44b6   :  { %10821 = vpow2.f32 %v8245_v27 }
0x44c1   :  { %v10820_v39 = vpop.eup %10819 }
0x44c2   :  { %v8252_v23 = vsel %vm363_vm2, %v10820_v39, 0.0 }
0x44c3   :  { %v10822_v52 = vpop.eup %10821  ;;  %8253 = vadd.xlane.f32.xlu0 %v8252_v23 }
0x44c4   :  { %v8249_v18 = vsel %vm363_vm2, %v10822_v52, 0.0 }
0x44c7   :  { %8250 = vadd.xlane.f32.xlu0 %v8249_v18  ;;  %v9476_v18 = vld [vmem:[%s12287_s18 + $0x30] sm:$0xff] }
0x44dd   :  { %8259 = vrot.lane.b32.xlu0 %v12043_v4, %s10915_s28 }
0x44e4   :  { %v8522_v49 = vpop.xlane.xlu1 %8521 }
0x44e5   :  { %v8526_v11 = vsub.f32 %v8512_v20, %v8522_v49  ;;  %v9475_v49 = vld [vmem:[%s12287_s18 + $0x28] sm:$0xff] }
0x44e7   :  { %v8528_v62 = vmul.f32 1.442695, %v8526_v11  ;;  %v9474_v11 = vld [vmem:[%s12287_s18 + $0x20] sm:$0xff] }
0x44e9   :  { %10823 = vpow2.f32 %v8528_v62  ;;  %v9489_v62 = vld [vmem:[%s12288_s25 + $0x78] sm:$0xff] }
0x44f6   :  { %v10824_v48 = vpop.eup %10823 }
0x44f7   :  { %v8532_v41 = vsel %vm363_vm2, %v10824_v48, 0.0 }
0x44f8   :  { %8533 = vadd.xlane.f32.xlu1 %v8532_v41  ;;  %v9486_v41 = vld [vmem:[%s12288_s25 + $0x60] sm:$0xff] }
0x44fc   :  { %8524 = vmax.xlane.f32.xlu0 %v8523_v44 }
0x4509   :  { %8544 = vrot.lane.b32.xlu1 %v12028_v9, %s12295_s13 }
0x454c   :  { %v8254_v45 = vpop.xlane.xlu0 %8253 }
0x454d   :  { %10825 = vrcp.f32 %v8254_v45 }
0x4550   :  { %v8251_v19 = vpop.xlane.xlu0 %8250 }
0x4551   :  { %10827 = vrcp.f32 %v8251_v19 }
0x4554   :  { %v8260_v33 = vpop.permute.xlu0 %8259 }
0x4555   :  { %10488 = vmatprep.subr.mxu1 %v8260_v33 }
0x4556   :  { %10489 = vmatpush3.msra.mxu1 %v8260_v33 }
0x4557   :  { %10493 = vmatprep.subr.mxu1 %v9434_v21 }
0x455a   :  { %v10826_v46 = vpop.eup %10825 }
0x455b   :  { %v8258_v51 = vmul.f32 %v10826_v46, %v10820_v39 }
0x455e   :  { %v10828_v13 = vpop.eup %10827 }
0x455f   :  { %v8256_v5 = vmul.f32 %v10828_v13, %v10822_v52  ;;  %v9477_v52 = vld [vmem:[%s12287_s18 + $0x38] sm:$0xff] }
0x4560   :  { %10517 = vmatprep.subr.mxu0 %v9477_v52 }
0x4561   :  { %10490 = vmatprep.mubr.msk.f32.mxu1 %vm363_vm2, %v8256_v5  ;;  %10518 = vmatpush3.msra.mxu0 %v9477_v52  ;;  %v9472_v5 = vld [vmem:[%s12289_s11 + $0x1] ss:$0 sm:$0xff] }
0x4562   :  { %10491 = vmatmul.mubr.msk.f32.vlgmr.msra.gmra.mxu1 %vm363_vm2, %v8258_v51  ;;  %10519 = vmatprep.subr.mxu0 %v9476_v18 }
0x4563   :  { %10494 = vmatpush3.msra.mxu1 %v9434_v21  ;;  %10520 = vmatpush3.msra.mxu0 %v9476_v18  ;;  %v9496_v18 = vld [vmem:[%s12293_s1 + $0x1] ss:$0 sm:$0xff] }
0x4564   :  { %10521 = vmatprep.subr.mxu0 %v9475_v49 }
0x4565   :  { %10522 = vmatpush3.msra.mxu0 %v9475_v49 }
0x4566   :  { %10523 = vmatprep.subr.mxu0 %v9474_v11 }
0x4567   :  { %10524 = vmatpush3.msra.mxu0 %v9474_v11 }
0x4581   :  { %v8534_v47 = vpop.xlane.xlu1 %8533 }
0x4585   :  { %v8545_v9 = vpop.permute.xlu1 %8544  ;;  %v8525_v2 = vpop.xlane.xlu0 %8524 }
0x4586   :  { %v8527_v7 = vsub.f32 %v8517_v40, %v8525_v2  ;;  %10505 = vmatprep.subr.mxu1 %v8545_v9  ;;  %v9487_v40 = vld [vmem:[%s12288_s25 + $0x68] sm:$0xff] }
0x4588   :  { %v8530_v50 = vmul.f32 1.442695, %v8527_v7  ;;  %v9473_v7 = vld [vmem:[%s12290_s10 + $0x1] ss:$0 sm:$0xff] }
0x458a   :  { %10829 = vpow2.f32 %v8530_v50 }
0x458b   :  { %10831 = vrcp.f32 %v8534_v47 }
0x4597   :  { %v10830_v42 = vpop.eup %10829 }
0x4598   :  { %v8535_v43 = vsel %vm363_vm2, %v10830_v42, 0.0  ;;  %v10832_v6 = vpop.eup %10831 }
0x4599   :  { %8536 = vadd.xlane.f32.xlu0 %v8535_v43  ;;  %v8539_v60 = vmul.f32 %v10832_v6, %v10824_v48  ;;  %v9488_v48 = vld [vmem:[%s12288_s25 + $0x70] sm:$0xff]  ;;  %v9483_v6 = vld [vmem:[%s12288_s25 + $0x48] sm:$0xff] }
0x45af   :  { %8542 = vrot.lane.b32.xlu0 %v12043_v4, %s12295_s13 }
0x4622   :  { %v10492_v1 = vpop.f32.mrf.mxu1  ;;  %v8537_v55 = vpop.xlane.xlu0 %8536 }
0x4623   :  { %10833 = vrcp.f32 %v8537_v55  ;;  %v9479_v55 = vld [vmem:[%s12291_s7 + $0x1] ss:$0 sm:$0xff] }
0x4624   :  { %v8337_v0 = vpop.f32.mrf.mxu1 }
0x4625   :  { %10495 = vmatprep.mubr.msk.f32.mxu1 %vm277_vm1, %v8337_v0 }
0x4626   :  { %10496 = vmatmul.mubr.msk.f32.vlgmr.msra.gmra.mxu1 %vm277_vm1, %v10492_v1  ;;  %v8543_v12 = vpop.permute.xlu0 %8542  ;;  %v9482_v1 = vld [vmem:[%s12288_s25 + $0x40] sm:$0xff] }
0x4627   :  { %10506 = vmatpush3.msra.mxu1 %v8545_v9  ;;  %10509 = vmatprep.mubr.msk.f32.mxu1 %vm363_vm2, %v8539_v60 }
0x4628   :  { %10507 = vmatprep.subr.mxu1 %v8543_v12 }
0x4629   :  { %10508 = vmatpush3.msra.mxu1 %v8543_v12 }
0x462a   :  { %10512 = vmatprep.subr.mxu1 %v9435_v16 }
0x4630   :  { %v10834_v4 = vpop.eup %10833 }
0x4631   :  { %v8541_v61 = vmul.f32 %v10834_v4, %v10830_v42 }
0x4633   :  { %10510 = vmatmul.mubr.msk.f32.vlgmr.msra.gmra.mxu1 %vm363_vm2, %v8541_v61 }
0x4634   :  { %10513 = vmatpush3.msra.mxu1 %v9435_v16 }
0x4635   :  { %10528 = vmatprep.subr.mxu1 %v9489_v62 }
0x46e6   :  { %v10497_v25 = vpop.f32.mrf.mxu1 }
0x46e7   :  { %v8428_v14 = vadd.f32 %v10497_v25, %v8143_v10  ;;  %v9491_v10 = vld [vmem:[%s12292_s2 + $0x1] ss:$0 sm:$0xff] }
0x46e8   :  { %v8418_v56 = vpop.f32.mrf.mxu1 }
0x46e9   :  { %v8427_v17 = vadd.f32 %v8418_v56, %v8138_v26 }
0x46f3   :  { %v10511_v29 = vpop.f32.mrf.mxu1 }
0x46f5   :  { %v8620_v57 = vpop.f32.mrf.mxu1 }
0x46f6   :  { %10514 = vmatprep.mubr.msk.f32.mxu1 %vm277_vm1, %v8620_v57 }
0x46f7   :  { %10515 = vmatmul.mubr.msk.f32.vlgmr.msra.gmra.mxu1 %vm277_vm1, %v10511_v29 }
0x46f8   :  { %10529 = vmatpush3.msra.mxu1 %v9489_v62 }
0x46f9   :  { %10530 = vmatprep.subr.mxu1 %v9488_v48 }
0x46fa   :  { %10531 = vmatpush3.msra.mxu1 %v9488_v48 }
0x46fb   :  { %10532 = vmatprep.subr.mxu1 %v9487_v40 }
0x46fc   :  { %10533 = vmatpush3.msra.mxu1 %v9487_v40  ;;  %v9497_v40 = vld [vmem:[%s11112_s9 + $0x1] ss:$0 sm:$0xff] }
0x46fd   :  { %10534 = vmatprep.subr.mxu1 %v9486_v41 }
0x46fe   :  { %10535 = vmatpush3.msra.mxu1 %v9486_v41 }
0x46ff   :  { %10536 = vmatprep.subr.mxu1 %v9485_v63 }
0x4700   :  { %10537 = vmatpush3.msra.mxu1 %v9485_v63 }
0x4701   :  { %10538 = vmatprep.subr.mxu1 %v9484_v54 }
0x4702   :  { %10539 = vmatpush3.msra.mxu1 %v9484_v54 }
0x4703   :  { %10540 = vmatprep.subr.mxu1 %v9483_v6 }
0x4704   :  { %10541 = vmatpush3.msra.mxu1 %v9483_v6 }
0x4705   :  { %10542 = vmatprep.subr.mxu1 %v9482_v1 }
0x4706   :  { %10543 = vmatpush3.msra.mxu1 %v9482_v1 }
0x47b7   :  { %v10516_v32 = vpop.f32.mrf.mxu1 }
0x47b8   :  { %v8711_v34 = vadd.f32 %v10516_v32, %v8428_v14 }
0x47b9   :  { %v8701_v35 = vpop.f32.mrf.mxu1 }
0x47ba   :  { %v8719_v36 = vadd.f32 %v9469_v15, %v8711_v34  ;;  %v8710_v22 = vadd.f32 %v8701_v35, %v8427_v17 }
0x47bc   :  { %v8718_v20 = vadd.f32 %v9469_v15, %v8710_v22  ;;  %v8721_v31 = vadd.f32 %v8719_v36, %v12039_v3 }
0x47be   :  { %v8729_v53 = vsel %vm182_vm0, %v8721_v31, 0.0  ;;  %v8720_v30 = vadd.f32 %v8718_v20, %v12037_v8 }
0x47bf   :  { %8730 = vadd.xlane.f32.xlu0 %v8729_v53 }
0x47c0   :  { %v8726_v37 = vsel %vm182_vm0, %v8720_v30, 0.0 }
0x47c1   :  { %8727 = vadd.xlane.f32.xlu1 %v8726_v37 }
0x4848   :  { %v8731_v24 = vpop.xlane.xlu0 %8730 }
0x4849   :  { %v8733_v38 = vmul.f32 0.03125, %v8731_v24  ;;  %v9013_v24 = vld [vmem:[%s11117_s4 + $0x18] sm:$0xff] }
0x484a   :  { %v8728_v59 = vpop.xlane.xlu1 %8727  ;;  %10547 = vmatprep.subr.mxu0 %v9013_v24 }
0x484b   :  { %v8735_v28 = vsub.f32 %v8721_v31, %v8733_v38  ;;  %v8732_v58 = vmul.f32 0.03125, %v8728_v59  ;;  %v9012_v38 = vld [vmem:[%s11117_s4 + $0x10] sm:$0xff]  ;;  %v9011_v59 = vld [vmem:[%s11117_s4 + $0x8] sm:$0xff] }
0x484d   :  { %v8734_v27 = vsub.f32 %v8720_v30, %v8732_v58  ;;  %v8737_v39 = vmul.f32 %v8735_v28, %v8735_v28 }
0x484f   :  { %v8741_v3 = vsel %vm182_vm0, %v8737_v39, 0.0  ;;  %v8736_v23 = vmul.f32 %v8734_v27, %v8734_v27 }
0x4850   :  { %8742 = vadd.xlane.f32.xlu0 %v8741_v3 }
0x4851   :  { %v8738_v8 = vsel %vm182_vm0, %v8736_v23, 0.0 }
0x4852   :  { %8739 = vadd.xlane.f32.xlu1 %v8738_v8 }
0x48d9   :  { %v8743_v44 = vpop.xlane.xlu0 %8742 }
0x48da   :  { %v8745_v45 = vmul.f32 0.03125, %v8743_v44 }
0x48db   :  { %v8740_v19 = vpop.xlane.xlu1 %8739 }
0x48dc   :  { %v8747_v33 = vadd.f32 1e-05, %v8745_v45  ;;  %v8744_v21 = vmul.f32 0.03125, %v8740_v19  ;;  %v9498_v19 = vld [vmem:[%s11122_s21] ss:$0 sm:$0xff] }
0x48de   :  { %10835 = vrsqrt.f32 %v8747_v33  ;;  %v8746_v46 = vadd.f32 1e-05, %v8744_v21 }
0x48e0   :  { %10837 = vrsqrt.f32 %v8746_v46 }
0x48eb   :  { %v10836_v13 = vpop.eup %10835 }
0x48ec   :  { %v8751_v51 = vmul.f32 %v10836_v13, %v8735_v28  ;;  %v9010_v28 = vld [vmem:[%s11117_s4] sm:$0xff]  ;;  %s10921_s4 = smov [#allocation2]  }
0x48ed   :  { %v10838_v47 = vpop.eup %10837  ;;  %s9109_s0 = sshll.u32 %s10921_s4, 4  ;;  %s9110_s0 = int_to_ptr.vmem [resolvable:$true] %s9109_s0 }
0x48ee   :  { %v8750_v9 = vmul.f32 %v10838_v47, %v8734_v27  ;;  %v8759_v2 = vmul.f32 %v9472_v5, %v8751_v51  ;;  %s10849_s22 = scalar_lea.vmem %s9110_s0, 256  ;;  %p10854_p1 = scmp.lt.s32.totalorder %s9110_s0, %s9110_s0 }
0x48ef   :  { %p10850_p0 = scmp.ne.s32.totalorder %s9110_s0, %s10849_s22  ;;  %p10855_p2 = scmp.lt.s32.totalorder %s10849_s22, %s10849_s22 }
0x48f0   :  { %v8758_v50 = vmul.f32 %v9472_v5, %v8750_v9  ;;  %v8767_v43 = vadd.f32 %v9473_v7, %v8759_v2 }
0x48f1   :  { %p10856_p3 = por %p10855_p2, %p10854_p1 }
0x48f2   :  { %v8766_v42 = vadd.f32 %v9473_v7, %v8758_v50 }
0x48f3   :  { %p10857_p4 = pnand %p10856_p3, %p10850_p0 }
0x48f4   :  { %10525 = vmatprep.mubr.msk.f32.mxu0 %vm182_vm0, %v8766_v42 }
0x48f5   :  { %10526 = vmatmul.mubr.msk.f32.vlgmr.msra.gmra.mxu0 %vm182_vm0, %v8767_v43 }
0x48f6   :  { %10548 = vmatpush3.msra.mxu0 %v9013_v24 }
0x48f7   :  { %10549 = vmatprep.subr.mxu0 %v9012_v38 }
0x48f8   :  { %10550 = vmatpush3.msra.mxu0 %v9012_v38 }
0x48f9   :  { %10551 = vmatprep.subr.mxu0 %v9011_v59 }
0x48fa   :  { %10552 = vmatpush3.msra.mxu0 %v9011_v59 }
0x48fb   :  { %10553 = vmatprep.subr.mxu0 %v9010_v28 }
0x48fc   :  { %10554 = vmatpush3.msra.mxu0 %v9010_v28 }
0x49b5   :  { %v10527_v0 = vpop.f32.mrf.mxu0 }
0x49b6   :  { %v8859_v60 = vadd.f32 %v10527_v0, %v9479_v55 }
0x49b7   :  { %v8853_v12 = vpop.f32.mrf.mxu0 }
0x49b8   :  { %v8854_v4 = vadd.f32 %v9479_v55, %v8853_v12  ;;  %v8863_v16 = vmax.f32 %v8859_v60, 0.0 }
0x49ba   :  { %v8862_v61 = vmax.f32 %v8854_v4, 0.0 }
0x49bc   :  { %10544 = vmatprep.mubr.msk.f32.mxu1 %vm1565_vm3, %v8862_v61 }
0x49bd   :  { %10545 = vmatmul.mubr.msk.f32.vlgmr.msra.gmra.mxu1 %vm1565_vm3, %v8863_v16 }
0x4a7d   :  { %v10546_v25 = vpop.f32.mrf.mxu1 }
0x4a7e   :  { %v8959_v26 = vadd.f32 %v10546_v25, %v9491_v10 }
0x4a7f   :  { %v8953_v14 = vpop.f32.mrf.mxu1 }
0x4a80   :  { %v8963_v56 = vadd.f32 %v8959_v26, %v8767_v43  ;;  %v8954_v17 = vadd.f32 %v9491_v10, %v8953_v14 }
0x4a82   :  { %v8962_v29 = vadd.f32 %v8954_v17, %v8766_v42  ;;  %v8971_v57 = vsel %vm182_vm0, %v8963_v56, 0.0 }
0x4a83   :  { %8972 = vadd.xlane.f32.xlu0 %v8971_v57 }
0x4a84   :  { %v8968_v15 = vsel %vm182_vm0, %v8962_v29, 0.0 }
0x4a85   :  { %8969 = vadd.xlane.f32.xlu1 %v8968_v15 }
0x4b0c   :  { %v8973_v32 = vpop.xlane.xlu0 %8972 }
0x4b0d   :  { %v8975_v34 = vmul.f32 0.03125, %v8973_v32 }
0x4b0e   :  { %v8970_v35 = vpop.xlane.xlu1 %8969 }
0x4b0f   :  { %v8977_v36 = vsub.f32 %v8963_v56, %v8975_v34  ;;  %v8974_v22 = vmul.f32 0.03125, %v8970_v35 }
0x4b11   :  { %v8976_v20 = vsub.f32 %v8962_v29, %v8974_v22  ;;  %v8979_v31 = vmul.f32 %v8977_v36, %v8977_v36 }
0x4b13   :  { %v8983_v53 = vsel %vm182_vm0, %v8979_v31, 0.0  ;;  %v8978_v30 = vmul.f32 %v8976_v20, %v8976_v20 }
0x4b14   :  { %8984 = vadd.xlane.f32.xlu0 %v8983_v53 }
0x4b15   :  { %v8980_v37 = vsel %vm182_vm0, %v8978_v30, 0.0 }
0x4b16   :  { %8981 = vadd.xlane.f32.xlu1 %v8980_v37 }
0x4b9d   :  { %v8985_v58 = vpop.xlane.xlu0 %8984 }
0x4b9e   :  { %v8987_v27 = vmul.f32 0.03125, %v8985_v58 }
0x4b9f   :  { %v8982_v39 = vpop.xlane.xlu1 %8981 }
0x4ba0   :  { %v8989_v3 = vadd.f32 1e-05, %v8987_v27  ;;  %v8986_v23 = vmul.f32 0.03125, %v8982_v39 }
0x4ba2   :  { %10839 = vrsqrt.f32 %v8989_v3  ;;  %v8988_v8 = vadd.f32 1e-05, %v8986_v23 }
0x4ba4   :  { %10841 = vrsqrt.f32 %v8988_v8 }
0x4baf   :  { %v10840_v52 = vpop.eup %10839 }
0x4bb0   :  { %v8993_v49 = vmul.f32 %v10840_v52, %v8977_v36 }
0x4bb1   :  { %v10842_v11 = vpop.eup %10841 }
0x4bb2   :  { %v8992_v62 = vmul.f32 %v10842_v11, %v8976_v20  ;;  %v9001_v48 = vmul.f32 %v9496_v18, %v8993_v49 }
0x4bb4   :  { %v9000_v41 = vmul.f32 %v9496_v18, %v8992_v62  ;;  %v9009_v45 = vadd.f32 %v9497_v40, %v9001_v48 }
0x4bb6   :  { %v9008_v44 = vadd.f32 %v9497_v40, %v9000_v41 }
0x4bb8   :  { %10555 = vmatprep.mubr.msk.f32.mxu0 %vm182_vm0, %v9008_v44 }
0x4bb9   :  { %10556 = vmatmul.mubr.msk.f32.vlgmr.msra.gmra.mxu0 %vm182_vm0, %v9009_v45 }
0x4c79   :  { %v10557_v33 = vpop.f32.mrf.mxu0 }
0x4c7a   :  { %v9099_v21 = vadd.f32 %v10557_v33, %v9498_v19 }
0x4c7b   :  { %v9093_v46 = vpop.f32.mrf.mxu0 }
0x4c7c   :  { %9103 = vst [vmem:[#allocation2 + $0x8] sm:$0xff] %v9099_v21  ;;  %v9094_v13 = vadd.f32 %v9498_v19, %v9093_v46 }
0x4c7e   :  { %9102 = vst [vmem:[#allocation2] sm:$0xff] %v9094_v13 }
0x4c7f   :  { %10860 = shalt.err (!%p10857_p4)
}
0x4c80   :  { %s10922_s9 = smov 128   ;;  %s10923_s5 = smov 8  }
0x4c81   :  { %9115 = dma.vmem_to_hbm [thread:$0]  %s9110_s0, 256, %s11127_s17, [#allocation3], %s10922_s9, %s10922_s9, %s10923_s5  }
0x4c82   :  { %10869 = dma.done.wait [#allocation3], 256  }
0x4c83   :  { %10870 = vsyncadd [#allocation3], 4294967040 }
0x4c84   :  { %9119 = vsyncpa [#allocation3], 1 }

</bundles_post_ra>
